<compile_context>
chip_gen: v7x
topology: tpu7x:2x2x1
jax: 0.10.0
libtpu: 0.0.40
codegen_flags: <defaults>
</compile_context>

<pallas_src>
import jax
import jax.numpy as jnp
from jax.experimental import pallas as pl
from jax.experimental.pallas import tpu as pltpu

NPAD = 128  # padded width of the 3-logit head (lane-aligned)


def _attention_multi_kernel(v0_ref, v1_ref, v2_ref,
                            w1a_ref, w1b_ref, w1c_ref, b1_ref,
                            w2_ref, b2_ref, out_ref):
    cdt = w1a_ref.dtype  # bf16 compute dtype for the MXU

    # layer_0: Linear(3D -> D) on cat([v0, v1, v2], dim=1), computed as 3
    # partial matmuls against the pre-split row blocks of W1 (equivalent to
    # the concat, no in-kernel slicing of a (3D, D) weight). bf16 operands,
    # f32 MXU accumulation. If the inputs are already bf16, .astype is a no-op.
    h = jnp.dot(v0_ref[...].astype(cdt), w1a_ref[...],
                preferred_element_type=jnp.float32)
    h = h + jnp.dot(v1_ref[...].astype(cdt), w1b_ref[...],
                    preferred_element_type=jnp.float32)
    h = h + jnp.dot(v2_ref[...].astype(cdt), w1c_ref[...],
                    preferred_element_type=jnp.float32)
    h = jnp.maximum(h + b1_ref[...], 0.0)  # bias + relu_0 in f32

    # layer_2: Linear(D -> 3), padded to 128 lanes (pad weight cols 0, pad
    # bias -1e30 in f32 — pad lanes vanish in the softmax below).
    logits = jnp.dot(h.astype(cdt), w2_ref[...],
                     preferred_element_type=jnp.float32) + b2_ref[...]

    # softmax over dim=1 in f32. Denominator reciprocal goes to the EUP slot;
    # only the 3 real lanes are rescaled (skip the 128-lane divide).
    m = jnp.max(logits, axis=1, keepdims=True)
    e = jnp.exp(logits - m)
    s = jnp.sum(e, axis=1, keepdims=True)
    inv = pl.reciprocal(s, approx=True)

    f0 = e[:, 0:1] * inv
    f1 = e[:, 1:2] * inv
    f2 = e[:, 2:3] * inv
    # Re-read the input tiles straight from VMEM for the weighted sum (the
    # bf16 matmul copies above don't stay live); f32 factors promote the
    # products to f32 regardless of the I/O dtype, then cast to out dtype.
    out_ref[...] = (f0 * v0_ref[...] + f1 * v1_ref[...]
                    + f2 * v2_ref[...]).astype(out_ref.dtype)


def _round_up(x, m):
    return (x + m - 1) // m * m


def _choose_batch_tile(B, tb):
    """Pick the per-grid-step batch tile.

    * multiples of 16 (bf16 sublane packing) unless the tile covers the full
      batch (full-extent blocks are always legal),
    * for 64 < B <= tb, split into 2 tiles so both TensorCores on v7x get
      work instead of running a 1-step grid.
    """
    tb = max(16, (tb // 16) * 16)
    if B <= 64:
        return B                                    # one full-extent block
    if B <= tb:
        return _round_up(pl.cdiv(B, 2), 16)         # 2-step parallel grid
    return tb


def attention_multi_forward(vectors, params, *, tb=256):
    """vectors: tuple of 3 arrays of shape (B, D) (f32 or bf16).
    params: (w1, b1, w2, b2) with w1 (3D, D), b1 (D,), w2 (D, 3), b2 (3,) —
    already in x @ W + b layout (transpose PyTorch nn.Linear weights first).
    Returns (B, D) in the input dtype."""
    v0, v1, v2 = vectors
    B, D = v0.shape
    assert D % 128 == 0, "feature dim must be lane-aligned (D % 128 == 0)"
    w1, b1, w2, b2 = params
    assert w1.shape == (3 * D, D) and w2.shape == (D, 3)

    tb_eff = _choose_batch_tile(B, tb)
    grid = (pl.cdiv(B, tb_eff),)   # ragged last tile -> Pallas masked writeback

    # Weight prep: bf16 matmul operands (halves resident VMEM / HBM bytes),
    # biases stay f32. W1 pre-split into three (D, D) row blocks so the kernel
    # reads tile-aligned refs directly. Pad the 3-wide head to 128 lanes.
    # NOTE(v5e): W1 could be stored int8 + f32 per-column scales for ~2x MXU
    # throughput there; not done since v6e/v7x are HBM-bound and the v7x MXU
    # has no int8 path.
    cdt = jnp.bfloat16
    w1a = w1[0 * D:1 * D].astype(cdt)
    w1b = w1[1 * D:2 * D].astype(cdt)
    w1c = w1[2 * D:3 * D].astype(cdt)
    w2p = jnp.zeros((D, NPAD), cdt).at[:, :3].set(w2.astype(cdt))
    b1r = b1.reshape(1, D).astype(jnp.float32)
    b2p = jnp.full((1, NPAD), -1e30, jnp.float32).at[0, :3].set(
        b2.astype(jnp.float32))

    itemsize = jnp.dtype(v0.dtype).itemsize
    weight_bytes = (3 * D * D + D * NPAD) * 2 + (D + NPAD) * 4
    io_tile_bytes = 4 * tb_eff * D * itemsize       # 3 input + 1 output tile
    # f32 accumulator h + (only if f32 I/O) three bf16 operand copies.
    interm_bytes = tb_eff * D * 4 + (3 * tb_eff * D * 2 if itemsize == 4 else 0)
    # resident weights single-buffered + double-buffered I/O tiles + headroom;
    # at D=1280/tb=256 this stays well inside v7x's 64 MiB VMEM.
    vmem_limit = int(weight_bytes + 2 * io_tile_bytes + interm_bytes) + (8 << 20)

    cost = pl.CostEstimate(
        flops=2 * B * (3 * D) * D + 2 * B * D * NPAD + 6 * B * D,
        transcendentals=B * NPAD,
        bytes_accessed=int(weight_bytes + 4 * B * D * itemsize))

    def wspec(shape):
        # Resident weights: constant index_map -> nothing to prefetch, so one
        # buffer suffices (halves their VMEM footprint).
        return pl.BlockSpec(shape, lambda i: (0, 0),
                            pipeline_mode=pl.Buffered(1))

    return pl.pallas_call(
        _attention_multi_kernel,
        out_shape=jax.ShapeDtypeStruct((B, D), v0.dtype),
        grid_spec=pltpu.PrefetchScalarGridSpec(
            num_scalar_prefetch=0,
            grid=grid,
            in_specs=[
                pl.BlockSpec((tb_eff, D), lambda i: (i, 0)),   # v0 tile
                pl.BlockSpec((tb_eff, D), lambda i: (i, 0)),   # v1 tile
                pl.BlockSpec((tb_eff, D), lambda i: (i, 0)),   # v2 tile
                wspec((D, D)),                                 # W1 rows [0:D]
                wspec((D, D)),                                 # W1 rows [D:2D]
                wspec((D, D)),                                 # W1 rows [2D:3D]
                wspec((1, D)),                                 # b1 (f32)
                wspec((D, NPAD)),                              # W2 (bf16, padded)
                wspec((1, NPAD)),                              # b2 (f32, padded)
            ],
            out_specs=pl.BlockSpec((tb_eff, D), lambda i: (i, 0)),
        ),
        compiler_params=pltpu.CompilerParams(
            dimension_semantics=("parallel",),
            vmem_limit_bytes=vmem_limit),
        cost_estimate=cost,
    )(v0, v1, v2, w1a, w1b, w1c, b1r, w2p, b2p)


def _reference(vectors, params, *, matmul_dtype=jnp.float32):
    """Pure-JAX reference. matmul_dtype=bfloat16 mirrors the kernel numerics."""
    v0, v1, v2 = vectors
    w1, b1, w2, b2 = params
    x = jnp.concatenate([v0, v1, v2], axis=1).astype(matmul_dtype)
    h = jnp.dot(x, w1.astype(matmul_dtype),
                preferred_element_type=jnp.float32) + b1
    h = jnp.maximum(h, 0.0)
    logits = jnp.dot(h.astype(matmul_dtype), w2.astype(matmul_dtype),
                     preferred_element_type=jnp.float32) + b2
    factors = jax.nn.softmax(logits, axis=1)
    return (factors[:, 0:1] * v0 + factors[:, 1:2] * v1
            + factors[:, 2:3] * v2)


def _init_params(key, d):
    """Deterministic synthetic init (PyTorch-Linear-style uniform bounds),
    already transposed to (in_features, out_features)."""
    k1, k2, k3, k4 = jax.random.split(key, 4)
    bound1 = 1.0 / jnp.sqrt(3.0 * d)
    bound2 = 1.0 / jnp.sqrt(float(d))
    w1 = jax.random.uniform(k1, (3 * d, d), jnp.float32, -bound1, bound1)
    b1 = jax.random.uniform(k2, (d,), jnp.float32, -bound1, bound1)
    w2 = jax.random.uniform(k3, (d, 3), jnp.float32, -bound2, bound2)
    b2 = jax.random.uniform(k4, (3,), jnp.float32, -bound2, bound2)
    return w1, b1, w2, b2


if __name__ == "__main__":
    # Real checkpoint is D=1280 (in_feature_list [3840, 1280]); the demo keeps
    # the same structure at small shapes. B=384 exercises the tb=256 path with
    # a ragged last tile (no pad / no output slice); the second case exercises
    # bf16 end-to-end I/O and the tiny-batch full-extent block.
    key = jax.random.PRNGKey(0)
    kv0, kv1, kv2, kp = jax.random.split(key, 4)

    B, D = 384, 256
    v0 = jax.random.normal(kv0, (B, D), jnp.float32)
    v1 = jax.random.normal(kv1, (B, D), jnp.float32)
    v2 = jax.random.normal(kv2, (B, D), jnp.float32)
    params = _init_params(kp, D)

    out = attention_multi_forward((v0, v1, v2), params)
    out = jax.block_until_ready(out)
    assert out.shape == (B, D) and out.dtype == jnp.float32

    # Numerics-matched reference (bf16 matmul operands, f32 accumulate).
    ref_bf16 = _reference((v0, v1, v2), params, matmul_dtype=jnp.bfloat16)
    assert jnp.allclose(out, ref_bf16, rtol=1e-2, atol=1e-2), \
        "mismatch vs bf16-matched reference (f32 I/O)"
    # Sanity check against the full-f32 reference (looser tolerance for bf16).
    ref_f32 = _reference((v0, v1, v2), params, matmul_dtype=jnp.float32)
    assert jnp.allclose(out, ref_f32, rtol=3e-2, atol=3e-2), \
        "mismatch vs f32 reference (f32 I/O)"

    # bf16 end-to-end I/O (HBM-bound fast path on v6e/v7x) + tiny batch.
    Bs = 40
    v0s = v0[:Bs].astype(jnp.bfloat16)
    v1s = v1[:Bs].astype(jnp.bfloat16)
    v2s = v2[:Bs].astype(jnp.bfloat16)
    out_bf16 = attention_multi_forward((v0s, v1s, v2s), params)
    out_bf16 = jax.block_until_ready(out_bf16)
    assert out_bf16.shape == (Bs, D) and out_bf16.dtype == jnp.bfloat16
    ref_s = _reference((v0s, v1s, v2s), params, matmul_dtype=jnp.bfloat16)
    assert jnp.allclose(out_bf16.astype(jnp.float32), ref_s,
                        rtol=3e-2, atol=3e-2), \
        "mismatch vs bf16-matched reference (bf16 I/O)"

    print("KERNEL_OK")
</pallas_src>

<mosaic_0001>
module attributes {stable_mosaic.version = 11 : i64} {
  func.func @_attention_multi_kernel(%arg0: i32, %arg1: memref<256x256xf32, #tpu.memory_space<vmem>>, %arg2: memref<256x256xf32, #tpu.memory_space<vmem>>, %arg3: memref<256x256xf32, #tpu.memory_space<vmem>>, %arg4: memref<256x256xbf16, #tpu.memory_space<vmem>>, %arg5: memref<256x256xbf16, #tpu.memory_space<vmem>>, %arg6: memref<256x256xbf16, #tpu.memory_space<vmem>>, %arg7: memref<1x256xf32, #tpu.memory_space<vmem>>, %arg8: memref<256x128xbf16, #tpu.memory_space<vmem>>, %arg9: memref<1x128xf32, #tpu.memory_space<vmem>>, %arg10: memref<256x256xf32, #tpu.memory_space<vmem>>) attributes {dimension_semantics = [#tpu.dimension_semantics<parallel>], iteration_bounds = array<i64: 2>, scalar_prefetch = 0 : i64, scratch_operands = 0 : i64, tpu.core_type = #tpu.core_type<tc>, window_params = [{transform_indices = @transform_0, window_bounds = array<i64: 256, 256>}, {transform_indices = @transform_1, window_bounds = array<i64: 256, 256>}, {transform_indices = @transform_2, window_bounds = array<i64: 256, 256>}, {pipeline_mode = #tpu.pipeline_mode<synchronous>, transform_indices = @transform_3, window_bounds = array<i64: 256, 256>}, {pipeline_mode = #tpu.pipeline_mode<synchronous>, transform_indices = @transform_4, window_bounds = array<i64: 256, 256>}, {pipeline_mode = #tpu.pipeline_mode<synchronous>, transform_indices = @transform_5, window_bounds = array<i64: 256, 256>}, {pipeline_mode = #tpu.pipeline_mode<synchronous>, transform_indices = @transform_6, window_bounds = array<i64: 1, 256>}, {pipeline_mode = #tpu.pipeline_mode<synchronous>, transform_indices = @transform_7, window_bounds = array<i64: 256, 128>}, {pipeline_mode = #tpu.pipeline_mode<synchronous>, transform_indices = @transform_8, window_bounds = array<i64: 1, 128>}, {transform_indices = @transform_9, window_bounds = array<i64: 256, 256>}]} {
    %c0 = arith.constant 0 : index
    %c0_0 = arith.constant 0 : index
    %0 = vector.load %arg1[%c0, %c0_0] : memref<256x256xf32, #tpu.memory_space<vmem>>, vector<256x256xf32>
    %1 = arith.truncf %0 : vector<256x256xf32> to vector<256x256xbf16>
    %c0_1 = arith.constant 0 : index
    %c0_2 = arith.constant 0 : index
    %2 = vector.load %arg4[%c0_1, %c0_2] : memref<256x256xbf16, #tpu.memory_space<vmem>>, vector<256x256xbf16>
    %cst = arith.constant dense<0.000000e+00> : vector<256x256xf32>
    %3 = tpu.matmul %1, %2, %cst {dimension_numbers = #tpu.dot_dimension_numbers<[1], [0], [0], [1], [0, 0, 1, 1], [], []>} : vector<256x256xbf16>, vector<256x256xbf16>, vector<256x256xf32> -> vector<256x256xf32>
    %c0_3 = arith.constant 0 : index
    %c0_4 = arith.constant 0 : index
    %4 = vector.load %arg2[%c0_3, %c0_4] : memref<256x256xf32, #tpu.memory_space<vmem>>, vector<256x256xf32>
    %5 = arith.truncf %4 : vector<256x256xf32> to vector<256x256xbf16>
    %c0_5 = arith.constant 0 : index
    %c0_6 = arith.constant 0 : index
    %6 = vector.load %arg5[%c0_5, %c0_6] : memref<256x256xbf16, #tpu.memory_space<vmem>>, vector<256x256xbf16>
    %cst_7 = arith.constant dense<0.000000e+00> : vector<256x256xf32>
    %7 = tpu.matmul %5, %6, %cst_7 {dimension_numbers = #tpu.dot_dimension_numbers<[1], [0], [0], [1], [0, 0, 1, 1], [], []>} : vector<256x256xbf16>, vector<256x256xbf16>, vector<256x256xf32> -> vector<256x256xf32>
    %8 = arith.addf %3, %7 : vector<256x256xf32>
    %c0_8 = arith.constant 0 : index
    %c0_9 = arith.constant 0 : index
    %9 = vector.load %arg3[%c0_8, %c0_9] : memref<256x256xf32, #tpu.memory_space<vmem>>, vector<256x256xf32>
    %10 = arith.truncf %9 : vector<256x256xf32> to vector<256x256xbf16>
    %c0_10 = arith.constant 0 : index
    %c0_11 = arith.constant 0 : index
    %11 = vector.load %arg6[%c0_10, %c0_11] : memref<256x256xbf16, #tpu.memory_space<vmem>>, vector<256x256xbf16>
    %cst_12 = arith.constant dense<0.000000e+00> : vector<256x256xf32>
    %12 = tpu.matmul %10, %11, %cst_12 {dimension_numbers = #tpu.dot_dimension_numbers<[1], [0], [0], [1], [0, 0, 1, 1], [], []>} : vector<256x256xbf16>, vector<256x256xbf16>, vector<256x256xf32> -> vector<256x256xf32>
    %13 = arith.addf %8, %12 : vector<256x256xf32>
    %c0_13 = arith.constant 0 : index
    %c0_14 = arith.constant 0 : index
    %14 = vector.load %arg7[%c0_13, %c0_14] : memref<1x256xf32, #tpu.memory_space<vmem>>, vector<1x256xf32>
    %15 = vector.broadcast %14 : vector<1x256xf32> to vector<256x256xf32>
    %16 = arith.addf %13, %15 : vector<256x256xf32>
    %cst_15 = arith.constant 0.000000e+00 : f32
    %17 = vector.broadcast %cst_15 : f32 to vector<256x256xf32>
    %18 = arith.maximumf %16, %17 : vector<256x256xf32>
    %19 = arith.truncf %18 : vector<256x256xf32> to vector<256x256xbf16>
    %c0_16 = arith.constant 0 : index
    %c0_17 = arith.constant 0 : index
    %20 = vector.load %arg8[%c0_16, %c0_17] : memref<256x128xbf16, #tpu.memory_space<vmem>>, vector<256x128xbf16>
    %cst_18 = arith.constant dense<0.000000e+00> : vector<256x128xf32>
    %21 = tpu.matmul %19, %20, %cst_18 {dimension_numbers = #tpu.dot_dimension_numbers<[1], [0], [0], [1], [0, 0, 1, 1], [], []>} : vector<256x256xbf16>, vector<256x128xbf16>, vector<256x128xf32> -> vector<256x128xf32>
    %c0_19 = arith.constant 0 : index
    %c0_20 = arith.constant 0 : index
    %22 = vector.load %arg9[%c0_19, %c0_20] : memref<1x128xf32, #tpu.memory_space<vmem>>, vector<1x128xf32>
    %23 = vector.broadcast %22 : vector<1x128xf32> to vector<256x128xf32>
    %24 = arith.addf %21, %23 : vector<256x128xf32>
    %cst_21 = arith.constant dense<0xFF800000> : vector<256xf32>
    %25 = vector.multi_reduction <maximumf>, %24, %cst_21 [1] : vector<256x128xf32> to vector<256xf32>
    %26 = vector.shape_cast %25 : vector<256xf32> to vector<256x1xf32>
    %27 = vector.broadcast %26 : vector<256x1xf32> to vector<256x128xf32>
    %28 = arith.subf %24, %27 : vector<256x128xf32>
    %29 = math.exp %28 : vector<256x128xf32>
    %cst_22 = arith.constant dense<0.000000e+00> : vector<256xf32>
    %30 = vector.multi_reduction <add>, %29, %cst_22 [1] : vector<256x128xf32> to vector<256xf32>
    %31 = vector.shape_cast %30 : vector<256xf32> to vector<256x1xf32>
    %32 = tpu.reciprocal %31 {approx = true} : vector<256x1xf32> -> vector<256x1xf32>
    %33 = vector.extract_strided_slice %29 {offsets = [0, 0], sizes = [256, 1], strides = [1, 1]} : vector<256x128xf32> to vector<256x1xf32>
    %34 = arith.mulf %33, %32 : vector<256x1xf32>
    %35 = vector.extract_strided_slice %29 {offsets = [0, 1], sizes = [256, 1], strides = [1, 1]} : vector<256x128xf32> to vector<256x1xf32>
    %36 = arith.mulf %35, %32 : vector<256x1xf32>
    %37 = vector.extract_strided_slice %29 {offsets = [0, 2], sizes = [256, 1], strides = [1, 1]} : vector<256x128xf32> to vector<256x1xf32>
    %38 = arith.mulf %37, %32 : vector<256x1xf32>
    %c0_23 = arith.constant 0 : index
    %c0_24 = arith.constant 0 : index
    %39 = vector.load %arg1[%c0_23, %c0_24] : memref<256x256xf32, #tpu.memory_space<vmem>>, vector<256x256xf32>
    %40 = vector.broadcast %34 : vector<256x1xf32> to vector<256x256xf32>
    %41 = arith.mulf %40, %39 : vector<256x256xf32>
    %c0_25 = arith.constant 0 : index
    %c0_26 = arith.constant 0 : index
    %42 = vector.load %arg2[%c0_25, %c0_26] : memref<256x256xf32, #tpu.memory_space<vmem>>, vector<256x256xf32>
    %43 = vector.broadcast %36 : vector<256x1xf32> to vector<256x256xf32>
    %44 = arith.mulf %43, %42 : vector<256x256xf32>
    %45 = arith.addf %41, %44 : vector<256x256xf32>
    %c0_27 = arith.constant 0 : index
    %c0_28 = arith.constant 0 : index
    %46 = vector.load %arg3[%c0_27, %c0_28] : memref<256x256xf32, #tpu.memory_space<vmem>>, vector<256x256xf32>
    %47 = vector.broadcast %38 : vector<256x1xf32> to vector<256x256xf32>
    %48 = arith.mulf %47, %46 : vector<256x256xf32>
    %49 = arith.addf %45, %48 : vector<256x256xf32>
    %c0_29 = arith.constant 0 : index
    %c0_30 = arith.constant 0 : index
    %50 = vector.load %arg10[%c0_29, %c0_30] : memref<256x256xf32, #tpu.memory_space<vmem>>, vector<256x256xf32>
    tpu.vector_store %arg10[%c0_29, %c0_30], %49 {strides = array<i32>} : memref<256x256xf32, #tpu.memory_space<vmem>>, vector<256x256xf32>,
    return
  }
  func.func @transform_0(%arg0: i32) -> (i32, i32) {
    %c0_i32 = arith.constant 0 : i32
    %c0_i32_0 = arith.constant 0 : i32
    return %arg0, %c0_i32 : i32, i32
  }
  func.func @transform_1(%arg0: i32) -> (i32, i32) {
    %c0_i32 = arith.constant 0 : i32
    %c0_i32_0 = arith.constant 0 : i32
    return %arg0, %c0_i32 : i32, i32
  }
  func.func @transform_2(%arg0: i32) -> (i32, i32) {
    %c0_i32 = arith.constant 0 : i32
    %c0_i32_0 = arith.constant 0 : i32
    return %arg0, %c0_i32 : i32, i32
  }
  func.func @transform_3(%arg0: i32) -> (i32, i32) {
    %c0_i32 = arith.constant 0 : i32
    %c0_i32_0 = arith.constant 0 : i32
    %c0_i32_1 = arith.constant 0 : i32
    return %c0_i32, %c0_i32_0 : i32, i32
  }
  func.func @transform_4(%arg0: i32) -> (i32, i32) {
    %c0_i32 = arith.constant 0 : i32
    %c0_i32_0 = arith.constant 0 : i32
    %c0_i32_1 = arith.constant 0 : i32
    return %c0_i32, %c0_i32_0 : i32, i32
  }
  func.func @transform_5(%arg0: i32) -> (i32, i32) {
    %c0_i32 = arith.constant 0 : i32
    %c0_i32_0 = arith.constant 0 : i32
    %c0_i32_1 = arith.constant 0 : i32
    return %c0_i32, %c0_i32_0 : i32, i32
  }
  func.func @transform_6(%arg0: i32) -> (i32, i32) {
    %c0_i32 = arith.constant 0 : i32
    %c0_i32_0 = arith.constant 0 : i32
    %c0_i32_1 = arith.constant 0 : i32
    return %c0_i32, %c0_i32_0 : i32, i32
  }
  func.func @transform_7(%arg0: i32) -> (i32, i32) {
    %c0_i32 = arith.constant 0 : i32
    %c0_i32_0 = arith.constant 0 : i32
    %c0_i32_1 = arith.constant 0 : i32
    return %c0_i32, %c0_i32_0 : i32, i32
  }
  func.func @transform_8(%arg0: i32) -> (i32, i32) {
    %c0_i32 = arith.constant 0 : i32
    %c0_i32_0 = arith.constant 0 : i32
    %c0_i32_1 = arith.constant 0 : i32
    return %c0_i32, %c0_i32_0 : i32, i32
  }
  func.func @transform_9(%arg0: i32) -> (i32, i32) {
    %c0_i32 = arith.constant 0 : i32
    %c0_i32_0 = arith.constant 0 : i32
    return %arg0, %c0_i32 : i32, i32
  }
}

</mosaic_0001>

<bundles_post_ra>
// kernel: tpu_custom_call.1
= control target key start
LH: loop header
LB: loop body
LE: loop exit
PB: predicated region body
PF: predicated region fallthrough
CT: control target
= control target key end

     0   :  { %s6963_s0 = inlined_call_operand.hbm [shape: f32[384,256], index: 0, kind: input, shape index: {}]   ;;  %s6964_s1 = inlined_call_operand.hbm [shape: f32[384,256], index: 1, kind: input, shape index: {}]   ;;  %s6965_s2 = inlined_call_operand.hbm [shape: f32[384,256], index: 2, kind: input, shape index: {}]   ;;  %s6966_s3 = inlined_call_operand.hbm [shape: bf16[256,256], index: 3, kind: input, shape index: {}]   ;;  %s6967_s4 = inlined_call_operand.hbm [shape: bf16[256,256], index: 4, kind: input, shape index: {}]   ;;  %s6968_s5 = inlined_call_operand.hbm [shape: bf16[256,256], index: 5, kind: input, shape index: {}]   ;;  %s6969_s6 = inlined_call_operand.vmem [shape: f32[1,256], index: 6, kind: input, shape index: {}]   ;;  %s6970_s7 = inlined_call_operand.hbm [shape: bf16[256,128], index: 7, kind: input, shape index: {}]   ;;  %s6971_s8 = inlined_call_operand.vmem [shape: f32[1,128], index: 8, kind: input, shape index: {}]   ;;  %s6972_s9 = inlined_call_operand.hbm [shape: f32[384,256], index: 9, kind: output, shape index: {}]  }
   0x1   :  { %6982 = sst [smem:[#allocation26_spill]] %s6966_s3 }
   0x2   :  { %6983 = sst [smem:[#allocation27_spill]] %s6971_s8 }
   0x3   :  { %6984 = sst [smem:[#allocation28_spill]] %s6972_s9 }
   0x4   :  { %14 = vsyncpa [#allocation3], 0 }
   0x5   :  { %16 = vsyncpa [#allocation3 + $0x1], 0 }
   0x6   :  { %17 = vsyncpa [#allocation6], 0 }
   0x7   :  { %19 = vsyncpa [#allocation6 + $0x1], 0 }
   0x8   :  { %20 = vsyncpa [#allocation9], 0 }
   0x9   :  { %21 = vsyncpa [#allocation12], 0 }
   0xa   :  { %22 = vsyncpa [#allocation4], 0 }
   0xb   :  { %24 = vsyncpa [#allocation4 + $0x1], 0  ;;  %s5215_s30 = smov 0   ;;  %s5217_s10 = smov 0  }
   0xc   :  { %s5219_s11 = smov 0   ;;  %s5221_s12 = smov 0  }
   0xd LB: > { %6985 = sst [smem:[#allocation20_spill]] %s5128_s30  ;;  %s5236_s13 = sadd.s32 4294967295, %s5140_s12   ;;  %s5140_s12 = sphi %s5221_s12, %s7016_s12   ;;  %s5136_s11 = sphi %s5219_s11, %s7020_s11   ;;  %s5132_s10 = sphi %s5217_s10, %s7019_s10   ;;  %s5128_s30 = sphi %s5215_s30, %s7018_s30  }
   0xe   : > { %s3774_s14 = sadd.s32 4294967294, %s5140_s12   ;;  %s5240_s15 = sadd.s32 1, %s5140_s12  }
   0xf   : > { %6986 = sst [smem:[#allocation21_spill]] %s5240_s15  ;;  %s37_s16 = sadd.s32 1, %s5136_s11 }
  0x10   : > { %s34_s17 = ssub.s32 %s5140_s12, %s5240_s15  ;;  %p44_p0 = scmp.ne.s32.totalorder %s5136_s11, %s5132_s10 }
  0x11   : > { %p35_p1 = scmp.eq.s32.totalorder %s34_s17, 0  ;;  %p45_p2 = scmp.eq.s32.totalorder %s5140_s12, 0 }
  0x12   : > { %p50_p3 = scmp.ne.s32.totalorder %s5132_s10, %s5128_s30  ;;  %p6975_p4 = scmp.eq.s32.totalorder %s5236_s13, 0 }
  0x13   : > { %s5252_s18 = scalar_select %p35_p1, %s5136_s11, %s37_s16  }
  0x14   : > { %p5254_p5 = por %p45_p2, %p44_p0  ;;  %p5260_p6 = por %p6975_p4, %p50_p3 }
  0x15   : > { %6987 = sst [smem:[#allocation22_spill]] %s5252_s18  ;;  %p252_p7 = scmp.eq.s32.totalorder %s5236_s13, 1 }
  0x16   : > { %s6988_s19 = scalar_select %p5254_p5, 1, 0 }
  0x17   : > { %s6989_s20 = scalar_select %p5260_p6, 1, 0 }
  0x18   : > { %p258_p8 = scmp.eq.s32.totalorder %s3774_s14, 1  ;;  %p3775_p9 = scmp.ge.s32.totalorder %s5140_s12, 1 }
  0x19   : > { %p265_p10 = scmp.lt.s32.totalorder %s5140_s12, 3  ;;  %p5267_p11 = por %p252_p7, %p44_p0 }
  0x1a   : > { %p5271_p12 = por %p258_p8, %p50_p3  ;;  %s5142_s24 = smov [#allocation8]  }
  0x1b   : > { %s6990_s21 = scalar_select %p5267_p11, 1, 0 }
  0x1c   : > { %s6992_s22 = scalar_select %p5271_p12, 1, 0 }
  0x1d   : > { %6991 = sst [smem:[#allocation23_spill]] %s6990_s21  ;;  %p5275_p13 = pnand %p3775_p9, %p265_p10 }
  0x1e   : > { %6993 = sst [smem:[#allocation24_spill]] %s6992_s22  ;;  %s277_s25 = sshll.u32 %s5142_s24, 4  ;;  %s278_s25 = int_to_ptr.vmem [resolvable:$true] %s277_s25 }
  0x1f   : > { %s6994_s23 = scalar_select %p5275_p13, 1, 0 }
  0x20   : > { %p4213_p1 = pneg %p5275_p13  ;;  %s5143_s27 = smov [#allocation11]  }
  0x21   : > { %s303_s28 = sshll.u32 %s5143_s27, 4  ;;  %s6996_s3 = sld [smem:[#allocation26_spill]]  ;;  %s5287_s28 = int_to_ptr.vmem [resolvable:$true] %s303_s28 }
  0x22   : > { %p5283_p2 = pnand %p4213_p1, %p6975_p4 }
  0x24   : > { %p5297_p3 = pneg %p5283_p2 }
  0x27   : > { %s4866_s16 = scalar_lea.hbm %s6996_s3, 4096 }
  0x28   : > { %p4867_p0 = scmp.ne.s32.totalorder %s6996_s3, %s4866_s16  ;;  %p4873_p9 = scmp.lt.u32.totalorder %s4866_s16, %s6996_s3 }
  0x2a   : > { %p4869_p7 = pnand %p5297_p3, %p4867_p0 }
  0x2c   : > { %p4870_p8 = pneg %p4869_p7 }
  0x2e   : > { %p4875_p10 = pnand %p4873_p9, %p4870_p8 }
  0x30   : > { %4878 = shalt.err (!%p4875_p10)
}
  0x31   : > { %s4879_s29 = scalar_lea.vmem %s278_s25, 4096  ;;  %p4887_p11 = scmp.lt.s32.totalorder %s278_s25, %s278_s25 }
  0x32   : > { %p4880_p1 = scmp.ne.s32.totalorder %s278_s25, %s4879_s29  ;;  %p4888_p6 = scmp.lt.s32.totalorder %s4879_s29, %s4879_s29 }
  0x34   : > { %p4882_p4 = pnand %p4880_p1, %p5297_p3  ;;  %p4889_p13 = por %p4888_p6, %p4887_p11 }
  0x36   : > { %p4883_p12 = pneg %p4882_p4 }
  0x38   : > { %p4890_p5 = pnand %p4889_p13, %p4883_p12 }
  0x3a   : > { %4893 = shalt.err (!%p4890_p5)
}
  0x3b   : > { %s5144_s18 = smov 128   ;;  %s5145_s14 = smov 8  }
  0x3c   : > { %4216 = dma.hbm_to_vmem [thread:$0]  (!%p5283_p2), %s6996_s3, 4096, %s278_s25, [#allocation9], %s5144_s18, %s5144_s18, %s5145_s14  }
  0x3d   : > { %s4894_s22 = scalar_lea.hbm %s6968_s5, 4096 }
  0x3e   : > { %p4895_p4 = scmp.ne.s32.totalorder %s6968_s5, %s4894_s22  ;;  %p4901_p11 = scmp.lt.u32.totalorder %s4894_s22, %s6968_s5 }
  0x40   : > { %p4897_p5 = pnand %p4895_p4, %p5297_p3 }
  0x42   : > { %p4898_p6 = pneg %p4897_p5 }
  0x44   : > { %p4903_p12 = pnand %p4901_p11, %p4898_p6 }
  0x46   : > { %4906 = shalt.err (!%p4903_p12)
}
  0x47   : > { %s4907_s25 = scalar_lea.vmem %s5287_s28, 4096  ;;  %p4915_p8 = scmp.lt.s32.totalorder %s5287_s28, %s5287_s28 }
  0x48   : > { %p4908_p13 = scmp.ne.s32.totalorder %s5287_s28, %s4907_s25  ;;  %p4916_p9 = scmp.lt.s32.totalorder %s4907_s25, %s4907_s25 }
  0x4a   : > { %p4910_p0 = pnand %p4908_p13, %p5297_p3  ;;  %p4917_p10 = por %p4916_p9, %p4915_p8 }
  0x4c   : > { %p4911_p7 = pneg %p4910_p0 }
  0x4e   : > { %p4918_p1 = pnand %p4917_p10, %p4911_p7 }
  0x50   : > { %4921 = shalt.err (!%p4918_p1)
}
  0x51   : > { %4222 = dma.hbm_to_vmem [thread:$0]  (!%p5283_p2), %s6968_s5, 4096, %s5287_s28, [#allocation12], %s5144_s18, %s5144_s18, %s5145_s14  }
  0x52   : > { %s5146_s21 = smov [#allocation10]   ;;  %s5147_s15 = smov [#allocation13]  }
  0x53   : > { %s290_s22 = sshll.u32 %s5146_s21, 4  ;;  %s319_s16 = sshll.u32 %s5147_s15, 4  ;;  %s291_s22 = int_to_ptr.vmem [resolvable:$true] %s290_s22  ;;  %s320_s16 = int_to_ptr.vmem [resolvable:$true] %s319_s16 }
  0x54   : > { %s4922_s29 = scalar_lea.hbm %s6967_s4, 4096 }
  0x55   : > { %p4923_p4 = scmp.ne.s32.totalorder %s6967_s4, %s4922_s29  ;;  %p4929_p11 = scmp.lt.u32.totalorder %s4922_s29, %s6967_s4 }
  0x57   : > { %p4925_p5 = pnand %p4923_p4, %p5297_p3 }
  0x59   : > { %p4926_p6 = pneg %p4925_p5 }
  0x5b   : > { %p4931_p12 = pnand %p4929_p11, %p4926_p6 }
  0x5d   : > { %4934 = shalt.err (!%p4931_p12)
}
  0x5e   : > { %s4935_s28 = scalar_lea.vmem %s291_s22, 4096  ;;  %p4943_p8 = scmp.lt.s32.totalorder %s291_s22, %s291_s22 }
  0x5f   : > { %p4936_p13 = scmp.ne.s32.totalorder %s291_s22, %s4935_s28  ;;  %p4944_p9 = scmp.lt.s32.totalorder %s4935_s28, %s4935_s28 }
  0x61   : > { %p4938_p0 = pnand %p4936_p13, %p5297_p3  ;;  %p4945_p10 = por %p4944_p9, %p4943_p8 }
  0x63   : > { %p4939_p7 = pneg %p4938_p0 }
  0x65   : > { %p4946_p1 = pnand %p4945_p10, %p4939_p7 }
  0x67   : > { %4949 = shalt.err (!%p4946_p1)
}
  0x68   : > { %4219 = dma.hbm_to_vmem [thread:$0]  (!%p5283_p2), %s6967_s4, 4096, %s291_s22, [#allocation9], %s5144_s18, %s5144_s18, %s5145_s14  }
  0x69   : > { %s4950_s15 = scalar_lea.hbm %s6970_s7, 2048 }
  0x6a   : > { %p4951_p4 = scmp.ne.s32.totalorder %s6970_s7, %s4950_s15  ;;  %p4957_p11 = scmp.lt.u32.totalorder %s4950_s15, %s6970_s7 }
  0x6c   : > { %p4953_p5 = pnand %p4951_p4, %p5297_p3 }
  0x6e   : > { %p4954_p6 = pneg %p4953_p5 }
  0x70   : > { %p4959_p12 = pnand %p4957_p11, %p4954_p6 }
  0x72   : > { %4962 = shalt.err (!%p4959_p12)
}
  0x73   : > { %s4963_s9 = scalar_lea.vmem %s320_s16, 2048  ;;  %p4971_p8 = scmp.lt.s32.totalorder %s320_s16, %s320_s16 }
  0x74   : > { %p4964_p13 = scmp.ne.s32.totalorder %s320_s16, %s4963_s9  ;;  %p4972_p9 = scmp.lt.s32.totalorder %s4963_s9, %s4963_s9 }
  0x76   : > { %p4966_p0 = pnand %p4964_p13, %p5297_p3  ;;  %p4973_p10 = por %p4972_p9, %p4971_p8 }
  0x78   : > { %p4967_p7 = pneg %p4966_p0 }
  0x7a   : > { %p4974_p1 = pnand %p4973_p10, %p4967_p7 }
  0x7c   : > { %4977 = shalt.err (!%p4974_p1)
}
  0x7d   : > { %s5148_s18 = smov 64   ;;  %s5149_s14 = smov 4  }
  0x7e   : > { %4225 = dma.hbm_to_vmem [thread:$0]  (!%p5283_p2), %s6970_s7, 2048, %s320_s16, [#allocation12], %s5148_s18, %s5148_s18, %s5149_s14  }
  0x7f   : > { %p3780_p4 = scmp.ge.s32.totalorder %s5140_s12, 2 }
  0x80   : > { %p6998_p3 = scmp.ne.s32.totalorder (!%p3780_p4), %s6988_s19, 0 }
  0x81   : > { %332 = sbr.rel (%p3780_p4) target bundleno = 245 (0xf5), region = 40 }
  0x88   : > { %335 = sbr.rel (!%p6998_p3) target bundleno = 171 (0xab), region = 44  ;;  %s336_s24 = sand.u32 (%p6998_p3), 1, %s5136_s11  }
  0x89   : > { %s3782_s3 = sshll.u32 (%p6998_p3), %s5140_s12, 5  ;;  %s3781_s8 = sshll.u32 (%p6998_p3), %s336_s24, 9 }
  0x8a   : > { %s342_s30 = ssub.s32 (%p6998_p3), 48, %s3782_s3  ;;  %s5391_s21 = scalar_lea.sflag (%p6998_p3), [#allocation3], %s336_s24 }
  0x8b   : > { %p343_p5 = scmp.lt.s32.totalorder (%p6998_p3), %s342_s30, 32  ;;  %s340_s15 = scalar_lea.vmem (%p6998_p3), [#allocation2], %s3781_s8 }
  0x8f   : > { %s7022_s30 = smov (!%p343_p5, %s342_s30), 32 }
  0x90   : > { %s5388_s26 = sshll.u32 %s7022_s30, 8 }
  0x91   : > { %s348_s16 = ssub.s32 8192, %s5388_s26 }
  0x92   : > { %349 = vsyncadd %s5391_s21, %s348_s16  ;;  %p3785_p2 = scmp.ne.s32.totalorder %s5388_s26, 0  ;;  %s3943_s17 = sshll.u32 %s5140_s12, 13 }
  0x93   : > { %s5399_s25 = scalar_lea.hbm %s6963_s0, %s3943_s17  ;;  %s355_s9 = sshll.u32 %s340_s15, 4  ;;  %s5401_s9 = int_to_ptr.vmem [resolvable:$true] %s355_s9 }
  0x94   : > { %s4978_s18 = scalar_lea.hbm %s5399_s25, %s5388_s26  ;;  %s4982_s28 = scalar_lea.hbm %s6963_s0, 12288 }
  0x95   : > { %p4979_p6 = scmp.ne.s32.totalorder %s5399_s25, %s4978_s18  ;;  %p4983_p13 = scmp.lt.u32.totalorder %s5399_s25, %s6963_s0 }
  0x96   : > { %p4984_p0 = scmp.lt.u32.totalorder %s4982_s28, %s4978_s18  ;;  %p4986_p8 = scmp.lt.u32.totalorder %s4978_s18, %s5399_s25 }
  0x97   : > { %p4980_p11 = pnand %p4979_p6, %p3785_p2 }
  0x98   : > { %p4985_p7 = por %p4984_p0, %p4983_p13 }
  0x99   : > { %p4981_p12 = pneg %p4980_p11 }
  0x9a   : > { %p4987_p9 = por %p4986_p8, %p4985_p7 }
  0x9c   : > { %p4988_p10 = pnand %p4987_p9, %p4981_p12 }
  0x9e   : > { %4991 = shalt.err (!%p4988_p10)
}
  0x9f   : > { %s4992_s8 = scalar_lea.vmem %s5401_s9, %s5388_s26  ;;  %s5150_s30 = smov [#allocation2]  }
  0xa0   : > { %p4993_p1 = scmp.ne.s32.totalorder %s5401_s9, %s4992_s8  ;;  %s4996_s16 = sshll.u32 %s5150_s30, 4  ;;  %s4997_s16 = int_to_ptr.vmem [resolvable:$false] %s4996_s16 }
  0xa1   : > { %s4998_s15 = scalar_lea.vmem %s4997_s16, 16384  ;;  %p4999_p6 = scmp.lt.s32.totalorder %s5401_s9, %s4997_s16 }
  0xa2   : > { %p4994_p3 = pnand %p4993_p1, %p3785_p2  ;;  %p5000_p11 = scmp.lt.s32.totalorder %s4998_s15, %s4992_s8 }
  0xa4   : > { %p4995_p5 = pneg %p4994_p3  ;;  %p5001_p13 = por %p5000_p11, %p4999_p6 }
  0xa6   : > { %p5002_p0 = pnand %p5001_p13, %p4995_p5 }
  0xa8   : > { %5005 = shalt.err (!%p5002_p0)
}
  0xa9   : > { %s5151_s17 = smov 256   ;;  %s5152_s27 = smov 16  }
  0xaa   : > { %361 = dma.hbm_to_vmem [thread:$0]  (%p3785_p2), %s5399_s25, %s5388_s26, %s5401_s9, %s5391_s21, %s5151_s17, %s5151_s17, %s5152_s27  }
  0xab PF: > { %p6999_p12 = scmp.ne.s32.totalorder %s6988_s19, 0 }
  0xac   : > { %s365_s29 = sand.u32 (%p6999_p12), 1, %s5140_s12   ;;  %s367_s18 = sand.u32 (%p6999_p12), 1, %s5136_s11  }
  0xad   : > { %364 = sbr.rel (!%p6999_p12) target bundleno = 208 (0xd0), region = 48  ;;  %s3790_s14 = sshll.u32 (%p6999_p12), %s367_s18, 9 }
  0xae   : > { %s3791_s22 = sshll.u32 (%p6999_p12), %s5140_s12, 5  ;;  %s5436_s8 = scalar_lea.sflag (%p6999_p12), [#allocation6], %s365_s29 }
  0xaf   : > { %s371_s28 = ssub.s32 (%p6999_p12), 48, %s3791_s22  ;;  %s369_s26 = scalar_lea.vmem (%p6999_p12), [#allocation5], %s3790_s14 }
  0xb0   : > { %p372_p7 = scmp.lt.s32.totalorder (%p6999_p12), %s371_s28, 32 }
  0xb4   : > { %s7024_s28 = smov (!%p372_p7, %s371_s28), 32 }
  0xb5   : > { %s5433_s24 = sshll.u32 %s7024_s28, 8 }
  0xb6   : > { %s377_s3 = ssub.s32 8192, %s5433_s24 }
  0xb7   : > { %378 = vsyncadd %s5436_s8, %s377_s3  ;;  %p3794_p2 = scmp.ne.s32.totalorder %s5433_s24, 0  ;;  %s3946_s21 = sshll.u32 %s5140_s12, 13 }
  0xb8   : > { %s5444_s30 = scalar_lea.hbm %s6964_s1, %s3946_s21  ;;  %s384_s16 = sshll.u32 %s369_s26, 4  ;;  %s5446_s16 = int_to_ptr.vmem [resolvable:$true] %s384_s16 }
  0xb9   : > { %s5006_s15 = scalar_lea.hbm %s5444_s30, %s5433_s24  ;;  %s5010_s29 = scalar_lea.hbm %s6964_s1, 12288 }
  0xba   : > { %p5007_p8 = scmp.ne.s32.totalorder %s5444_s30, %s5006_s15  ;;  %p5011_p1 = scmp.lt.u32.totalorder %s5444_s30, %s6964_s1 }
  0xbb   : > { %p5012_p3 = scmp.lt.u32.totalorder %s5010_s29, %s5006_s15  ;;  %p5014_p6 = scmp.lt.u32.totalorder %s5006_s15, %s5444_s30 }
  0xbc   : > { %p5008_p9 = pnand %p5007_p8, %p3794_p2 }
  0xbd   : > { %p5013_p5 = por %p5012_p3, %p5011_p1 }
  0xbe   : > { %p5009_p10 = pneg %p5008_p9 }
  0xbf   : > { %p5015_p11 = por %p5014_p6, %p5013_p5 }
  0xc1   : > { %p5016_p13 = pnand %p5015_p11, %p5009_p10 }
  0xc3   : > { %5019 = shalt.err (!%p5016_p13)
}
  0xc4   : > { %s5020_s22 = scalar_lea.vmem %s5446_s16, %s5433_s24  ;;  %s5153_s28 = smov [#allocation5]  }
  0xc5   : > { %p5021_p0 = scmp.ne.s32.totalorder %s5446_s16, %s5020_s22  ;;  %s5024_s3 = sshll.u32 %s5153_s28, 4  ;;  %s5025_s3 = int_to_ptr.vmem [resolvable:$false] %s5024_s3 }
  0xc6   : > { %s5026_s26 = scalar_lea.vmem %s5025_s3, 16384  ;;  %p5027_p8 = scmp.lt.s32.totalorder %s5446_s16, %s5025_s3 }
  0xc7   : > { %p5022_p12 = pnand %p5021_p0, %p3794_p2  ;;  %p5028_p9 = scmp.lt.s32.totalorder %s5026_s26, %s5020_s22 }
  0xc9   : > { %p5023_p7 = pneg %p5022_p12  ;;  %p5029_p1 = por %p5028_p9, %p5027_p8 }
  0xcb   : > { %p5030_p3 = pnand %p5029_p1, %p5023_p7 }
  0xcd   : > { %5033 = shalt.err (!%p5030_p3)
}
  0xce   : > { %s5154_s21 = smov 256   ;;  %s5155_s25 = smov 16  }
  0xcf   : > { %390 = dma.hbm_to_vmem [thread:$0]  (%p3794_p2), %s5444_s30, %s5433_s24, %s5446_s16, %s5436_s8, %s5154_s21, %s5154_s21, %s5155_s25  }
  0xd0 PF: > { %p7000_p10 = scmp.ne.s32.totalorder %s6988_s19, 0 }
  0xd1   : > { %s394_s9 = sand.u32 (%p7000_p10), 1, %s5140_s12   ;;  %s396_s15 = sand.u32 (%p7000_p10), 1, %s5136_s11  }
  0xd2   : > { %393 = sbr.rel (!%p7000_p10) target bundleno = 245 (0xf5), region = 52  ;;  %s3799_s17 = sshll.u32 (%p7000_p10), %s396_s15, 9 }
  0xd3   : > { %s3800_s27 = sshll.u32 (%p7000_p10), %s5140_s12, 5  ;;  %s5481_s22 = scalar_lea.sflag (%p7000_p10), [#allocation6], %s394_s9 }
  0xd4   : > { %s400_s29 = ssub.s32 (%p7000_p10), 48, %s3800_s27  ;;  %s398_s24 = scalar_lea.vmem (%p7000_p10), [#allocation7], %s3799_s17 }
  0xd5   : > { %p401_p5 = scmp.lt.s32.totalorder (%p7000_p10), %s400_s29, 32 }
  0xd9   : > { %s7026_s29 = smov (!%p401_p5, %s400_s29), 32 }
  0xda   : > { %s5478_s18 = sshll.u32 %s7026_s29, 8 }
  0xdb   : > { %s406_s14 = ssub.s32 8192, %s5478_s18 }
  0xdc   : > { %407 = vsyncadd %s5481_s22, %s406_s14  ;;  %p3803_p2 = scmp.ne.s32.totalorder %s5478_s18, 0  ;;  %s3949_s19 = sshll.u32 %s5140_s12, 13 }
  0xdd   : > { %s5489_s16 = scalar_lea.hbm %s6965_s2, %s3949_s19  ;;  %s413_s28 = sshll.u32 %s398_s24, 4  ;;  %s5491_s28 = int_to_ptr.vmem [resolvable:$true] %s413_s28 }
  0xde   : > { %s5034_s3 = scalar_lea.hbm %s5489_s16, %s5478_s18  ;;  %s5038_s25 = scalar_lea.hbm %s6965_s2, 12288 }
  0xdf   : > { %p5035_p6 = scmp.ne.s32.totalorder %s5489_s16, %s5034_s3  ;;  %p5039_p0 = scmp.lt.u32.totalorder %s5489_s16, %s6965_s2 }
  0xe0   : > { %p5040_p12 = scmp.lt.u32.totalorder %s5038_s25, %s5034_s3  ;;  %p5042_p8 = scmp.lt.u32.totalorder %s5034_s3, %s5489_s16 }
  0xe1   : > { %p5036_p11 = pnand %p5035_p6, %p3803_p2 }
  0xe2   : > { %p5041_p7 = por %p5040_p12, %p5039_p0 }
  0xe3   : > { %p5037_p13 = pneg %p5036_p11 }
  0xe4   : > { %p5043_p9 = por %p5042_p8, %p5041_p7 }
  0xe6   : > { %p5044_p1 = pnand %p5043_p9, %p5037_p13 }
  0xe8   : > { %5047 = shalt.err (!%p5044_p1)
}
  0xe9   : > { %s5048_s17 = scalar_lea.vmem %s5491_s28, %s5478_s18  ;;  %s5156_s27 = smov [#allocation7]  }
  0xea   : > { %p5049_p3 = scmp.ne.s32.totalorder %s5491_s28, %s5048_s17  ;;  %s5052_s29 = sshll.u32 %s5156_s27, 4  ;;  %s5053_s29 = int_to_ptr.vmem [resolvable:$false] %s5052_s29 }
  0xeb   : > { %s5054_s14 = scalar_lea.vmem %s5053_s29, 16384  ;;  %p5055_p6 = scmp.lt.s32.totalorder %s5491_s28, %s5053_s29 }
  0xec   : > { %p5050_p10 = pnand %p5049_p3, %p3803_p2  ;;  %p5056_p11 = scmp.lt.s32.totalorder %s5054_s14, %s5048_s17 }
  0xee   : > { %p5051_p5 = pneg %p5050_p10  ;;  %p5057_p0 = por %p5056_p11, %p5055_p6 }
  0xf0   : > { %p5058_p12 = pnand %p5057_p0, %p5051_p5 }
  0xf2   : > { %5061 = shalt.err (!%p5058_p12)
}
  0xf3   : > { %s5157_s24 = smov 256   ;;  %s5158_s19 = smov 16  }
  0xf4   : > { %419 = dma.hbm_to_vmem [thread:$0]  (%p3803_p2), %s5489_s16, %s5478_s18, %s5491_s28, %s5481_s22, %s5157_s24, %s5157_s24, %s5158_s19  }
  0xf5 PF: > { %p7001_p13 = scmp.ne.s32.totalorder %s6994_s23, 0 }
  0xf7   : > { %425 = sbr.rel (%p7001_p13) target bundleno = 1630 (0x65e), region = 56 }
  0xfe   : > { %s5521_s8 = sand.u32 1, %s5132_s10   ;;  %p7002_p7 = scmp.ne.s32.totalorder %s6989_s20, 0 }
  0xff   : > { %s5524_s30 = sshll.u32 %s5521_s8, 9  ;;  %s428_s3 = scalar_lea.sflag [#allocation3], %s5521_s8 }
 0x100   : > { %s5528_s26 = scalar_lea.vmem [#allocation2], %s5524_s30 }
 0x101   : > { %5107 = dma.done.wait (%p7002_p7), %s428_s3, 8192  }
 0x102   : > { %5109 = vsyncadd (%p7002_p7), %s428_s3, 4294959104  ;;  %s436_s23 = sand.u32 1, %s5236_s13   ;;  %s5536_s22 = scalar_lea.vmem [#allocation5], %s5524_s30 }
 0x103   : > { %s437_s18 = scalar_lea.sflag [#allocation6], %s436_s23 }
 0x104   : > { %5111 = dma.done.wait (%p7002_p7), %s437_s18, 16384  }
 0x105   : > { %5113 = vsyncadd (%p7002_p7), %s437_s18, 4294950912  ;;  %s5543_s16 = scalar_lea.vmem [#allocation7], %s5524_s30  ;;  %p7003_p2 = scmp.eq.s32.totalorder %s5236_s13, 0 }
 0x107   : > { %5115 = dma.done.wait (%p7003_p2), [#allocation9], 8192   ;;  %p7004_p8 = pmov %p7003_p2 }
 0x108   : > { %p7005_p9 = pmov %p7003_p2 }
 0x109   : > { %5117 = vsyncadd (%p7004_p8), [#allocation9], 4294959104 }
 0x10a   : > { %5119 = dma.done.wait (%p7005_p9), [#allocation12], 6144   ;;  %p7006_p1 = pmov %p7003_p2 }
 0x10b   : > { %v4386_v0 = vld [vmem:[#allocation8 + $0x4] ss:$8 sps:$4 sm:$0xff]   ;;  %v4388_v1 = vld [vmem:[#allocation8] ss:$8 sps:$4 sm:$0xff]   ;;  %v4389_v2 = vld [vmem:[#allocation8 + $0x14] ss:$8 sps:$4 sm:$0xff]  }
 0x10c   : > { %5121 = vsyncadd (%p7006_p1), [#allocation12], 4294961152  ;;  %1304 = vmatprep.subr.bf16.mxu0 %v4386_v0  ;;  %v4391_v3 = vld [vmem:[#allocation8 + $0x10] ss:$8 sps:$4 sm:$0xff]   ;;  %v4392_v4 = vld [vmem:[#allocation8 + $0x24] ss:$8 sps:$4 sm:$0xff]  }
 0x10d   : > { %1305 = vmatpush1.bf16.msra.mxu0 %v4388_v1  ;;  %v4394_v5 = vld [vmem:[#allocation8 + $0x20] ss:$8 sps:$4 sm:$0xff]   ;;  %v4395_v6 = vld [vmem:[#allocation8 + $0x34] ss:$8 sps:$4 sm:$0xff]   ;;  %v4397_v7 = vld [vmem:[#allocation8 + $0x30] ss:$8 sps:$4 sm:$0xff]  }
 0x10e   : > { %1306 = vmatprep.subr.bf16.mxu0 %v4389_v2  ;;  %v4398_v8 = vld [vmem:[#allocation8 + $0x44] ss:$8 sps:$4 sm:$0xff]   ;;  %v4400_v9 = vld [vmem:[#allocation8 + $0x40] ss:$8 sps:$4 sm:$0xff]   ;;  %v4401_v10 = vld [vmem:[#allocation8 + $0x54] ss:$8 sps:$4 sm:$0xff]  }
 0x10f   : > { %v4403_v11 = vld [vmem:[#allocation8 + $0x50] ss:$8 sps:$4 sm:$0xff]   ;;  %v4404_v12 = vld [vmem:[#allocation8 + $0x64] ss:$8 sps:$4 sm:$0xff]   ;;  %v4406_v16 = vld [vmem:[#allocation8 + $0x60] ss:$8 sps:$4 sm:$0xff]  }
 0x110   : > { %v536_v13 = vld [vmem:[%s5528_s26 + $0x8] sm:$0xff]  ;;  %v538_v14 = vld [vmem:[%s5528_s26 + $0x18] sm:$0xff]  ;;  %v535_v44 = vld [vmem:[%s5528_s26] sm:$0xff]  ;;  %s7009_s9 = sld [smem:[#allocation27_spill]]  ;;  %s6418_s15 = scalar_lea.vmem [#allocation14], %s5524_s30 }
 0x111   : > { %1307 = vmatpush1.bf16.msra.mxu0 %v4391_v3  ;;  %v600_v15 = vpack.c.bf16 %v538_v14, %v536_v13  ;;  %v4407_v17 = vld [vmem:[#allocation8 + $0x74] ss:$8 sps:$4 sm:$0xff]   ;;  %v4409_v18 = vld [vmem:[#allocation8 + $0x70] ss:$8 sps:$4 sm:$0xff]   ;;  %v4410_v19 = vld [vmem:[#allocation8 + $0x84] ss:$8 sps:$4 sm:$0xff]  }
 0x112   : > { %1308 = vmatprep.subr.bf16.mxu0 %v4392_v4  ;;  %v4412_v20 = vld [vmem:[#allocation8 + $0x80] ss:$8 sps:$4 sm:$0xff]   ;;  %v4413_v21 = vld [vmem:[#allocation8 + $0x94] ss:$8 sps:$4 sm:$0xff]   ;;  %v4415_v22 = vld [vmem:[#allocation8 + $0x90] ss:$8 sps:$4 sm:$0xff]  }
 0x113   : > { %1336 = vmatprep.mubr.bf16.mxu0 %v600_v15  ;;  %v4416_v23 = vld [vmem:[#allocation8 + $0xa4] ss:$8 sps:$4 sm:$0xff]   ;;  %v4418_v24 = vld [vmem:[#allocation8 + $0xa0] ss:$8 sps:$4 sm:$0xff]   ;;  %v4419_v25 = vld [vmem:[#allocation8 + $0xb4] ss:$8 sps:$4 sm:$0xff]  }
 0x114   : > { %v4421_v26 = vld [vmem:[#allocation8 + $0xb0] ss:$8 sps:$4 sm:$0xff]   ;;  %v4458_v27 = vld [vmem:[#allocation10 + $0x4] ss:$8 sps:$4 sm:$0xff]   ;;  %v4460_v28 = vld [vmem:[#allocation10] ss:$8 sps:$4 sm:$0xff]  }
 0x115   : > { %1309 = vmatpush1.bf16.msra.mxu0 %v4394_v5  ;;  %v4422_v29 = vld [vmem:[#allocation8 + $0xc4] ss:$8 sps:$4 sm:$0xff]   ;;  %951 = vmatprep.subr.bf16.mxu1 %v4458_v27  ;;  %v4424_v30 = vld [vmem:[#allocation8 + $0xc0] ss:$8 sps:$4 sm:$0xff]   ;;  %v4425_v31 = vld [vmem:[#allocation8 + $0xd4] ss:$8 sps:$4 sm:$0xff]  }
 0x116   : > { %1310 = vmatprep.subr.bf16.mxu0 %v4395_v6  ;;  %952 = vmatpush1.bf16.msra.mxu1 %v4460_v28  ;;  %v4464_v32 = vld [vmem:[#allocation10 + $0x14] ss:$8 sps:$4 sm:$0xff]   ;;  %v4466_v33 = vld [vmem:[#allocation10 + $0x10] ss:$8 sps:$4 sm:$0xff]   ;;  %v4467_v34 = vld [vmem:[#allocation10 + $0x24] ss:$8 sps:$4 sm:$0xff]  }
 0x117   : > { %953 = vmatprep.subr.bf16.mxu1 %v4464_v32  ;;  %v4469_v35 = vld [vmem:[#allocation10 + $0x20] ss:$8 sps:$4 sm:$0xff]   ;;  %v4427_v36 = vld [vmem:[#allocation8 + $0xd0] ss:$8 sps:$4 sm:$0xff]   ;;  %v4428_v37 = vld [vmem:[#allocation8 + $0xe4] ss:$8 sps:$4 sm:$0xff]  }
 0x118   : > { %v4473_v38 = vld [vmem:[#allocation10 + $0x34] ss:$8 sps:$4 sm:$0xff]   ;;  %v4475_v39 = vld [vmem:[#allocation10 + $0x30] ss:$8 sps:$4 sm:$0xff]   ;;  %v4430_v40 = vld [vmem:[#allocation8 + $0xe0] ss:$8 sps:$4 sm:$0xff]  }
 0x119   : > { %1311 = vmatpush1.bf16.msra.mxu0 %v4397_v7  ;;  %v4476_v41 = vld [vmem:[#allocation10 + $0x44] ss:$8 sps:$4 sm:$0xff]   ;;  %v4431_v42 = vld [vmem:[#allocation8 + $0xf4] ss:$8 sps:$4 sm:$0xff]   ;;  %v4433_v43 = vld [vmem:[#allocation8 + $0xf0] ss:$8 sps:$4 sm:$0xff]  }
 0x11a   : > { %1312 = vmatprep.subr.bf16.mxu0 %v4398_v8  ;;  %954 = vmatpush1.bf16.msra.mxu1 %v4466_v33  ;;  %v4478_v45 = vld [vmem:[#allocation10 + $0x40] ss:$8 sps:$4 sm:$0xff]   ;;  %v537_v46 = vld [vmem:[%s5528_s26 + $0x10] sm:$0xff]  ;;  %v4436_v48 = vld [vmem:[#allocation11 + $0x4] ss:$8 sps:$4 sm:$0xff]   ;;  %s3599_s17 = scalar_lea.sflag [#allocation4], %s5521_s8 }
 0x11b   : > { %955 = vmatprep.subr.bf16.mxu1 %v4467_v34  ;;  %v4482_v47 = vld [vmem:[#allocation10 + $0x54] ss:$8 sps:$4 sm:$0xff]   ;;  %v540_v49 = vld [vmem:[%s5528_s26 + $0x28] sm:$0xff]  ;;  %v599_v51 = vpack.c.bf16 %v537_v46, %v535_v44  ;;  %v4484_v52 = vld [vmem:[#allocation10 + $0x50] ss:$8 sps:$4 sm:$0xff]   ;;  %s7010_s27 = sld [smem:[#allocation23_spill]] }
 0x11c   : > { %v542_v50 = vld [vmem:[%s5528_s26 + $0x38] sm:$0xff]  ;;  %v4434_v53 = vld [vmem:[#allocation11] ss:$8 sps:$4 sm:$0xff]   ;;  %v4485_v56 = vld [vmem:[#allocation10 + $0x64] ss:$8 sps:$4 sm:$0xff]  }
 0x11d   : > { %1313 = vmatpush1.bf16.msra.mxu0 %v4400_v9  ;;  %v602_v54 = vpack.c.bf16 %v542_v50, %v540_v49  ;;  %v4439_v55 = vld [vmem:[#allocation11 + $0x14] ss:$8 sps:$4 sm:$0xff]   ;;  %v539_v57 = vld [vmem:[%s5528_s26 + $0x20] sm:$0xff]  ;;  %v4437_v59 = vld [vmem:[#allocation11 + $0x10] ss:$8 sps:$4 sm:$0xff]  }
 0x11e   : > { %1314 = vmatprep.subr.bf16.mxu0 %v4401_v10  ;;  %956 = vmatpush1.bf16.msra.mxu1 %v4469_v35  ;;  %v541_v58 = vld [vmem:[%s5528_s26 + $0x30] sm:$0xff]  ;;  %v544_v60 = vld [vmem:[%s5528_s26 + $0x48] sm:$0xff]  ;;  %v546_v62 = vld [vmem:[%s5528_s26 + $0x58] sm:$0xff] }
 0x11f   : > { %957 = vmatprep.subr.bf16.mxu1 %v4473_v38  ;;  %v4487_v61 = vld [vmem:[#allocation10 + $0x60] ss:$8 sps:$4 sm:$0xff]   ;;  %v4491_v63 = vld [vmem:[#allocation10 + $0x74] ss:$8 sps:$4 sm:$0xff]   ;;  %v4442_v0 = vld [vmem:[#allocation11 + $0x24] ss:$8 sps:$4 sm:$0xff]   ;;  %v601_v1 = vpack.c.bf16 %v541_v58, %v539_v57  ;;  %v604_v3 = vpack.c.bf16 %v546_v62, %v544_v60 }
 0x120   : > { %v4493_v2 = vld [vmem:[#allocation10 + $0x70] ss:$8 sps:$4 sm:$0xff]   ;;  %v4440_v4 = vld [vmem:[#allocation11 + $0x20] ss:$8 sps:$4 sm:$0xff]   ;;  %v4445_v5 = vld [vmem:[#allocation11 + $0x34] ss:$8 sps:$4 sm:$0xff]  }
 0x121   : > { %1315 = vmatpush1.bf16.msra.mxu0 %v4403_v11  ;;  %v4494_v6 = vld [vmem:[#allocation10 + $0x84] ss:$8 sps:$4 sm:$0xff]   ;;  %v545_v8 = vld [vmem:[%s5528_s26 + $0x50] sm:$0xff]  ;;  %v4496_v9 = vld [vmem:[#allocation10 + $0x80] ss:$8 sps:$4 sm:$0xff]   ;;  %p7011_p3 = scmp.ne.s32.totalorder %s7010_s27, 0 }
 0x122   : > { %1316 = vmatprep.subr.bf16.mxu0 %v4404_v12  ;;  %958 = vmatpush1.bf16.msra.mxu1 %v4475_v39  ;;  %v543_v7 = vld [vmem:[%s5528_s26 + $0x40] sm:$0xff]  ;;  %v4443_v10 = vld [vmem:[#allocation11 + $0x30] ss:$8 sps:$4 sm:$0xff]   ;;  %v4500_v11 = vld [vmem:[#allocation10 + $0x94] ss:$8 sps:$4 sm:$0xff]   ;;  %s3931_s29 = sshll.u32 (%p7011_p3), %s5236_s13, 5 }
 0x123   : > { %959 = vmatprep.subr.bf16.mxu1 %v4476_v41  ;;  %v548_v12 = vld [vmem:[%s5528_s26 + $0x68] sm:$0xff]  ;;  %v550_v13 = vld [vmem:[%s5528_s26 + $0x78] sm:$0xff]  ;;  %v603_v15 = vpack.c.bf16 %v545_v8, %v543_v7  ;;  %v551_v38 = vld [vmem:[%s5528_s26 + $0x80] sm:$0xff]  ;;  %s3607_s14 = ssub.s32 (%p7011_p3), 48, %s3931_s29 }
 0x124   : > { %v4448_v14 = vld [vmem:[#allocation11 + $0x44] ss:$8 sps:$4 sm:$0xff]   ;;  %v4509_v27 = vld [vmem:[#allocation10 + $0xb4] ss:$8 sps:$4 sm:$0xff]   ;;  %v4511_v32 = vld [vmem:[#allocation10 + $0xb0] ss:$8 sps:$4 sm:$0xff]  }
 0x125   : > { %1317 = vmatpush1.bf16.msra.mxu0 %v4406_v16  ;;  %v4502_v16 = vld [vmem:[#allocation10 + $0x90] ss:$8 sps:$4 sm:$0xff]   ;;  %v4454_v28 = vld [vmem:[#allocation11 + $0x64] ss:$8 sps:$4 sm:$0xff]   ;;  %v4452_v35 = vld [vmem:[#allocation11 + $0x60] ss:$8 sps:$4 sm:$0xff]  }
 0x126   : > { %1318 = vmatprep.subr.bf16.mxu0 %v4407_v17  ;;  %960 = vmatpush1.bf16.msra.mxu1 %v4478_v45  ;;  %v606_v17 = vpack.c.bf16 %v550_v13, %v548_v12  ;;  %v4514_v39 = vld [vmem:[#allocation10 + $0xc0] ss:$8 sps:$4 sm:$0xff]   ;;  %v4455_v41 = vld [vmem:[#allocation11 + $0x70] ss:$8 sps:$4 sm:$0xff]   ;;  %v4463_v45 = vld [vmem:[#allocation11 + $0x84] ss:$8 sps:$4 sm:$0xff]  }
 0x127   : > { %961 = vmatprep.subr.bf16.mxu1 %v4482_v47  ;;  %v558_v44 = vld [vmem:[%s5528_s26 + $0xb8] sm:$0xff]  ;;  %v4461_v49 = vld [vmem:[#allocation11 + $0x80] ss:$8 sps:$4 sm:$0xff]   ;;  %v4481_v58 = vld [vmem:[#allocation11 + $0xa4] ss:$8 sps:$4 sm:$0xff]   ;;  %p3608_p10 = scmp.lt.s32.totalorder (%p7011_p3), %s3607_s14, 32 }
 0x128   : > { %v4520_v47 = vld [vmem:[#allocation10 + $0xd0] ss:$8 sps:$4 sm:$0xff]   ;;  %v4472_v50 = vld [vmem:[#allocation11 + $0x94] ss:$8 sps:$4 sm:$0xff]   ;;  %v564_v8 = vld [vmem:[%s5528_s26 + $0xe8] sm:$0xff] }
 0x129   : > { %1319 = vmatpush1.bf16.msra.mxu0 %v4409_v18  ;;  %v4446_v18 = vld [vmem:[#allocation11 + $0x40] ss:$8 sps:$4 sm:$0xff]   ;;  %v4470_v57 = vld [vmem:[#allocation11 + $0x90] ss:$8 sps:$4 sm:$0xff]   ;;  %v4499_v12 = vld [vmem:[#allocation11 + $0xc4] ss:$8 sps:$4 sm:$0xff]  }
 0x12a   : > { %1320 = vmatprep.subr.bf16.mxu0 %v4410_v19  ;;  %962 = vmatpush1.bf16.msra.mxu1 %v4484_v52  ;;  %v4451_v19 = vld [vmem:[#allocation11 + $0x54] ss:$8 sps:$4 sm:$0xff]   ;;  %v555_v52 = vld [vmem:[%s5528_s26 + $0xa0] sm:$0xff]  ;;  %v4529_v60 = vld [vmem:[#allocation10 + $0xf0] ss:$8 sps:$4 sm:$0xff]  }
 0x12b   : > { %963 = vmatprep.subr.bf16.mxu1 %v4485_v56  ;;  %v4523_v56 = vld [vmem:[#allocation10 + $0xe0] ss:$8 sps:$4 sm:$0xff]   ;;  %v665_v62 = vld [vmem:[%s5536_s22 + $0x10] sm:$0xff] }
 0x12c   : > { %v561_v7 = vld [vmem:[%s5528_s26 + $0xd0] sm:$0xff]  ;;  %v667_v13 = vld [vmem:[%s5536_s22 + $0x20] sm:$0xff] }
 0x12d   : > { %1321 = vmatpush1.bf16.msra.mxu0 %v4412_v20  ;;  %v4503_v20 = vld [vmem:[#allocation10 + $0xa4] ss:$8 sps:$4 sm:$0xff]  }
 0x12e   : > { %1322 = vmatprep.subr.bf16.mxu0 %v4413_v21  ;;  %964 = vmatpush1.bf16.msra.mxu1 %v4487_v61  ;;  %v547_v21 = vld [vmem:[%s5528_s26 + $0x60] sm:$0xff] }
 0x12f   : > { %965 = vmatprep.subr.bf16.mxu1 %v4491_v63  ;;  %v663_v61 = vld [vmem:[%s5536_s22] sm:$0xff] }
 0x130   : > { %v4479_v63 = vld [vmem:[#allocation11 + $0xa0] ss:$8 sps:$4 sm:$0xff]  }
 0x131   : > { %1323 = vmatpush1.bf16.msra.mxu0 %v4415_v22  ;;  %v549_v22 = vld [vmem:[%s5528_s26 + $0x70] sm:$0xff] }
 0x132   : > { %1324 = vmatprep.subr.bf16.mxu0 %v4416_v23  ;;  %966 = vmatpush1.bf16.msra.mxu1 %v4493_v2  ;;  %v552_v23 = vld [vmem:[%s5528_s26 + $0x88] sm:$0xff] }
 0x133   : > { %967 = vmatprep.subr.bf16.mxu1 %v4494_v6  ;;  %v559_v6 = vld [vmem:[%s5528_s26 + $0xc0] sm:$0xff] }
 0x135   : > { %1325 = vmatpush1.bf16.msra.mxu0 %v4418_v24  ;;  %v554_v24 = vld [vmem:[%s5528_s26 + $0x98] sm:$0xff] }
 0x136   : > { %1326 = vmatprep.subr.bf16.mxu0 %v4419_v25  ;;  %968 = vmatpush1.bf16.msra.mxu1 %v4496_v9  ;;  %v4505_v25 = vld [vmem:[#allocation10 + $0xa0] ss:$8 sps:$4 sm:$0xff]   ;;  %v608_v34 = vpack.c.bf16 %v554_v24, %v552_v23  ;;  %v565_v24 = vld [vmem:[%s5528_s26 + $0xf0] sm:$0xff] }
 0x137   : > { %969 = vmatprep.subr.bf16.mxu1 %v4500_v11  ;;  %v4488_v11 = vld [vmem:[#allocation11 + $0xb0] ss:$8 sps:$4 sm:$0xff]  }
 0x139   : > { %1327 = vmatpush1.bf16.msra.mxu0 %v4421_v26  ;;  %v4449_v26 = vld [vmem:[#allocation11 + $0x50] ss:$8 sps:$4 sm:$0xff]  }
 0x13a   : > { %1328 = vmatprep.subr.bf16.mxu0 %v4422_v29  ;;  %970 = vmatpush1.bf16.msra.mxu1 %v4502_v16  ;;  %v664_v29 = vld [vmem:[%s5536_s22 + $0x8] sm:$0xff] }
 0x13b   : > { %971 = vmatprep.subr.bf16.mxu1 %v4503_v20  ;;  %v672_v16 = vld [vmem:[%s5536_s22 + $0x48] sm:$0xff] }
 0x13d   : > { %1329 = vmatpush1.bf16.msra.mxu0 %v4424_v30  ;;  %v666_v30 = vld [vmem:[%s5536_s22 + $0x18] sm:$0xff] }
 0x13e   : > { %1330 = vmatprep.subr.bf16.mxu0 %v4425_v31  ;;  %v605_v31 = vpack.c.bf16 %v549_v22, %v547_v21  ;;  %972 = vmatpush1.bf16.msra.mxu1 %v4505_v25  ;;  %v728_v33 = vpack.c.bf16 %v666_v30, %v664_v29  ;;  %v563_v22 = vld [vmem:[%s5528_s26 + $0xe0] sm:$0xff]  ;;  %v568_v25 = vld [vmem:[%s5528_s26 + $0x108] sm:$0xff] }
 0x13f   : > { %973 = vmatprep.subr.bf16.mxu1 %v4509_v27  ;;  %v570_v27 = vld [vmem:[%s5528_s26 + $0x118] sm:$0xff]  ;;  %v613_v29 = vpack.c.bf16 %v565_v24, %v563_v22  ;;  %v671_v30 = vld [vmem:[%s5536_s22 + $0x40] sm:$0xff] }
 0x140   : > { %983 = vmatprep.mubr.bf16.mxu1 %v728_v33  ;;  %v4515_v33 = vld [vmem:[#allocation11 + $0xe0] ss:$8 sps:$4 sm:$0xff]  }
 0x141   : > { %1331 = vmatpush1.bf16.msra.mxu0 %v4427_v36  ;;  %v4457_v36 = vld [vmem:[#allocation11 + $0x74] ss:$8 sps:$4 sm:$0xff]   ;;  %v583_v24 = vld [vmem:[%s5528_s26 + $0x180] sm:$0xff] }
 0x142   : > { %1332 = vmatprep.subr.bf16.mxu0 %v4428_v37  ;;  %v4512_v37 = vld [vmem:[#allocation10 + $0xc4] ss:$8 sps:$4 sm:$0xff]   ;;  %974 = vmatpush1.bf16.msra.mxu1 %v4511_v32  ;;  %v616_v32 = vpack.c.bf16 %v570_v27, %v568_v25  ;;  %v585_v25 = vld [vmem:[%s5528_s26 + $0x190] sm:$0xff]  ;;  %v590_v27 = vld [vmem:[%s5528_s26 + $0x1b8] sm:$0xff] }
 0x143   : > { %975 = vmatprep.subr.bf16.mxu1 %v4512_v37 }
 0x145   : > { %1333 = vmatpush1.bf16.msra.mxu0 %v4430_v40  ;;  %v553_v40 = vld [vmem:[%s5528_s26 + $0x90] sm:$0xff] }
 0x146   : > { %1334 = vmatprep.subr.bf16.mxu0 %v4431_v42  ;;  %v4518_v42 = vld [vmem:[#allocation10 + $0xd4] ss:$8 sps:$4 sm:$0xff]   ;;  %v607_v46 = vpack.c.bf16 %v553_v40, %v551_v38  ;;  %976 = vmatpush1.bf16.msra.mxu1 %v4514_v39  ;;  %v567_v39 = vld [vmem:[%s5528_s26 + $0x100] sm:$0xff] }
 0x147   : > { %977 = vmatprep.subr.bf16.mxu1 %v4518_v42  ;;  %v569_v40 = vld [vmem:[%s5528_s26 + $0x110] sm:$0xff]  ;;  %v572_v42 = vld [vmem:[%s5528_s26 + $0x128] sm:$0xff] }
 0x149   : > { %1335 = vmatpush1.bf16.msra.mxu0 %v4433_v43  ;;  %v556_v43 = vld [vmem:[%s5528_s26 + $0xa8] sm:$0xff] }
 0x14a   : > { %1785 = vmatprep.subr.bf16.mxu0 %v4436_v48  ;;  %v610_v48 = vpack.c.bf16 %v558_v44, %v556_v43  ;;  %978 = vmatpush1.bf16.msra.mxu1 %v4520_v47  ;;  %v574_v43 = vld [vmem:[%s5528_s26 + $0x138] sm:$0xff]  ;;  %v615_v44 = vpack.c.bf16 %v569_v40, %v567_v39  ;;  %v589_v39 = vld [vmem:[%s5528_s26 + $0x1b0] sm:$0xff]  ;;  %v592_v40 = vld [vmem:[%s5528_s26 + $0x1c8] sm:$0xff] }
 0x14b   : > { %v618_v47 = vpack.c.bf16 %v574_v43, %v572_v42  ;;  %v695_v43 = vld [vmem:[%s5536_s22 + $0x100] sm:$0xff] }
 0x14c   : > { %1337 = vmatmul.mubr.bf16.vlgmr.msra.gmra.mrb[0].mxu0 %v599_v51  ;;  %v4521_v51 = vld [vmem:[#allocation10 + $0xe4] ss:$8 sps:$4 sm:$0xff]  }
 0x14d   : > { %1786 = vmatpush1.bf16.msra.mxu0 %v4434_v53  ;;  %1346 = vmatprep.mubr.bf16.mxu0 %v602_v54  ;;  %v557_v53 = vld [vmem:[%s5528_s26 + $0xb0] sm:$0xff]  ;;  %v560_v54 = vld [vmem:[%s5528_s26 + $0xc8] sm:$0xff] }
 0x14e   : > { %1787 = vmatprep.subr.bf16.mxu0 %v4439_v55  ;;  %v562_v55 = vld [vmem:[%s5528_s26 + $0xd8] sm:$0xff]  ;;  %979 = vmatprep.subr.bf16.mxu1 %v4521_v51  ;;  %v609_v2 = vpack.c.bf16 %v557_v53, %v555_v52  ;;  %v571_v52 = vld [vmem:[%s5528_s26 + $0x120] sm:$0xff]  ;;  %v573_v53 = vld [vmem:[%s5528_s26 + $0x130] sm:$0xff] }
 0x14f   : > { %980 = vmatpush1.bf16.msra.mxu1 %v4523_v56  ;;  %v617_v56 = vpack.c.bf16 %v573_v53, %v571_v52  ;;  %v596_v52 = vld [vmem:[%s5528_s26 + $0x1e8] sm:$0xff]  ;;  %v598_v53 = vld [vmem:[%s5528_s26 + $0x1f8] sm:$0xff] }
 0x151   : > { %1788 = vmatpush1.bf16.msra.mxu0 %v4437_v59  ;;  %v4527_v59 = vld [vmem:[#allocation10 + $0xf4] ss:$8 sps:$4 sm:$0xff]  }
 0x152   : > { %1789 = vmatprep.subr.bf16.mxu0 %v4442_v0  ;;  %v668_v0 = vld [vmem:[%s5536_s22 + $0x28] sm:$0xff]  ;;  %981 = vmatprep.subr.bf16.mxu1 %v4527_v59 }
 0x153   : > { %982 = vmatpush1.bf16.msra.mxu1 %v4529_v60  ;;  %v684_v60 = vld [vmem:[%s5536_s22 + $0xa8] sm:$0xff] }
 0x154   : > { %1347 = vmatmul.mubr.bf16.gmra.mrb[4].mxu0 %v601_v1  ;;  %v670_v1 = vld [vmem:[%s5536_s22 + $0x38] sm:$0xff] }
 0x155   : > { %1356 = vmatprep.mubr.bf16.mxu0 %v604_v3  ;;  %1790 = vmatpush1.bf16.msra.mxu0 %v4440_v4  ;;  %v4490_v3 = vld [vmem:[#allocation11 + $0xb4] ss:$8 sps:$4 sm:$0xff]   ;;  %v612_v4 = vpack.c.bf16 %v562_v55, %v560_v54  ;;  %v730_v9 = vpack.c.bf16 %v670_v1, %v668_v0  ;;  %v576_v54 = vld [vmem:[%s5528_s26 + $0x148] sm:$0xff]  ;;  %v575_v0 = vld [vmem:[%s5528_s26 + $0x140] sm:$0xff] }
 0x156   : > { %1791 = vmatprep.subr.bf16.mxu0 %v4445_v5  ;;  %v727_v5 = vpack.c.bf16 %v665_v62, %v663_v61  ;;  %v578_v55 = vld [vmem:[%s5528_s26 + $0x158] sm:$0xff]  ;;  %v577_v1 = vld [vmem:[%s5528_s26 + $0x150] sm:$0xff] }
 0x157   : > { %v620_v59 = vpack.c.bf16 %v578_v55, %v576_v54  ;;  %v686_v61 = vld [vmem:[%s5536_s22 + $0xb8] sm:$0xff]  ;;  %v699_v55 = vld [vmem:[%s5536_s22 + $0x120] sm:$0xff] }
 0x158   : > { %984 = vmatmul.mubr.bf16.vlgmr.msra.gmra.mrb[0].mxu1 %v727_v5  ;;  %v683_v5 = vld [vmem:[%s5536_s22 + $0xa0] sm:$0xff] }
 0x159   : > { %1792 = vmatpush1.bf16.msra.mxu0 %v4443_v10  ;;  %v566_v10 = vld [vmem:[%s5528_s26 + $0xf8] sm:$0xff]  ;;  %993 = vmatprep.mubr.bf16.mxu1 %v730_v9 }
 0x15a   : > { %1793 = vmatprep.subr.bf16.mxu0 %v4448_v14  ;;  %v669_v14 = vld [vmem:[%s5536_s22 + $0x30] sm:$0xff]  ;;  %v614_v20 = vpack.c.bf16 %v566_v10, %v564_v8  ;;  %v688_v8 = vld [vmem:[%s5536_s22 + $0xc8] sm:$0xff]  ;;  %v690_v9 = vld [vmem:[%s5536_s22 + $0xd8] sm:$0xff] }
 0x15b   : > { %v729_v21 = vpack.c.bf16 %v669_v14, %v667_v13  ;;  %v581_v13 = vld [vmem:[%s5528_s26 + $0x170] sm:$0xff]  ;;  %v584_v14 = vld [vmem:[%s5528_s26 + $0x188] sm:$0xff] }
 0x15c   : > { %1357 = vmatmul.mubr.bf16.gmra.mrb[8].mxu0 %v603_v15  ;;  %v4497_v15 = vld [vmem:[#allocation11 + $0xc0] ss:$8 sps:$4 sm:$0xff]  }
 0x15d   : > { %1366 = vmatprep.mubr.bf16.mxu0 %v606_v17  ;;  %1794 = vmatpush1.bf16.msra.mxu0 %v4446_v18  ;;  %v674_v17 = vld [vmem:[%s5536_s22 + $0x58] sm:$0xff]  ;;  %v611_v18 = vpack.c.bf16 %v561_v7, %v559_v6  ;;  %v685_v6 = vld [vmem:[%s5536_s22 + $0xb0] sm:$0xff] }
 0x15e   : > { %1795 = vmatprep.subr.bf16.mxu0 %v4451_v19  ;;  %v4508_v19 = vld [vmem:[#allocation11 + $0xd4] ss:$8 sps:$4 sm:$0xff]   ;;  %v732_v23 = vpack.c.bf16 %v674_v17, %v672_v16  ;;  %v737_v10 = vpack.c.bf16 %v685_v6, %v683_v5  ;;  %v687_v17 = vld [vmem:[%s5536_s22 + $0xc0] sm:$0xff] }
 0x15f   : > { %v703_v5 = vld [vmem:[%s5536_s22 + $0x140] sm:$0xff]  ;;  %v705_v6 = vld [vmem:[%s5536_s22 + $0x150] sm:$0xff] }
 0x160   : > { %994 = vmatmul.mubr.bf16.gmra.mrb[4].mxu1 %v729_v21  ;;  %v694_v21 = vld [vmem:[%s5536_s22 + $0xf8] sm:$0xff] }
 0x161   : > { %1796 = vmatpush1.bf16.msra.mxu0 %v4449_v26  ;;  %v4506_v26 = vld [vmem:[#allocation11 + $0xd0] ss:$8 sps:$4 sm:$0xff]   ;;  %1003 = vmatprep.mubr.bf16.mxu1 %v732_v23 }
 0x162   : > { %1797 = vmatprep.subr.bf16.mxu0 %v4454_v28  ;;  %v4517_v28 = vld [vmem:[#allocation11 + $0xe4] ss:$8 sps:$4 sm:$0xff]  }
 0x164   : > { %1367 = vmatmul.mubr.bf16.gmra.mrb[12].mxu0 %v605_v31  ;;  %v673_v31 = vld [vmem:[%s5536_s22 + $0x50] sm:$0xff] }
 0x165   : > { %1376 = vmatprep.mubr.bf16.mxu0 %v608_v34  ;;  %1798 = vmatpush1.bf16.msra.mxu0 %v4452_v35  ;;  %v676_v34 = vld [vmem:[%s5536_s22 + $0x68] sm:$0xff]  ;;  %v678_v35 = vld [vmem:[%s5536_s22 + $0x78] sm:$0xff]  ;;  %v731_v37 = vpack.c.bf16 %v673_v31, %v671_v30  ;;  %v693_v30 = vld [vmem:[%s5536_s22 + $0xf0] sm:$0xff] }
 0x166   : > { %1799 = vmatprep.subr.bf16.mxu0 %v4457_v36  ;;  %v4526_v36 = vld [vmem:[#allocation11 + $0xf4] ss:$8 sps:$4 sm:$0xff]   ;;  %v734_v38 = vpack.c.bf16 %v678_v35, %v676_v34 }
 0x168   : > { %1004 = vmatmul.mubr.bf16.gmra.mrb[8].mxu1 %v731_v37  ;;  %v4531_v37 = vld [vmem:[#allocation13] sm:$0xff]  }
 0x169   : > { %1800 = vmatpush1.bf16.msra.mxu0 %v4455_v41  ;;  %v4524_v41 = vld [vmem:[#allocation11 + $0xf0] ss:$8 sps:$4 sm:$0xff]   ;;  %1013 = vmatprep.mubr.bf16.mxu1 %v734_v38  ;;  %v587_v38 = vld [vmem:[%s5528_s26 + $0x1a0] sm:$0xff] }
 0x16a   : > { %1801 = vmatprep.subr.bf16.mxu0 %v4463_v45  ;;  %v675_v45 = vld [vmem:[%s5536_s22 + $0x60] sm:$0xff]  ;;  %v625_v42 = vpack.c.bf16 %v589_v39, %v587_v38  ;;  %v4541_v38 = vld [vmem:[#allocation13 + $0x28] sm:$0xff]  }
 0x16c   : > { %1377 = vmatmul.mubr.bf16.gmra.mrb[16].mxu0 %v607_v46  ;;  %v677_v46 = vld [vmem:[%s5536_s22 + $0x70] sm:$0xff] }
 0x16d   : > { %1386 = vmatprep.mubr.bf16.mxu0 %v610_v48  ;;  %1802 = vmatpush1.bf16.msra.mxu0 %v4461_v49  ;;  %v680_v48 = vld [vmem:[%s5536_s22 + $0x88] sm:$0xff]  ;;  %v682_v49 = vld [vmem:[%s5536_s22 + $0x98] sm:$0xff] }
 0x16e   : > { %1803 = vmatprep.subr.bf16.mxu0 %v4472_v50  ;;  %v733_v50 = vpack.c.bf16 %v677_v46, %v675_v45  ;;  %v736_v51 = vpack.c.bf16 %v682_v49, %v680_v48  ;;  %v700_v46 = vld [vmem:[%s5536_s22 + $0x128] sm:$0xff] }
 0x170   : > { %1014 = vmatmul.mubr.bf16.gmra.mrb[12].mxu1 %v733_v50  ;;  %v591_v50 = vld [vmem:[%s5528_s26 + $0x1c0] sm:$0xff] }
 0x171   : > { %1804 = vmatpush1.bf16.msra.mxu0 %v4470_v57  ;;  %1023 = vmatprep.mubr.bf16.mxu1 %v736_v51  ;;  %v679_v57 = vld [vmem:[%s5536_s22 + $0x80] sm:$0xff]  ;;  %v593_v51 = vld [vmem:[%s5528_s26 + $0x1d0] sm:$0xff] }
 0x172   : > { %1805 = vmatprep.subr.bf16.mxu0 %v4481_v58  ;;  %v681_v58 = vld [vmem:[%s5536_s22 + $0x90] sm:$0xff]  ;;  %v627_v54 = vpack.c.bf16 %v593_v51, %v591_v50  ;;  %v1512_v50 = vld [vmem:[%s5543_s16 + $0x78] sm:$0xff] }
 0x173   : > { %v735_v62 = vpack.c.bf16 %v681_v58, %v679_v57  ;;  %v630_v57 = vpack.c.bf16 %v598_v53, %v596_v52  ;;  %v704_v58 = vld [vmem:[%s5536_s22 + $0x148] sm:$0xff]  ;;  %v715_v52 = vld [vmem:[%s5536_s22 + $0x1a0] sm:$0xff]  ;;  %v717_v53 = vld [vmem:[%s5536_s22 + $0x1b0] sm:$0xff] }
 0x174   : > { %1387 = vmatmul.mubr.bf16.gmra.mrb[20].mxu0 %v609_v2  ;;  %v580_v2 = vld [vmem:[%s5528_s26 + $0x168] sm:$0xff] }
 0x175   : > { %1396 = vmatprep.mubr.bf16.mxu0 %v612_v4  ;;  %1806 = vmatpush1.bf16.msra.mxu0 %v4479_v63  ;;  %v738_v63 = vpack.c.bf16 %v686_v61, %v684_v60  ;;  %v619_v4 = vpack.c.bf16 %v577_v1, %v575_v0  ;;  %v595_v0 = vld [vmem:[%s5528_s26 + $0x1e0] sm:$0xff]  ;;  %v597_v1 = vld [vmem:[%s5528_s26 + $0x1f0] sm:$0xff] }
 0x176   : > { %1807 = vmatprep.subr.bf16.mxu0 %v4490_v3  ;;  %v582_v3 = vld [vmem:[%s5528_s26 + $0x178] sm:$0xff] }
 0x177   : > { %v622_v7 = vpack.c.bf16 %v582_v3, %v580_v2  ;;  %v1498_v2 = vld [vmem:[%s5543_s16 + $0x8] sm:$0xff]  ;;  %v1500_v3 = vld [vmem:[%s5543_s16 + $0x18] sm:$0xff] }
 0x178   : > { %1024 = vmatmul.mubr.bf16.gmra.mrb[16].mxu1 %v735_v62  ;;  %v4532_v62 = vld [vmem:[#allocation13 + $0x48] sm:$0xff]  }
 0x179   : > { %1808 = vmatpush1.bf16.msra.mxu0 %v4488_v11  ;;  %1033 = vmatprep.mubr.bf16.mxu1 %v738_v63  ;;  %v740_v11 = vpack.c.bf16 %v690_v9, %v688_v8  ;;  %v4533_v63 = vld [vmem:[#allocation13 + $0x8] sm:$0xff]   ;;  %v710_v9 = vld [vmem:[%s5536_s22 + $0x178] sm:$0xff] }
 0x17a   : > { %1809 = vmatprep.subr.bf16.mxu0 %v4499_v12  ;;  %v579_v12 = vld [vmem:[%s5528_s26 + $0x160] sm:$0xff]  ;;  %v708_v8 = vld [vmem:[%s5536_s22 + $0x168] sm:$0xff] }
 0x17b   : > { %v621_v16 = vpack.c.bf16 %v581_v13, %v579_v12  ;;  %v4534_v12 = vld [vmem:[#allocation13 + $0x50] sm:$0xff]  }
 0x17c   : > { %1397 = vmatmul.mubr.bf16.gmra.mrb[24].mxu0 %v611_v18  ;;  %v689_v18 = vld [vmem:[%s5536_s22 + $0xd0] sm:$0xff] }
 0x17d   : > { %1406 = vmatprep.mubr.bf16.mxu0 %v614_v20  ;;  %1810 = vmatpush1.bf16.msra.mxu0 %v4497_v15  ;;  %v586_v15 = vld [vmem:[%s5528_s26 + $0x198] sm:$0xff]  ;;  %v692_v20 = vld [vmem:[%s5536_s22 + $0xe8] sm:$0xff]  ;;  %v739_v22 = vpack.c.bf16 %v689_v18, %v687_v17  ;;  %v4535_v13 = vld [vmem:[#allocation13 + $0x10] sm:$0xff]  }
 0x17e   : > { %1811 = vmatprep.subr.bf16.mxu0 %v4508_v19  ;;  %v624_v19 = vpack.c.bf16 %v586_v15, %v584_v14  ;;  %v742_v23 = vpack.c.bf16 %v694_v21, %v692_v20  ;;  %v1497_v14 = vld [vmem:[%s5543_s16] sm:$0xff]  ;;  %v1499_v15 = vld [vmem:[%s5543_s16 + $0x10] sm:$0xff]  ;;  %v1502_v17 = vld [vmem:[%s5543_s16 + $0x28] sm:$0xff] }
 0x17f   : > { %v1504_v18 = vld [vmem:[%s5543_s16 + $0x38] sm:$0xff]  ;;  %v707_v20 = vld [vmem:[%s5536_s22 + $0x160] sm:$0xff]  ;;  %v709_v21 = vld [vmem:[%s5536_s22 + $0x170] sm:$0xff] }
 0x180   : > { %1034 = vmatmul.mubr.bf16.gmra.mrb[20].mxu1 %v737_v10  ;;  %v747_v10 = vpack.c.bf16 %v705_v6, %v703_v5  ;;  %v726_v5 = vld [vmem:[%s5536_s22 + $0x1f8] sm:$0xff] }
 0x181   : > { %1812 = vmatpush1.bf16.msra.mxu0 %v4506_v26  ;;  %1043 = vmatprep.mubr.bf16.mxu1 %v740_v11  ;;  %v588_v26 = vld [vmem:[%s5528_s26 + $0x1a8] sm:$0xff]  ;;  %v750_v11 = vpack.c.bf16 %v710_v9, %v708_v8  ;;  %v1513_v8 = vld [vmem:[%s5543_s16 + $0x80] sm:$0xff]  ;;  %v1515_v9 = vld [vmem:[%s5543_s16 + $0x90] sm:$0xff] }
 0x182   : > { %1813 = vmatprep.subr.bf16.mxu0 %v4517_v28  ;;  %v623_v28 = vpack.c.bf16 %v585_v25, %v583_v24  ;;  %v626_v31 = vpack.c.bf16 %v590_v27, %v588_v26  ;;  %v712_v24 = vld [vmem:[%s5536_s22 + $0x188] sm:$0xff]  ;;  %v714_v25 = vld [vmem:[%s5536_s22 + $0x198] sm:$0xff]  ;;  %v4538_v26 = vld [vmem:[#allocation13 + $0x60] sm:$0xff]   ;;  %v749_v27 = vpack.c.bf16 %v709_v21, %v707_v20 }
 0x183   : > { %v1524_v20 = vld [vmem:[%s5543_s16 + $0xd8] sm:$0xff] }
 0x184   : > { %1407 = vmatmul.mubr.bf16.gmra.mrb[28].mxu0 %v613_v29  ;;  %v691_v29 = vld [vmem:[%s5536_s22 + $0xe0] sm:$0xff] }
 0x185   : > { %1416 = vmatprep.mubr.bf16.mxu0 %v616_v32  ;;  %1814 = vmatpush1.bf16.msra.mxu0 %v4515_v33  ;;  %v696_v32 = vld [vmem:[%s5536_s22 + $0x108] sm:$0xff]  ;;  %v698_v33 = vld [vmem:[%s5536_s22 + $0x118] sm:$0xff]  ;;  %v741_v34 = vpack.c.bf16 %v693_v30, %v691_v29  ;;  %v4539_v29 = vld [vmem:[#allocation13 + $0x20] sm:$0xff]  }
 0x186   : > { %1815 = vmatprep.subr.bf16.mxu0 %v4526_v36  ;;  %v744_v35 = vpack.c.bf16 %v698_v33, %v696_v32  ;;  %v4530_v36 = vld [vmem:[#allocation13 + $0x40] sm:$0xff]   ;;  %v4540_v32 = vld [vmem:[#allocation13 + $0x68] sm:$0xff]  }
 0x187   : > { %3953 = vmatprep.subr.bf16.mxu1 %v4530_v36  ;;  %v1501_v30 = vld [vmem:[%s5543_s16 + $0x20] sm:$0xff]  ;;  %v1506_v33 = vld [vmem:[%s5543_s16 + $0x48] sm:$0xff] }
 0x188   : > { %1044 = vmatmul.mubr.bf16.gmra.mrb[24].mxu1 %v739_v22  ;;  %v4537_v22 = vld [vmem:[#allocation13 + $0x18] sm:$0xff]   ;;  %v711_v36 = vld [vmem:[%s5536_s22 + $0x180] sm:$0xff] }
 0x189   : > { %1816 = vmatpush1.bf16.msra.mxu0 %v4524_v41  ;;  %1053 = vmatprep.mubr.bf16.mxu1 %v742_v23  ;;  %v594_v41 = vld [vmem:[%s5528_s26 + $0x1d8] sm:$0xff]  ;;  %v1564_v23 = vpack.c.bf16 %v1504_v18, %v1502_v17  ;;  %v1517_v17 = vld [vmem:[%s5543_s16 + $0xa0] sm:$0xff]  ;;  %v1519_v18 = vld [vmem:[%s5543_s16 + $0xb0] sm:$0xff] }
 0x18a   : > { %3954 = vmatpush3.bf16.msra.mxu1 %v4531_v37  ;;  %v628_v45 = vpack.c.bf16 %v594_v41, %v592_v40  ;;  %v713_v37 = vld [vmem:[%s5536_s22 + $0x190] sm:$0xff]  ;;  %v716_v40 = vld [vmem:[%s5536_s22 + $0x1a8] sm:$0xff]  ;;  %v718_v41 = vld [vmem:[%s5536_s22 + $0x1b8] sm:$0xff]  ;;  %v1571_v21 = vpack.c.bf16 %v1519_v18, %v1517_v17 }
 0x18b   : > { %3955 = vmatprep.subr.bf16.mxu1 %v4532_v62  ;;  %v1514_v62 = vld [vmem:[%s5543_s16 + $0x88] sm:$0xff] }
 0x18c   : > { %1417 = vmatmul.mubr.bf16.gmra.mrb[32].mxu0 %v615_v44  ;;  %v697_v44 = vld [vmem:[%s5536_s22 + $0x110] sm:$0xff] }
 0x18d   : > { %1426 = vmatprep.mubr.bf16.mxu0 %v618_v47  ;;  %v702_v47 = vld [vmem:[%s5536_s22 + $0x138] sm:$0xff]  ;;  %v743_v48 = vpack.c.bf16 %v697_v44, %v695_v43  ;;  %v751_v43 = vpack.c.bf16 %v713_v37, %v711_v36  ;;  %v754_v44 = vpack.c.bf16 %v718_v41, %v716_v40  ;;  %v1531_v36 = vld [vmem:[%s5543_s16 + $0x110] sm:$0xff]  ;;  %v1534_v37 = vld [vmem:[%s5543_s16 + $0x128] sm:$0xff] }
 0x18e   : > { %v746_v49 = vpack.c.bf16 %v702_v47, %v700_v46  ;;  %3956 = vmatpush3.bf16.msra.mxu1 %v4533_v63  ;;  %v1505_v46 = vld [vmem:[%s5543_s16 + $0x40] sm:$0xff]  ;;  %v1507_v47 = vld [vmem:[%s5543_s16 + $0x50] sm:$0xff]  ;;  %v1516_v63 = vld [vmem:[%s5543_s16 + $0x98] sm:$0xff] }
 0x18f   : > { %3957 = vmatprep.subr.bf16.mxu1 %v4534_v12  ;;  %v1565_v51 = vpack.c.bf16 %v1507_v47, %v1505_v46  ;;  %v1569_v12 = vpack.c.bf16 %v1515_v9, %v1513_v8  ;;  %v1533_v41 = vld [vmem:[%s5543_s16 + $0x120] sm:$0xff]  ;;  %v1555_v8 = vld [vmem:[%s5543_s16 + $0x1d0] sm:$0xff]  ;;  %v1558_v9 = vld [vmem:[%s5543_s16 + $0x1e8] sm:$0xff] }
 0x190   : > { %1054 = vmatmul.mubr.bf16.gmra.mrb[28].mxu1 %v741_v34  ;;  %v1508_v34 = vld [vmem:[%s5543_s16 + $0x58] sm:$0xff]  ;;  %v1537_v47 = vld [vmem:[%s5543_s16 + $0x140] sm:$0xff] }
 0x191   : > { %1063 = vmatprep.mubr.bf16.mxu1 %v744_v35  ;;  %v1566_v39 = vpack.c.bf16 %v1508_v34, %v1506_v33 }
 0x192   : > { %3958 = vmatpush3.bf16.msra.mxu1 %v4535_v13  ;;  %v723_v13 = vld [vmem:[%s5536_s22 + $0x1e0] sm:$0xff] }
 0x194   : > { %1427 = vmatmul.mubr.bf16.gmra.mrb[36].mxu0 %v617_v56  ;;  %v701_v56 = vld [vmem:[%s5536_s22 + $0x130] sm:$0xff] }
 0x195   : > { %1436 = vmatprep.mubr.bf16.mxu0 %v620_v59  ;;  %v706_v59 = vld [vmem:[%s5536_s22 + $0x158] sm:$0xff]  ;;  %v745_v60 = vpack.c.bf16 %v701_v56, %v699_v55  ;;  %v720_v56 = vld [vmem:[%s5536_s22 + $0x1c8] sm:$0xff] }
 0x196   : > { %v748_v61 = vpack.c.bf16 %v706_v59, %v704_v58  ;;  %v753_v58 = vpack.c.bf16 %v717_v53, %v715_v52  ;;  %v1541_v53 = vld [vmem:[%s5543_s16 + $0x160] sm:$0xff] }
 0x198   : > { %1064 = vmatmul.mubr.bf16.gmra.mrb[32].mxu1 %v743_v48  ;;  %v4544_v48 = vld [vmem:[#allocation13 + $0x78] sm:$0xff]  }
 0x199   : > { %1073 = vmatprep.mubr.bf16.mxu1 %v746_v49  ;;  %v1510_v49 = vld [vmem:[%s5543_s16 + $0x68] sm:$0xff] }
 0x19a   : > { %v1568_v55 = vpack.c.bf16 %v1512_v50, %v1510_v49  ;;  %v1542_v49 = vld [vmem:[%s5543_s16 + $0x168] sm:$0xff]  ;;  %v1544_v50 = vld [vmem:[%s5543_s16 + $0x178] sm:$0xff] }
 0x19b   : > { %v1584_v52 = vpack.c.bf16 %v1544_v50, %v1542_v49 }
 0x19c   : > { %1437 = vmatmul.mubr.bf16.gmra.mrb[40].mxu0 %v619_v4  ;;  %v629_v4 = vpack.c.bf16 %v597_v1, %v595_v0  ;;  %v719_v1 = vld [vmem:[%s5536_s22 + $0x1c0] sm:$0xff] }
 0x19d   : > { %1446 = vmatprep.mubr.bf16.mxu0 %v622_v7  ;;  %v1562_v7 = vpack.c.bf16 %v1500_v3, %v1498_v2  ;;  %v721_v2 = vld [vmem:[%s5536_s22 + $0x1d0] sm:$0xff]  ;;  %v1570_v3 = vpack.c.bf16 %v1516_v63, %v1514_v62  ;;  %v1552_v62 = vld [vmem:[%s5543_s16 + $0x1b8] sm:$0xff] }
 0x19e   : > { %v755_v6 = vpack.c.bf16 %v721_v2, %v719_v1  ;;  %v1549_v1 = vld [vmem:[%s5543_s16 + $0x1a0] sm:$0xff]  ;;  %v1551_v2 = vld [vmem:[%s5543_s16 + $0x1b0] sm:$0xff] }
 0x1a0   : > { %1074 = vmatmul.mubr.bf16.gmra.mrb[36].mxu1 %v745_v60  ;;  %v1509_v60 = vld [vmem:[%s5543_s16 + $0x60] sm:$0xff] }
 0x1a1   : > { %1083 = vmatprep.mubr.bf16.mxu1 %v748_v61  ;;  %v1511_v61 = vld [vmem:[%s5543_s16 + $0x70] sm:$0xff] }
 0x1a2   : > { %v1567_v0 = vpack.c.bf16 %v1511_v61, %v1509_v60  ;;  %v1547_v60 = vld [vmem:[%s5543_s16 + $0x190] sm:$0xff]  ;;  %v1550_v61 = vld [vmem:[%s5543_s16 + $0x1a8] sm:$0xff] }
 0x1a4   : > { %1447 = vmatmul.mubr.bf16.gmra.mrb[44].mxu0 %v621_v16  ;;  %v4536_v16 = vld [vmem:[#allocation13 + $0x58] sm:$0xff]  }
 0x1a5   : > { %1456 = vmatprep.mubr.bf16.mxu0 %v624_v19  ;;  %v1561_v19 = vpack.c.bf16 %v1499_v15, %v1497_v14  ;;  %3959 = vmatprep.subr.bf16.mxu1 %v4536_v16  ;;  %v725_v14 = vld [vmem:[%s5536_s22 + $0x1f0] sm:$0xff] }
 0x1a6   : > { %3960 = vmatpush3.bf16.msra.mxu1 %v4537_v22  ;;  %v757_v16 = vpack.c.bf16 %v725_v14, %v723_v13  ;;  %v1557_v13 = vld [vmem:[%s5543_s16 + $0x1e0] sm:$0xff]  ;;  %v1559_v14 = vld [vmem:[%s5543_s16 + $0x1f0] sm:$0xff] }
 0x1a7   : > { %3961 = vmatprep.subr.bf16.mxu1 %v4538_v26  ;;  %v1528_v26 = vld [vmem:[%s5543_s16 + $0xf8] sm:$0xff] }
 0x1a8   : > { %1084 = vmatmul.mubr.bf16.gmra.mrb[40].mxu1 %v747_v10  ;;  %v1518_v10 = vld [vmem:[%s5543_s16 + $0xa8] sm:$0xff] }
 0x1a9   : > { %1093 = vmatprep.mubr.bf16.mxu1 %v750_v11  ;;  %v1520_v11 = vld [vmem:[%s5543_s16 + $0xb8] sm:$0xff] }
 0x1aa   : > { %3962 = vmatpush3.bf16.msra.mxu1 %v4539_v29  ;;  %v1572_v15 = vpack.c.bf16 %v1520_v11, %v1518_v10  ;;  %v1525_v29 = vld [vmem:[%s5543_s16 + $0xe0] sm:$0xff]  ;;  %v1560_v10 = vld [vmem:[%s5543_s16 + $0x1f8] sm:$0xff] }
 0x1ab   : > { %3963 = vmatprep.subr.bf16.mxu1 %v4540_v32  ;;  %v1532_v32 = vld [vmem:[%s5543_s16 + $0x118] sm:$0xff] }
 0x1ac   : > { %1457 = vmatmul.mubr.bf16.gmra.mrb[48].mxu0 %v623_v28  ;;  %v752_v28 = vpack.c.bf16 %v714_v25, %v712_v24  ;;  %v1523_v24 = vld [vmem:[%s5543_s16 + $0xd0] sm:$0xff]  ;;  %v1526_v25 = vld [vmem:[%s5543_s16 + $0xe8] sm:$0xff] }
 0x1ad   : > { %1466 = vmatprep.mubr.bf16.mxu0 %v626_v31  ;;  %v1503_v31 = vld [vmem:[%s5543_s16 + $0x30] sm:$0xff] }
 0x1ae   : > { %v1563_v35 = vpack.c.bf16 %v1503_v31, %v1501_v30  ;;  %3964 = vmatpush3.bf16.msra.mxu1 %v4541_v38  ;;  %v1527_v30 = vld [vmem:[%s5543_s16 + $0xf0] sm:$0xff]  ;;  %v1530_v31 = vld [vmem:[%s5543_s16 + $0x108] sm:$0xff]  ;;  %v1536_v38 = vld [vmem:[%s5543_s16 + $0x138] sm:$0xff] }
 0x1af   : > { %v1575_v33 = vpack.c.bf16 %v1527_v30, %v1525_v29  ;;  %v1578_v34 = vpack.c.bf16 %v1532_v32, %v1530_v31  ;;  %v1580_v40 = vpack.c.bf16 %v1536_v38, %v1534_v37 }
 0x1b0   : > { %1094 = vmatmul.mubr.bf16.gmra.mrb[44].mxu1 %v749_v27 }
 0x1b1   : > { %1103 = vmatprep.mubr.bf16.mxu1 %v752_v28  ;;  %v1576_v28 = vpack.c.bf16 %v1528_v26, %v1526_v25 }
 0x1b4   : > { %1467 = vmatmul.mubr.bf16.gmra.mrb[52].mxu0 %v625_v42  ;;  %v4542_v42 = vld [vmem:[#allocation13 + $0x70] sm:$0xff]  }
 0x1b5   : > { %1476 = vmatprep.mubr.bf16.mxu0 %v628_v45  ;;  %v4543_v45 = vld [vmem:[#allocation13 + $0x30] sm:$0xff]   ;;  %3965 = vmatprep.subr.bf16.mxu1 %v4542_v42 }
 0x1b6   : > { %3966 = vmatpush3.bf16.msra.mxu1 %v4543_v45  ;;  %v1535_v42 = vld [vmem:[%s5543_s16 + $0x130] sm:$0xff] }
 0x1b7   : > { %3967 = vmatprep.subr.bf16.mxu1 %v4544_v48  ;;  %v1579_v45 = vpack.c.bf16 %v1535_v42, %v1533_v41  ;;  %v1539_v48 = vld [vmem:[%s5543_s16 + $0x150] sm:$0xff] }
 0x1b8   : > { %1104 = vmatmul.mubr.bf16.gmra.mrb[48].mxu1 %v751_v43  ;;  %v1538_v43 = vld [vmem:[%s5543_s16 + $0x148] sm:$0xff] }
 0x1b9   : > { %1113 = vmatprep.mubr.bf16.mxu1 %v754_v44  ;;  %v1540_v44 = vld [vmem:[%s5543_s16 + $0x158] sm:$0xff] }
 0x1ba   : > { %v1582_v46 = vpack.c.bf16 %v1540_v44, %v1538_v43 }
 0x1bc   : > { %1477 = vmatmul.mubr.bf16.gmra.mrb[56].mxu0 %v627_v54  ;;  %v4545_v54 = vld [vmem:[#allocation13 + $0x38] sm:$0xff]  }
 0x1bd   : > { %1486 = vmatprep.mubr.bf16.mxu0 %v630_v57  ;;  %v722_v57 = vld [vmem:[%s5536_s22 + $0x1d8] sm:$0xff]  ;;  %3968 = vmatpush3.bf16.msra.mxu1 %v4545_v54  ;;  %v1543_v54 = vld [vmem:[%s5543_s16 + $0x170] sm:$0xff] }
 0x1be   : > { %v756_v59 = vpack.c.bf16 %v722_v57, %v720_v56  ;;  %v1548_v56 = vld [vmem:[%s5543_s16 + $0x198] sm:$0xff]  ;;  %v1583_v57 = vpack.c.bf16 %v1543_v54, %v1541_v53 }
 0x1c0   : > { %1114 = vmatmul.mubr.bf16.gmra.mrb[52].mxu1 %v753_v58 }
 0x1c1   : > { %1123 = vmatprep.mubr.bf16.mxu1 %v756_v59  ;;  %v1545_v59 = vld [vmem:[%s5543_s16 + $0x180] sm:$0xff] }
 0x1c2   : > { %v1585_v63 = vpack.c.bf16 %v1547_v60, %v1545_v59  ;;  %v2042_v60 = vld [vmem:[%s6969_s6] sm:$0x3] }
 0x1c4   : > { %1487 = vmatmul.mubr.bf16.gmra.mrb[60].mxu0 %v629_v4  ;;  %v724_v4 = vld [vmem:[%s5536_s22 + $0x1e8] sm:$0xff] }
 0x1c5   : > { %1817 = vmatprep.mubr.bf16.mxu0 %v1562_v7  ;;  %v758_v7 = vpack.c.bf16 %v726_v5, %v724_v4  ;;  %v1556_v4 = vld [vmem:[%s5543_s16 + $0x1d8] sm:$0xff]  ;;  %v1587_v5 = vpack.c.bf16 %v1551_v2, %v1549_v1 }
 0x1c8   : > { %1124 = vmatmul.mubr.bf16.gmra.mrb[56].mxu1 %v755_v6 }
 0x1c9   : > { %1133 = vmatprep.mubr.bf16.mxu1 %v758_v7  ;;  %v1553_v7 = vld [vmem:[%s5543_s16 + $0x1c0] sm:$0xff] }
 0x1ca   : > { %v1589_v11 = vpack.c.bf16 %v1555_v8, %v1553_v7 }
 0x1cc   : > { %1818 = vmatmul.mubr.bf16.vlgmr.msra.gmra.mrb[0].mxu0 %v1561_v19  ;;  %v1522_v19 = vld [vmem:[%s5543_s16 + $0xc8] sm:$0xff] }
 0x1cd   : > { %1827 = vmatprep.mubr.bf16.mxu0 %v1564_v23  ;;  %v1574_v22 = vpack.c.bf16 %v1524_v20, %v1522_v19  ;;  %v1521_v23 = vld [vmem:[%s5543_s16 + $0xc0] sm:$0xff] }
 0x1ce   : > { %v1573_v27 = vpack.c.bf16 %v1523_v24, %v1521_v23 }
 0x1d0   : > { %1134 = vmatmul.mubr.bf16.gmra.mrb[60].mxu1 %v757_v16 }
 0x1d4   : > { %1828 = vmatmul.mubr.bf16.gmra.mrb[4].mxu0 %v1563_v35  ;;  %v1529_v35 = vld [vmem:[%s5543_s16 + $0x100] sm:$0xff] }
 0x1d5   : > { %1837 = vmatprep.mubr.bf16.mxu0 %v1566_v39  ;;  %v1577_v39 = vpack.c.bf16 %v1531_v36, %v1529_v35 }
 0x1dc   : > { %1838 = vmatmul.mubr.bf16.gmra.mrb[8].mxu0 %v1565_v51  ;;  %v1581_v51 = vpack.c.bf16 %v1539_v48, %v1537_v47 }
 0x1dd   : > { %1847 = vmatprep.mubr.bf16.mxu0 %v1568_v55  ;;  %v1546_v55 = vld [vmem:[%s5543_s16 + $0x188] sm:$0xff] }
 0x1de   : > { %v1586_v58 = vpack.c.bf16 %v1548_v56, %v1546_v55 }
 0x1e4   : > { %1848 = vmatmul.mubr.bf16.gmra.mrb[12].mxu0 %v1567_v0  ;;  %v1588_v0 = vpack.c.bf16 %v1552_v62, %v1550_v61 }
 0x1e5   : > { %1857 = vmatprep.mubr.bf16.mxu0 %v1570_v3  ;;  %v1554_v3 = vld [vmem:[%s5543_s16 + $0x1c8] sm:$0xff] }
 0x1e6   : > { %v1590_v6 = vpack.c.bf16 %v1556_v4, %v1554_v3 }
 0x1ec   : > { %1858 = vmatmul.mubr.bf16.gmra.mrb[16].mxu0 %v1569_v12  ;;  %v1592_v12 = vpack.c.bf16 %v1560_v10, %v1558_v9 }
 0x1ed   : > { %1867 = vmatprep.mubr.bf16.mxu0 %v1572_v15  ;;  %v1591_v15 = vpack.c.bf16 %v1559_v14, %v1557_v13 }
 0x1f4   : > { %1868 = vmatmul.mubr.bf16.gmra.mrb[20].mxu0 %v1571_v21 }
 0x1f5   : > { %1877 = vmatprep.mubr.bf16.mxu0 %v1574_v22 }
 0x1fc   : > { %1878 = vmatmul.mubr.bf16.gmra.mrb[24].mxu0 %v1573_v27 }
 0x1fd   : > { %1887 = vmatprep.mubr.bf16.mxu0 %v1576_v28 }
 0x204   : > { %1888 = vmatmul.mubr.bf16.gmra.mrb[28].mxu0 %v1575_v33 }
 0x205   : > { %1897 = vmatprep.mubr.bf16.mxu0 %v1578_v34 }
 0x20c   : > { %1898 = vmatmul.mubr.bf16.gmra.mrb[32].mxu0 %v1577_v39 }
 0x20d   : > { %1907 = vmatprep.mubr.bf16.mxu0 %v1580_v40 }
 0x214   : > { %1908 = vmatmul.mubr.bf16.gmra.mrb[36].mxu0 %v1579_v45 }
 0x215   : > { %1917 = vmatprep.mubr.bf16.mxu0 %v1582_v46 }
 0x21c   : > { %1918 = vmatmul.mubr.bf16.gmra.mrb[40].mxu0 %v1581_v51 }
 0x21d   : > { %1927 = vmatprep.mubr.bf16.mxu0 %v1584_v52  ;;  %v2044_v52 = vlaneseq }
 0x224   : > { %1928 = vmatmul.mubr.bf16.gmra.mrb[44].mxu0 %v1583_v57  ;;  %v2045_v57 = vshrl.u32 %v2044_v52, 7 }
 0x225   : > { %1937 = vmatprep.mubr.bf16.mxu0 %v1586_v58 }
 0x226   : > { %v2046_v58 = vsub.s32 0, %v2045_v57  ;;  %v2050_v61 = vsub.s32 1, %v2045_v57 }
 0x228   : > { %v5828_v1 = vrot.slane %v2042_v60, %v2046_v58  ;;  %v5830_v3 = vrot.slane %v2042_v60, %v2050_v61 }
 0x22b   : > { %v985_v16 = vpop.f32.mrb[0].mxu1 }
 0x22c   : > { %1938 = vmatmul.mubr.bf16.gmra.mrb[48].mxu0 %v1585_v63  ;;  %v987_v17 = vpop.f32.mrb[1].mxu1 }
 0x22d   : > { %1947 = vmatprep.mubr.bf16.mxu0 %v1588_v0  ;;  %v989_v18 = vpop.f32.mrb[2].mxu1 }
 0x22e   : > { %v991_v19 = vpop.f32.mrb[3].mxu1 }
 0x233   : > { %v5745_v20 = vpop.f32.mrb[4].mxu1 }
 0x234   : > { %1948 = vmatmul.mubr.bf16.gmra.mrb[52].mxu0 %v1587_v5  ;;  %v5747_v21 = vpop.f32.mrb[5].mxu1 }
 0x235   : > { %1957 = vmatprep.mubr.bf16.mxu0 %v1590_v6  ;;  %v5749_v22 = vpop.f32.mrb[6].mxu1 }
 0x236   : > { %v5751_v23 = vpop.f32.mrb[7].mxu1 }
 0x23b   : > { %v5753_v24 = vpop.f32.mrb[8].mxu1 }
 0x23c   : > { %1958 = vmatmul.mubr.bf16.gmra.mrb[56].mxu0 %v1589_v11  ;;  %v5755_v25 = vpop.f32.mrb[9].mxu1 }
 0x23d   : > { %1967 = vmatprep.mubr.bf16.mxu0 %v1592_v12  ;;  %v5757_v26 = vpop.f32.mrb[10].mxu1 }
 0x23e   : > { %v5759_v27 = vpop.f32.mrb[11].mxu1 }
 0x243   : > { %v5761_v28 = vpop.f32.mrb[12].mxu1 }
 0x244   : > { %1968 = vmatmul.mubr.bf16.gmra.mrb[60].mxu0 %v1591_v15  ;;  %v5763_v29 = vpop.f32.mrb[13].mxu1 }
 0x245   : > { %v5765_v30 = vpop.f32.mrb[14].mxu1 }
 0x246   : > { %v5767_v31 = vpop.f32.mrb[15].mxu1 }
 0x24b   : > { %v5769_v32 = vpop.f32.mrb[16].mxu1 }
 0x24c   : > { %v5771_v33 = vpop.f32.mrb[17].mxu1 }
 0x24d   : > { %v5773_v34 = vpop.f32.mrb[18].mxu1 }
 0x24e   : > { %v5775_v35 = vpop.f32.mrb[19].mxu1 }
 0x253   : > { %v5777_v36 = vpop.f32.mrb[20].mxu1 }
 0x254   : > { %v5779_v37 = vpop.f32.mrb[21].mxu1 }
 0x255   : > { %v5781_v38 = vpop.f32.mrb[22].mxu1 }
 0x256   : > { %v5783_v39 = vpop.f32.mrb[23].mxu1 }
 0x25b   : > { %v5785_v40 = vpop.f32.mrb[24].mxu1 }
 0x25c   : > { %v5787_v41 = vpop.f32.mrb[25].mxu1 }
 0x25d   : > { %v5789_v42 = vpop.f32.mrb[26].mxu1 }
 0x25e   : > { %v5791_v43 = vpop.f32.mrb[27].mxu1 }
 0x263   : > { %v5793_v44 = vpop.f32.mrb[28].mxu1 }
 0x264   : > { %v5795_v45 = vpop.f32.mrb[29].mxu1 }
 0x265   : > { %v5797_v46 = vpop.f32.mrb[30].mxu1 }
 0x266   : > { %v5799_v47 = vpop.f32.mrb[31].mxu1 }
 0x26b   : > { %v5801_v48 = vpop.f32.mrb[32].mxu1 }
 0x26c   : > { %v5803_v49 = vpop.f32.mrb[33].mxu1 }
 0x26d   : > { %v5805_v50 = vpop.f32.mrb[34].mxu1 }
 0x26e   : > { %v5807_v51 = vpop.f32.mrb[35].mxu1 }
 0x273   : > { %v5809_v53 = vpop.f32.mrb[36].mxu1 }
 0x274   : > { %v5811_v54 = vpop.f32.mrb[37].mxu1 }
 0x275   : > { %v5813_v55 = vpop.f32.mrb[38].mxu1 }
 0x276   : > { %v5815_v56 = vpop.f32.mrb[39].mxu1 }
 0x27b   : > { %v5817_v59 = vpop.f32.mrb[40].mxu1 }
 0x27c   : > { %v5822_v62 = vpop.f32.mrb[41].mxu1 }
 0x27d   : > { %v5824_v63 = vpop.f32.mrb[42].mxu1 }
 0x27e   : > { %v5826_v0 = vpop.f32.mrb[43].mxu1 }
 0x283   : > { %v5833_v11 = vpop.f32.mrb[44].mxu1 }
 0x284   : > { %v5836_v14 = vpop.f32.mrb[45].mxu1 }
 0x285   : > { %v5839_v52 = vpop.f32.mrb[46].mxu1 }
 0x286   : > { %7007 = vst [vmem:[#allocation25_spill] sm:$0xff] %v5839_v52  ;;  %v5842_v57 = vpop.f32.mrb[47].mxu1 }
 0x28b   : > { %v5848_v52 = vpop.f32.mrb[48].mxu1 }
 0x29f   : > { %v1819_v2 = vpop.f32.mrb[0].mxu0 }
 0x2a0   : > { %v4065_v4 = vadd.f32 %v1819_v2, %v985_v16  ;;  %v1821_v5 = vpop.f32.mrb[1].mxu0 }
 0x2a1   : > { %v4066_v6 = vadd.f32 %v1821_v5, %v987_v17  ;;  %v1823_v7 = vpop.f32.mrb[2].mxu0 }
 0x2a2   : > { %v2054_v8 = vadd.f32 %v4065_v4, %v5828_v1  ;;  %v4067_v9 = vadd.f32 %v1823_v7, %v989_v18  ;;  %v1825_v10 = vpop.f32.mrb[3].mxu0 }
 0x2a3   : > { %v2055_v12 = vadd.f32 %v4066_v6, %v5830_v3  ;;  %v4068_v13 = vadd.f32 %v1825_v10, %v991_v19 }
 0x2a4   : > { %v2056_v15 = vadd.f32 %v4067_v9, %v5828_v1  ;;  %v2118_v17 = vmax.f32 %v2054_v8, 0.0 }
 0x2a5   : > { %v2057_v16 = vadd.f32 %v4068_v13, %v5830_v3  ;;  %v2119_v60 = vmax.f32 %v2055_v12, 0.0 }
 0x2a6   : > { %v2120_v58 = vmax.f32 %v2056_v15, 0.0  ;;  %v5852_v15 = vpop.f32.mrb[49].mxu1 }
 0x2a7   : > { %v2121_v18 = vmax.f32 %v2057_v16, 0.0  ;;  %v1829_v61 = vpop.f32.mrb[4].mxu0 }
 0x2a8   : > { %v2182_v2 = vpack.c.bf16 %v2120_v58, %v2118_v17  ;;  %v4069_v4 = vadd.f32 %v1829_v61, %v5745_v20  ;;  %v1831_v5 = vpop.f32.mrb[5].mxu0 }
 0x2a9   : > { %v4070_v19 = vadd.f32 %v1831_v5, %v5747_v21  ;;  %v1833_v6 = vpop.f32.mrb[6].mxu0  ;;  %v2183_v7 = vpack.c.bf16 %v2121_v18, %v2119_v60  ;;  %v5855_v21 = vpop.f32.mrb[50].mxu1 }
 0x2aa   : > { %v2058_v9 = vadd.f32 %v4069_v4, %v5828_v1  ;;  %v4071_v10 = vadd.f32 %v1833_v6, %v5749_v22  ;;  %v1835_v13 = vpop.f32.mrb[7].mxu0  ;;  %v5858_v17 = vpop.f32.mrb[51].mxu1 }
 0x2ab   : > { %v2059_v8 = vadd.f32 %v4070_v19, %v5830_v3  ;;  %v4072_v12 = vadd.f32 %v1835_v13, %v5751_v23  ;;  %2381 = vmatprep.mubr.bf16.mxu1 %v2183_v7 }
 0x2ac   : > { %v2060_v20 = vadd.f32 %v4071_v10, %v5828_v1  ;;  %2382 = vmatmul.mubr.bf16.vlgmr.msra.gmra.mrb[64].mxu1 %v2182_v2  ;;  %v2122_v22 = vmax.f32 %v2058_v9, 0.0 }
 0x2ad   : > { %v2061_v16 = vadd.f32 %v4072_v12, %v5830_v3  ;;  %v2123_v60 = vmax.f32 %v2059_v8, 0.0  ;;  %v5864_v12 = vpop.f32.mrb[52].mxu1 }
 0x2ae   : > { %v2124_v58 = vmax.f32 %v2060_v20, 0.0  ;;  %v5868_v20 = vpop.f32.mrb[53].mxu1 }
 0x2af   : > { %v2125_v18 = vmax.f32 %v2061_v16, 0.0  ;;  %v1839_v61 = vpop.f32.mrb[8].mxu0 }
 0x2b0   : > { %v4073_v4 = vadd.f32 %v1839_v61, %v5753_v24  ;;  %v1841_v23 = vpop.f32.mrb[9].mxu0  ;;  %v2184_v5 = vpack.c.bf16 %v2124_v58, %v2122_v22 }
 0x2b1   : > { %v4074_v19 = vadd.f32 %v1841_v23, %v5755_v25  ;;  %v1843_v6 = vpop.f32.mrb[10].mxu0  ;;  %v2185_v7 = vpack.c.bf16 %v2125_v18, %v2123_v60  ;;  %v5871_v25 = vpop.f32.mrb[54].mxu1 }
 0x2b2   : > { %v2062_v2 = vadd.f32 %v4073_v4, %v5828_v1  ;;  %v4075_v10 = vadd.f32 %v1843_v6, %v5757_v26  ;;  %v1845_v13 = vpop.f32.mrb[11].mxu0  ;;  %v5874_v22 = vpop.f32.mrb[55].mxu1 }
 0x2b3   : > { %v2063_v9 = vadd.f32 %v4074_v19, %v5830_v3  ;;  %v4076_v8 = vadd.f32 %v1845_v13, %v5759_v27  ;;  %2389 = vmatprep.mubr.bf16.mxu1 %v2185_v7 }
 0x2b4   : > { %v2064_v24 = vadd.f32 %v4075_v10, %v5828_v1  ;;  %2390 = vmatmul.mubr.bf16.gmra.mrb[68].mxu1 %v2184_v5  ;;  %v2126_v26 = vmax.f32 %v2062_v2, 0.0 }
 0x2b5   : > { %v2065_v16 = vadd.f32 %v4076_v8, %v5830_v3  ;;  %v2127_v60 = vmax.f32 %v2063_v9, 0.0  ;;  %v5880_v8 = vpop.f32.mrb[56].mxu1 }
 0x2b6   : > { %v2128_v58 = vmax.f32 %v2064_v24, 0.0  ;;  %v5884_v24 = vpop.f32.mrb[57].mxu1 }
 0x2b7   : > { %v2129_v18 = vmax.f32 %v2065_v16, 0.0  ;;  %v1849_v61 = vpop.f32.mrb[12].mxu0 }
 0x2b8   : > { %v4077_v4 = vadd.f32 %v1849_v61, %v5761_v28  ;;  %v1851_v27 = vpop.f32.mrb[13].mxu0  ;;  %v2186_v23 = vpack.c.bf16 %v2128_v58, %v2126_v26 }
 0x2b9   : > { %v4078_v19 = vadd.f32 %v1851_v27, %v5763_v29  ;;  %v1853_v6 = vpop.f32.mrb[14].mxu0  ;;  %v2187_v7 = vpack.c.bf16 %v2129_v18, %v2127_v60  ;;  %v5887_v29 = vpop.f32.mrb[58].mxu1 }
 0x2ba   : > { %v2066_v5 = vadd.f32 %v4077_v4, %v5828_v1  ;;  %v4079_v10 = vadd.f32 %v1853_v6, %v5765_v30  ;;  %v1855_v13 = vpop.f32.mrb[15].mxu0  ;;  %v5890_v26 = vpop.f32.mrb[59].mxu1 }
 0x2bb   : > { %v2067_v2 = vadd.f32 %v4078_v19, %v5830_v3  ;;  %v4080_v9 = vadd.f32 %v1855_v13, %v5767_v31  ;;  %2397 = vmatprep.mubr.bf16.mxu1 %v2187_v7 }
 0x2bc   : > { %v2068_v28 = vadd.f32 %v4079_v10, %v5828_v1  ;;  %2398 = vmatmul.mubr.bf16.gmra.mrb[72].mxu1 %v2186_v23  ;;  %v2130_v30 = vmax.f32 %v2066_v5, 0.0 }
 0x2bd   : > { %v2069_v16 = vadd.f32 %v4080_v9, %v5830_v3  ;;  %v2131_v60 = vmax.f32 %v2067_v2, 0.0  ;;  %v5896_v9 = vpop.f32.mrb[60].mxu1 }
 0x2be   : > { %v2132_v58 = vmax.f32 %v2068_v28, 0.0  ;;  %v5900_v28 = vpop.f32.mrb[61].mxu1 }
 0x2bf   : > { %v2133_v18 = vmax.f32 %v2069_v16, 0.0  ;;  %v1859_v61 = vpop.f32.mrb[16].mxu0 }
 0x2c0   : > { %v4081_v4 = vadd.f32 %v1859_v61, %v5769_v32  ;;  %v1861_v31 = vpop.f32.mrb[17].mxu0  ;;  %v2188_v27 = vpack.c.bf16 %v2132_v58, %v2130_v30 }
 0x2c1   : > { %v4082_v19 = vadd.f32 %v1861_v31, %v5771_v33  ;;  %v1863_v6 = vpop.f32.mrb[18].mxu0  ;;  %v2189_v7 = vpack.c.bf16 %v2133_v18, %v2131_v60  ;;  %v5903_v33 = vpop.f32.mrb[62].mxu1 }
 0x2c2   : > { %v2070_v23 = vadd.f32 %v4081_v4, %v5828_v1  ;;  %v4083_v10 = vadd.f32 %v1863_v6, %v5773_v34  ;;  %v1865_v13 = vpop.f32.mrb[19].mxu0  ;;  %v5906_v30 = vpop.f32.mrb[63].mxu1 }
 0x2c3   : > { %v2071_v5 = vadd.f32 %v4082_v19, %v5830_v3  ;;  %v4084_v2 = vadd.f32 %v1865_v13, %v5775_v35  ;;  %2405 = vmatprep.mubr.bf16.mxu1 %v2189_v7 }
 0x2c4   : > { %v2072_v32 = vadd.f32 %v4083_v10, %v5828_v1  ;;  %2406 = vmatmul.mubr.bf16.gmra.mrb[76].mxu1 %v2188_v27  ;;  %v2134_v34 = vmax.f32 %v2070_v23, 0.0 }
 0x2c5   : > { %v2073_v16 = vadd.f32 %v4084_v2, %v5830_v3  ;;  %v2135_v60 = vmax.f32 %v2071_v5, 0.0 }
 0x2c6   : > { %v2136_v58 = vmax.f32 %v2072_v32, 0.0 }
 0x2c7   : > { %v2137_v18 = vmax.f32 %v2073_v16, 0.0  ;;  %v1869_v61 = vpop.f32.mrb[20].mxu0 }
 0x2c8   : > { %v4085_v4 = vadd.f32 %v1869_v61, %v5777_v36  ;;  %v1871_v35 = vpop.f32.mrb[21].mxu0  ;;  %v2190_v31 = vpack.c.bf16 %v2136_v58, %v2134_v34 }
 0x2c9   : > { %v4086_v19 = vadd.f32 %v1871_v35, %v5779_v37  ;;  %v1873_v6 = vpop.f32.mrb[22].mxu0  ;;  %v2191_v7 = vpack.c.bf16 %v2137_v18, %v2135_v60 }
 0x2ca   : > { %v2074_v27 = vadd.f32 %v4085_v4, %v5828_v1  ;;  %v4087_v10 = vadd.f32 %v1873_v6, %v5781_v38  ;;  %v1875_v13 = vpop.f32.mrb[23].mxu0 }
 0x2cb   : > { %v2075_v2 = vadd.f32 %v4086_v19, %v5830_v3  ;;  %v4088_v23 = vadd.f32 %v1875_v13, %v5783_v39  ;;  %2413 = vmatprep.mubr.bf16.mxu1 %v2191_v7 }
 0x2cc   : > { %v2076_v5 = vadd.f32 %v4087_v10, %v5828_v1  ;;  %2414 = vmatmul.mubr.bf16.gmra.mrb[80].mxu1 %v2190_v31  ;;  %v2138_v32 = vmax.f32 %v2074_v27, 0.0 }
 0x2cd   : > { %v2077_v36 = vadd.f32 %v4088_v23, %v5830_v3  ;;  %v2139_v37 = vmax.f32 %v2075_v2, 0.0 }
 0x2ce   : > { %v2140_v16 = vmax.f32 %v2076_v5, 0.0 }
 0x2cf   : > { %v2141_v34 = vmax.f32 %v2077_v36, 0.0  ;;  %v1879_v58 = vpop.f32.mrb[24].mxu0 }
 0x2d0   : > { %v4089_v60 = vadd.f32 %v1879_v58, %v5785_v40  ;;  %v1881_v18 = vpop.f32.mrb[25].mxu0  ;;  %v2192_v38 = vpack.c.bf16 %v2140_v16, %v2138_v32 }
 0x2d1   : > { %v4090_v61 = vadd.f32 %v1881_v18, %v5787_v41  ;;  %v1883_v4 = vpop.f32.mrb[26].mxu0  ;;  %v2193_v35 = vpack.c.bf16 %v2141_v34, %v2139_v37 }
 0x2d2   : > { %v2078_v39 = vadd.f32 %v4089_v60, %v5828_v1  ;;  %v4091_v19 = vadd.f32 %v1883_v4, %v5789_v42  ;;  %v1885_v31 = vpop.f32.mrb[27].mxu0 }
 0x2d3   : > { %v2079_v6 = vadd.f32 %v4090_v61, %v5830_v3  ;;  %v4092_v7 = vadd.f32 %v1885_v31, %v5791_v43  ;;  %2421 = vmatprep.mubr.bf16.mxu1 %v2193_v35 }
 0x2d4   : > { %v2080_v27 = vadd.f32 %v4091_v19, %v5828_v1  ;;  %2422 = vmatmul.mubr.bf16.gmra.mrb[84].mxu1 %v2192_v38  ;;  %v2142_v10 = vmax.f32 %v2078_v39, 0.0 }
 0x2d5   : > { %v2081_v40 = vadd.f32 %v4092_v7, %v5830_v3  ;;  %v2143_v41 = vmax.f32 %v2079_v6, 0.0 }
 0x2d6   : > { %v2144_v13 = vmax.f32 %v2080_v27, 0.0 }
 0x2d7   : > { %v2145_v2 = vmax.f32 %v2081_v40, 0.0  ;;  %v1889_v23 = vpop.f32.mrb[28].mxu0 }
 0x2d8   : > { %v4093_v5 = vadd.f32 %v1889_v23, %v5793_v44  ;;  %v1891_v36 = vpop.f32.mrb[29].mxu0  ;;  %v2194_v42 = vpack.c.bf16 %v2144_v13, %v2142_v10 }
 0x2d9   : > { %v4094_v32 = vadd.f32 %v1891_v36, %v5795_v45  ;;  %v1893_v16 = vpop.f32.mrb[30].mxu0  ;;  %v2195_v37 = vpack.c.bf16 %v2145_v2, %v2143_v41 }
 0x2da   : > { %v2082_v43 = vadd.f32 %v4093_v5, %v5828_v1  ;;  %v4095_v34 = vadd.f32 %v1893_v16, %v5797_v46  ;;  %v1895_v58 = vpop.f32.mrb[31].mxu0 }
 0x2db   : > { %v2083_v60 = vadd.f32 %v4094_v32, %v5830_v3  ;;  %v4096_v18 = vadd.f32 %v1895_v58, %v5799_v47  ;;  %2429 = vmatprep.mubr.bf16.mxu1 %v2195_v37 }
 0x2dc   : > { %v2084_v38 = vadd.f32 %v4095_v34, %v5828_v1  ;;  %2430 = vmatmul.mubr.bf16.gmra.mrb[88].mxu1 %v2194_v42  ;;  %v2146_v61 = vmax.f32 %v2082_v43, 0.0 }
 0x2dd   : > { %v2085_v44 = vadd.f32 %v4096_v18, %v5830_v3  ;;  %v2147_v45 = vmax.f32 %v2083_v60, 0.0 }
 0x2de   : > { %v2148_v4 = vmax.f32 %v2084_v38, 0.0 }
 0x2df   : > { %v2149_v35 = vmax.f32 %v2085_v44, 0.0  ;;  %v1899_v39 = vpop.f32.mrb[32].mxu0 }
 0x2e0   : > { %v4097_v19 = vadd.f32 %v1899_v39, %v5801_v48  ;;  %v1901_v31 = vpop.f32.mrb[33].mxu0  ;;  %v2196_v46 = vpack.c.bf16 %v2148_v4, %v2146_v61 }
 0x2e1   : > { %v4098_v6 = vadd.f32 %v1901_v31, %v5803_v49  ;;  %v1903_v7 = vpop.f32.mrb[34].mxu0  ;;  %v2197_v27 = vpack.c.bf16 %v2149_v35, %v2147_v45 }
 0x2e2   : > { %v2086_v47 = vadd.f32 %v4097_v19, %v5828_v1  ;;  %v4099_v40 = vadd.f32 %v1903_v7, %v5805_v50  ;;  %v1905_v10 = vpop.f32.mrb[35].mxu0 }
 0x2e3   : > { %v2087_v13 = vadd.f32 %v4098_v6, %v5830_v3  ;;  %v4100_v41 = vadd.f32 %v1905_v10, %v5807_v51  ;;  %2437 = vmatprep.mubr.bf16.mxu1 %v2197_v27 }
 0x2e4   : > { %v2088_v2 = vadd.f32 %v4099_v40, %v5828_v1  ;;  %2438 = vmatmul.mubr.bf16.gmra.mrb[92].mxu1 %v2196_v46  ;;  %v2150_v23 = vmax.f32 %v2086_v47, 0.0 }
 0x2e5   : > { %v2089_v48 = vadd.f32 %v4100_v41, %v5830_v3  ;;  %v2151_v49 = vmax.f32 %v2087_v13, 0.0 }
 0x2e6   : > { %v2152_v5 = vmax.f32 %v2088_v2, 0.0 }
 0x2e7   : > { %v2153_v36 = vmax.f32 %v2089_v48, 0.0  ;;  %v1909_v42 = vpop.f32.mrb[36].mxu0 }
 0x2e8   : > { %v4101_v32 = vadd.f32 %v1909_v42, %v5809_v53  ;;  %v1911_v16 = vpop.f32.mrb[37].mxu0  ;;  %v2198_v50 = vpack.c.bf16 %v2152_v5, %v2150_v23 }
 0x2e9   : > { %v4102_v37 = vadd.f32 %v1911_v16, %v5811_v54  ;;  %v1913_v43 = vpop.f32.mrb[38].mxu0  ;;  %v2199_v34 = vpack.c.bf16 %v2153_v36, %v2151_v49 }
 0x2ea   : > { %v2090_v51 = vadd.f32 %v4101_v32, %v5828_v1  ;;  %v4103_v58 = vadd.f32 %v1913_v43, %v5813_v55  ;;  %v1915_v60 = vpop.f32.mrb[39].mxu0  ;;  %v7008_v32 = vld [vmem:[#allocation25_spill] sm:$0xff] }
 0x2eb   : > { %v2091_v18 = vadd.f32 %v4102_v37, %v5830_v3  ;;  %v4104_v38 = vadd.f32 %v1915_v60, %v5815_v56  ;;  %2445 = vmatprep.mubr.bf16.mxu1 %v2199_v34 }
 0x2ec   : > { %v2092_v44 = vadd.f32 %v4103_v58, %v5828_v1  ;;  %2446 = vmatmul.mubr.bf16.gmra.mrb[96].mxu1 %v2198_v50  ;;  %v2154_v61 = vmax.f32 %v2090_v51, 0.0 }
 0x2ed   : > { %v2093_v53 = vadd.f32 %v4104_v38, %v5830_v3  ;;  %v2155_v54 = vmax.f32 %v2091_v18, 0.0 }
 0x2ee   : > { %v2156_v4 = vmax.f32 %v2092_v44, 0.0 }
 0x2ef   : > { %v2157_v45 = vmax.f32 %v2093_v53, 0.0  ;;  %v1919_v35 = vpop.f32.mrb[40].mxu0 }
 0x2f0   : > { %v4105_v39 = vadd.f32 %v1919_v35, %v5817_v59  ;;  %v1921_v19 = vpop.f32.mrb[41].mxu0  ;;  %v2200_v55 = vpack.c.bf16 %v2156_v4, %v2154_v61 }
 0x2f1   : > { %v4106_v31 = vadd.f32 %v1921_v19, %v5822_v62  ;;  %v1923_v46 = vpop.f32.mrb[42].mxu0  ;;  %v2201_v6 = vpack.c.bf16 %v2157_v45, %v2155_v54 }
 0x2f2   : > { %v2094_v56 = vadd.f32 %v4105_v39, %v5828_v1  ;;  %v4107_v7 = vadd.f32 %v1923_v46, %v5824_v63  ;;  %v1925_v27 = vpop.f32.mrb[43].mxu0 }
 0x2f3   : > { %v2095_v47 = vadd.f32 %v4106_v31, %v5830_v3  ;;  %v4108_v40 = vadd.f32 %v1925_v27, %v5826_v0  ;;  %2453 = vmatprep.mubr.bf16.mxu1 %v2201_v6 }
 0x2f4   : > { %v2096_v10 = vadd.f32 %v4107_v7, %v5828_v1  ;;  %2454 = vmatmul.mubr.bf16.gmra.mrb[100].mxu1 %v2200_v55  ;;  %v2158_v13 = vmax.f32 %v2094_v56, 0.0 }
 0x2f5   : > { %v2097_v59 = vadd.f32 %v4108_v40, %v5830_v3  ;;  %v2159_v62 = vmax.f32 %v2095_v47, 0.0 }
 0x2f6   : > { %v2160_v41 = vmax.f32 %v2096_v10, 0.0 }
 0x2f7   : > { %v2161_v2 = vmax.f32 %v2097_v59, 0.0  ;;  %v1929_v48 = vpop.f32.mrb[44].mxu0 }
 0x2f8   : > { %v4109_v23 = vadd.f32 %v1929_v48, %v5833_v11  ;;  %v1931_v5 = vpop.f32.mrb[45].mxu0  ;;  %v2202_v63 = vpack.c.bf16 %v2160_v41, %v2158_v13 }
 0x2f9   : > { %v4110_v49 = vadd.f32 %v1931_v5, %v5836_v14  ;;  %v1933_v36 = vpop.f32.mrb[46].mxu0  ;;  %v2203_v42 = vpack.c.bf16 %v2161_v2, %v2159_v62 }
 0x2fa   : > { %v2098_v0 = vadd.f32 %v4109_v23, %v5828_v1  ;;  %v4111_v16 = vadd.f32 %v1933_v36, %v7008_v32  ;;  %v1935_v50 = vpop.f32.mrb[47].mxu0 }
 0x2fb   : > { %v2099_v37 = vadd.f32 %v4110_v49, %v5830_v3  ;;  %v4112_v43 = vadd.f32 %v1935_v50, %v5842_v57  ;;  %2461 = vmatprep.mubr.bf16.mxu1 %v2203_v42 }
 0x2fc   : > { %v2100_v34 = vadd.f32 %v4111_v16, %v5828_v1  ;;  %2462 = vmatmul.mubr.bf16.gmra.mrb[104].mxu1 %v2202_v63  ;;  %v2162_v51 = vmax.f32 %v2098_v0, 0.0 }
 0x2fd   : > { %v2101_v11 = vadd.f32 %v4112_v43, %v5830_v3  ;;  %v2163_v14 = vmax.f32 %v2099_v37, 0.0 }
 0x2fe   : > { %v2164_v58 = vmax.f32 %v2100_v34, 0.0 }
 0x2ff   : > { %v2165_v60 = vmax.f32 %v2101_v11, 0.0  ;;  %v1939_v18 = vpop.f32.mrb[48].mxu0 }
 0x300   : > { %v4113_v38 = vadd.f32 %v1939_v18, %v5848_v52  ;;  %v1941_v44 = vpop.f32.mrb[49].mxu0  ;;  %v2204_v53 = vpack.c.bf16 %v2164_v58, %v2162_v51 }
 0x301   : > { %v4114_v61 = vadd.f32 %v1941_v44, %v5852_v15  ;;  %v1943_v4 = vpop.f32.mrb[50].mxu0  ;;  %v2205_v54 = vpack.c.bf16 %v2165_v60, %v2163_v14 }
 0x302   : > { %v2102_v57 = vadd.f32 %v4113_v38, %v5828_v1  ;;  %v4115_v45 = vadd.f32 %v1943_v4, %v5855_v21  ;;  %v1945_v35 = vpop.f32.mrb[51].mxu0 }
 0x303   : > { %v2103_v39 = vadd.f32 %v4114_v61, %v5830_v3  ;;  %v4116_v19 = vadd.f32 %v1945_v35, %v5858_v17  ;;  %2469 = vmatprep.mubr.bf16.mxu1 %v2205_v54 }
 0x304   : > { %v2104_v55 = vadd.f32 %v4115_v45, %v5828_v1  ;;  %2470 = vmatmul.mubr.bf16.gmra.mrb[108].mxu1 %v2204_v53  ;;  %v2166_v31 = vmax.f32 %v2102_v57, 0.0 }
 0x305   : > { %v2105_v52 = vadd.f32 %v4116_v19, %v5830_v3  ;;  %v2167_v15 = vmax.f32 %v2103_v39, 0.0 }
 0x306   : > { %v2168_v46 = vmax.f32 %v2104_v55, 0.0 }
 0x307   : > { %v2169_v6 = vmax.f32 %v2105_v52, 0.0  ;;  %v1949_v56 = vpop.f32.mrb[52].mxu0 }
 0x308   : > { %v4117_v7 = vadd.f32 %v1949_v56, %v5864_v12  ;;  %v1951_v27 = vpop.f32.mrb[53].mxu0  ;;  %v2206_v21 = vpack.c.bf16 %v2168_v46, %v2166_v31 }
 0x309   : > { %v4118_v47 = vadd.f32 %v1951_v27, %v5868_v20  ;;  %v1953_v40 = vpop.f32.mrb[54].mxu0  ;;  %v2207_v10 = vpack.c.bf16 %v2169_v6, %v2167_v15 }
 0x30a   : > { %v2106_v17 = vadd.f32 %v4117_v7, %v5828_v1  ;;  %v4119_v59 = vadd.f32 %v1953_v40, %v5871_v25  ;;  %v1955_v13 = vpop.f32.mrb[55].mxu0 }
 0x30b   : > { %v2107_v41 = vadd.f32 %v4118_v47, %v5830_v3  ;;  %v4120_v62 = vadd.f32 %v1955_v13, %v5874_v22  ;;  %2477 = vmatprep.mubr.bf16.mxu1 %v2207_v10 }
 0x30c   : > { %v2108_v2 = vadd.f32 %v4119_v59, %v5828_v1  ;;  %2478 = vmatmul.mubr.bf16.gmra.mrb[112].mxu1 %v2206_v21  ;;  %v2170_v48 = vmax.f32 %v2106_v17, 0.0 }
 0x30d   : > { %v2109_v12 = vadd.f32 %v4120_v62, %v5830_v3  ;;  %v2171_v20 = vmax.f32 %v2107_v41, 0.0 }
 0x30e   : > { %v2172_v23 = vmax.f32 %v2108_v2, 0.0 }
 0x30f   : > { %v2173_v5 = vmax.f32 %v2109_v12, 0.0  ;;  %v1959_v63 = vpop.f32.mrb[56].mxu0 }
 0x310   : > { %v4121_v49 = vadd.f32 %v1959_v63, %v5880_v8  ;;  %v1961_v36 = vpop.f32.mrb[57].mxu0  ;;  %v2208_v25 = vpack.c.bf16 %v2172_v23, %v2170_v48 }
 0x311   : > { %v4122_v42 = vadd.f32 %v1961_v36, %v5884_v24  ;;  %v1963_v0 = vpop.f32.mrb[58].mxu0  ;;  %v2209_v32 = vpack.c.bf16 %v2173_v5, %v2171_v20 }
 0x312   : > { %v2110_v22 = vadd.f32 %v4121_v49, %v5828_v1  ;;  %v4123_v16 = vadd.f32 %v1963_v0, %v5887_v29  ;;  %v1965_v50 = vpop.f32.mrb[59].mxu0 }
 0x313   : > { %v2111_v37 = vadd.f32 %v4122_v42, %v5830_v3  ;;  %v4124_v43 = vadd.f32 %v1965_v50, %v5890_v26  ;;  %2485 = vmatprep.mubr.bf16.mxu1 %v2209_v32 }
 0x314   : > { %v2112_v34 = vadd.f32 %v4123_v16, %v5828_v1  ;;  %2486 = vmatmul.mubr.bf16.gmra.mrb[116].mxu1 %v2208_v25  ;;  %v2174_v11 = vmax.f32 %v2110_v22, 0.0 }
 0x315   : > { %v2113_v8 = vadd.f32 %v4124_v43, %v5830_v3  ;;  %v2175_v24 = vmax.f32 %v2111_v37, 0.0 }
 0x316   : > { %v2176_v51 = vmax.f32 %v2112_v34, 0.0 }
 0x317   : > { %v2177_v58 = vmax.f32 %v2113_v8, 0.0  ;;  %v1969_v14 = vpop.f32.mrb[60].mxu0 }
 0x318   : > { %v4125_v60 = vadd.f32 %v1969_v14, %v5896_v9  ;;  %v1971_v18 = vpop.f32.mrb[61].mxu0  ;;  %v2210_v29 = vpack.c.bf16 %v2176_v51, %v2174_v11 }
 0x319   : > { %v4126_v38 = vadd.f32 %v1971_v18, %v5900_v28  ;;  %v1973_v44 = vpop.f32.mrb[62].mxu0  ;;  %v2211_v53 = vpack.c.bf16 %v2177_v58, %v2175_v24 }
 0x31a   : > { %v2114_v26 = vadd.f32 %v4125_v60, %v5828_v1  ;;  %v4127_v61 = vadd.f32 %v1973_v44, %v5903_v33  ;;  %v1975_v4 = vpop.f32.mrb[63].mxu0 }
 0x31b   : > { %v2115_v54 = vadd.f32 %v4126_v38, %v5830_v3  ;;  %v4128_v57 = vadd.f32 %v1975_v4, %v5906_v30  ;;  %2493 = vmatprep.mubr.bf16.mxu1 %v2211_v53  ;;  %v5999_v30 = vld [vmem:[%s7009_s9] ss:$0 sm:$0xff] }
 0x31c   : > { %v2116_v45 = vadd.f32 %v4127_v61, %v5828_v1  ;;  %2494 = vmatmul.mubr.bf16.gmra.mrb[120].mxu1 %v2210_v29  ;;  %v2178_v35 = vmax.f32 %v2114_v26, 0.0 }
 0x31d   : > { %v2117_v9 = vadd.f32 %v4128_v57, %v5830_v3  ;;  %v2179_v28 = vmax.f32 %v2115_v54, 0.0 }
 0x31e   : > { %v2180_v39 = vmax.f32 %v2116_v45, 0.0 }
 0x31f   : > { %v2181_v19 = vmax.f32 %v2117_v9, 0.0 }
 0x320   : > { %v2212_v55 = vpack.c.bf16 %v2180_v39, %v2178_v35 }
 0x321   : > { %v2213_v52 = vpack.c.bf16 %v2181_v19, %v2179_v28 }
 0x323   : > { %2501 = vmatprep.mubr.bf16.mxu1 %v2213_v52 }
 0x324   : > { %2502 = vmatmul.mubr.bf16.gmra.mrb[124].mxu1 %v2212_v55 }
 0x37f   : > { %v3969_v33 = vpop.f32.mrb[64].mxu1 }
 0x380   : > { %v3970_v31 = vpop.f32.mrb[65].mxu1 }
 0x381   : > { %v3971_v46 = vadd.f32 %v3970_v31, %v3969_v33  ;;  %v3972_v1 = vpop.f32.mrb[66].mxu1 }
 0x382   : > { %v3973_v15 = vpop.f32.mrb[67].mxu1 }
 0x383   : > { %v3974_v6 = vadd.f32 %v3973_v15, %v3972_v1  ;;  %v6002_v3 = vadd.f32 %v3971_v46, %v5999_v30 }
 0x385   : > { %2510 = vmax.xlane.f32.xlu0 %v6002_v3  ;;  %v6006_v7 = vadd.f32 %v3974_v6, %v5999_v30 }
 0x387   : > { %v3975_v56 = vpop.f32.mrb[68].mxu1 }
 0x388   : > { %v3976_v27 = vpop.f32.mrb[69].mxu1 }
 0x389   : > { %v3977_v21 = vadd.f32 %v3976_v27, %v3975_v56  ;;  %2512 = vmax.xlane.f32.xlu0 %v6006_v7  ;;  %v3978_v47 = vpop.f32.mrb[70].mxu1 }
 0x38a   : > { %v3979_v40 = vpop.f32.mrb[71].mxu1 }
 0x38b   : > { %v3980_v10 = vadd.f32 %v3979_v40, %v3978_v47  ;;  %v6010_v17 = vadd.f32 %v3977_v21, %v5999_v30 }
 0x38d   : > { %2514 = vmax.xlane.f32.xlu1 %v6010_v17  ;;  %v6014_v13 = vadd.f32 %v3980_v10, %v5999_v30 }
 0x38f   : > { %v3981_v59 = vpop.f32.mrb[72].mxu1 }
 0x390   : > { %v3982_v41 = vpop.f32.mrb[73].mxu1 }
 0x391   : > { %v3983_v62 = vadd.f32 %v3982_v41, %v3981_v59  ;;  %2516 = vmax.xlane.f32.xlu1 %v6014_v13  ;;  %v3984_v2 = vpop.f32.mrb[74].mxu1 }
 0x392   : > { %v3985_v12 = vpop.f32.mrb[75].mxu1 }
 0x393   : > { %v3986_v48 = vadd.f32 %v3985_v12, %v3984_v2  ;;  %v6018_v23 = vadd.f32 %v3983_v62, %v5999_v30 }
 0x395   : > { %2518 = vmax.xlane.f32.xlu0 %v6018_v23  ;;  %v6022_v20 = vadd.f32 %v3986_v48, %v5999_v30 }
 0x397   : > { %2520 = vmax.xlane.f32.xlu1 %v6022_v20  ;;  %v3987_v5 = vpop.f32.mrb[76].mxu1 }
 0x398   : > { %v3988_v63 = vpop.f32.mrb[77].mxu1 }
 0x399   : > { %v3989_v49 = vadd.f32 %v3988_v63, %v3987_v5  ;;  %v3990_v36 = vpop.f32.mrb[78].mxu1 }
 0x39a   : > { %v3991_v25 = vpop.f32.mrb[79].mxu1 }
 0x39b   : > { %v3992_v42 = vadd.f32 %v3991_v25, %v3990_v36  ;;  %v6026_v0 = vadd.f32 %v3989_v49, %v5999_v30 }
 0x39d   : > { %2522 = vmax.xlane.f32.xlu0 %v6026_v0  ;;  %v6030_v32 = vadd.f32 %v3992_v42, %v5999_v30 }
 0x39f   : > { %2524 = vmax.xlane.f32.xlu1 %v6030_v32  ;;  %v3993_v22 = vpop.f32.mrb[80].mxu1 }
 0x3a0   : > { %v3994_v16 = vpop.f32.mrb[81].mxu1 }
 0x3a1   : > { %v3995_v50 = vadd.f32 %v3994_v16, %v3993_v22  ;;  %v3996_v37 = vpop.f32.mrb[82].mxu1 }
 0x3a2   : > { %v3997_v43 = vpop.f32.mrb[83].mxu1 }
 0x3a3   : > { %v3998_v34 = vadd.f32 %v3997_v43, %v3996_v37  ;;  %v6034_v8 = vadd.f32 %v3995_v50, %v5999_v30 }
 0x3a5   : > { %2526 = vmax.xlane.f32.xlu0 %v6034_v8  ;;  %v6038_v11 = vadd.f32 %v3998_v34, %v5999_v30 }
 0x3a7   : > { %2528 = vmax.xlane.f32.xlu1 %v6038_v11  ;;  %v3999_v51 = vpop.f32.mrb[84].mxu1 }
 0x3a8   : > { %v4000_v24 = vpop.f32.mrb[85].mxu1 }
 0x3a9   : > { %v4001_v58 = vadd.f32 %v4000_v24, %v3999_v51  ;;  %v4002_v14 = vpop.f32.mrb[86].mxu1 }
 0x3aa   : > { %v4003_v60 = vpop.f32.mrb[87].mxu1 }
 0x3ab   : > { %v4004_v18 = vadd.f32 %v4003_v60, %v4002_v14  ;;  %v6042_v29 = vadd.f32 %v4001_v58, %v5999_v30 }
 0x3ad   : > { %2530 = vmax.xlane.f32.xlu0 %v6042_v29  ;;  %v6046_v38 = vadd.f32 %v4004_v18, %v5999_v30 }
 0x3af   : > { %2532 = vmax.xlane.f32.xlu1 %v6046_v38  ;;  %v4005_v44 = vpop.f32.mrb[88].mxu1 }
 0x3b0   : > { %v4006_v53 = vpop.f32.mrb[89].mxu1 }
 0x3b1   : > { %v4007_v26 = vadd.f32 %v4006_v53, %v4005_v44  ;;  %v4008_v61 = vpop.f32.mrb[90].mxu1 }
 0x3b2   : > { %v4009_v4 = vpop.f32.mrb[91].mxu1 }
 0x3b3   : > { %v4010_v54 = vadd.f32 %v4009_v4, %v4008_v61  ;;  %v6050_v57 = vadd.f32 %v4007_v26, %v5999_v30 }
 0x3b5   : > { %2534 = vmax.xlane.f32.xlu0 %v6050_v57  ;;  %v6054_v45 = vadd.f32 %v4010_v54, %v5999_v30 }
 0x3b7   : > { %2536 = vmax.xlane.f32.xlu1 %v6054_v45  ;;  %v4011_v9 = vpop.f32.mrb[92].mxu1 }
 0x3b8   : > { %v4012_v35 = vpop.f32.mrb[93].mxu1 }
 0x3b9   : > { %v4013_v39 = vadd.f32 %v4012_v35, %v4011_v9  ;;  %v4014_v28 = vpop.f32.mrb[94].mxu1 }
 0x3ba   : > { %v4015_v19 = vpop.f32.mrb[95].mxu1 }
 0x3bb   : > { %v4016_v55 = vadd.f32 %v4015_v19, %v4014_v28  ;;  %v6058_v52 = vadd.f32 %v4013_v39, %v5999_v30 }
 0x3bd   : > { %2538 = vmax.xlane.f32.xlu0 %v6058_v52  ;;  %v6062_v33 = vadd.f32 %v4016_v55, %v5999_v30 }
 0x3bf   : > { %2540 = vmax.xlane.f32.xlu1 %v6062_v33  ;;  %v4017_v31 = vpop.f32.mrb[96].mxu1 }
 0x3c0   : > { %v4018_v46 = vpop.f32.mrb[97].mxu1 }
 0x3c1   : > { %v4019_v1 = vadd.f32 %v4018_v46, %v4017_v31  ;;  %v4020_v15 = vpop.f32.mrb[98].mxu1 }
 0x3c2   : > { %v4021_v6 = vpop.f32.mrb[99].mxu1 }
 0x3c3   : > { %v4022_v56 = vadd.f32 %v4021_v6, %v4020_v15  ;;  %v6066_v27 = vadd.f32 %v4019_v1, %v5999_v30 }
 0x3c5   : > { %2542 = vmax.xlane.f32.xlu0 %v6066_v27  ;;  %v6070_v21 = vadd.f32 %v4022_v56, %v5999_v30 }
 0x3c7   : > { %2544 = vmax.xlane.f32.xlu1 %v6070_v21  ;;  %v4023_v47 = vpop.f32.mrb[100].mxu1 }
 0x3c8   : > { %v4024_v40 = vpop.f32.mrb[101].mxu1 }
 0x3c9   : > { %v4025_v10 = vadd.f32 %v4024_v40, %v4023_v47  ;;  %v4026_v59 = vpop.f32.mrb[102].mxu1 }
 0x3ca   : > { %v4027_v41 = vpop.f32.mrb[103].mxu1 }
 0x3cb   : > { %v4028_v62 = vadd.f32 %v4027_v41, %v4026_v59  ;;  %v6074_v2 = vadd.f32 %v4025_v10, %v5999_v30 }
 0x3cd   : > { %2546 = vmax.xlane.f32.xlu0 %v6074_v2  ;;  %v6078_v12 = vadd.f32 %v4028_v62, %v5999_v30 }
 0x3cf   : > { %2548 = vmax.xlane.f32.xlu1 %v6078_v12  ;;  %v4029_v48 = vpop.f32.mrb[104].mxu1 }
 0x3d0   : > { %v4030_v5 = vpop.f32.mrb[105].mxu1 }
 0x3d1   : > { %v4031_v63 = vadd.f32 %v4030_v5, %v4029_v48  ;;  %v4032_v49 = vpop.f32.mrb[106].mxu1 }
 0x3d2   : > { %v4033_v36 = vpop.f32.mrb[107].mxu1 }
 0x3d3   : > { %v4034_v25 = vadd.f32 %v4033_v36, %v4032_v49  ;;  %v6082_v42 = vadd.f32 %v4031_v63, %v5999_v30 }
 0x3d5   : > { %2550 = vmax.xlane.f32.xlu0 %v6082_v42  ;;  %v6086_v22 = vadd.f32 %v4034_v25, %v5999_v30 }
 0x3d7   : > { %2552 = vmax.xlane.f32.xlu1 %v6086_v22  ;;  %v4035_v16 = vpop.f32.mrb[108].mxu1 }
 0x3d8   : > { %v4036_v50 = vpop.f32.mrb[109].mxu1 }
 0x3d9   : > { %v4037_v37 = vadd.f32 %v4036_v50, %v4035_v16  ;;  %v4038_v43 = vpop.f32.mrb[110].mxu1 }
 0x3da   : > { %v4039_v34 = vpop.f32.mrb[111].mxu1 }
 0x3db   : > { %v4040_v51 = vadd.f32 %v4039_v34, %v4038_v43  ;;  %v6090_v24 = vadd.f32 %v4037_v37, %v5999_v30 }
 0x3dd   : > { %2554 = vmax.xlane.f32.xlu0 %v6090_v24  ;;  %v6094_v58 = vadd.f32 %v4040_v51, %v5999_v30 }
 0x3df   : > { %2556 = vmax.xlane.f32.xlu1 %v6094_v58  ;;  %v4041_v14 = vpop.f32.mrb[112].mxu1 }
 0x3e0   : > { %v4042_v60 = vpop.f32.mrb[113].mxu1 }
 0x3e1   : > { %v4043_v18 = vadd.f32 %v4042_v60, %v4041_v14  ;;  %v4044_v44 = vpop.f32.mrb[114].mxu1 }
 0x3e2   : > { %v4045_v53 = vpop.f32.mrb[115].mxu1 }
 0x3e3   : > { %v4046_v26 = vadd.f32 %v4045_v53, %v4044_v44  ;;  %v6098_v61 = vadd.f32 %v4043_v18, %v5999_v30 }
 0x3e5   : > { %2558 = vmax.xlane.f32.xlu0 %v6098_v61  ;;  %v6102_v4 = vadd.f32 %v4046_v26, %v5999_v30 }
 0x3e7   : > { %2560 = vmax.xlane.f32.xlu1 %v6102_v4  ;;  %v4047_v54 = vpop.f32.mrb[116].mxu1 }
 0x3e8   : > { %v4048_v9 = vpop.f32.mrb[117].mxu1 }
 0x3e9   : > { %v4049_v35 = vadd.f32 %v4048_v9, %v4047_v54  ;;  %v4050_v39 = vpop.f32.mrb[118].mxu1 }
 0x3ea   : > { %v4051_v28 = vpop.f32.mrb[119].mxu1 }
 0x3eb   : > { %v4052_v19 = vadd.f32 %v4051_v28, %v4050_v39  ;;  %v6106_v55 = vadd.f32 %v4049_v35, %v5999_v30 }
 0x3ed   : > { %2562 = vmax.xlane.f32.xlu0 %v6106_v55  ;;  %v6110_v31 = vadd.f32 %v4052_v19, %v5999_v30 }
 0x3ef   : > { %2564 = vmax.xlane.f32.xlu1 %v6110_v31  ;;  %v4053_v46 = vpop.f32.mrb[120].mxu1 }
 0x3f0   : > { %v4054_v1 = vpop.f32.mrb[121].mxu1 }
 0x3f1   : > { %v4055_v15 = vadd.f32 %v4054_v1, %v4053_v46  ;;  %v4056_v6 = vpop.f32.mrb[122].mxu1 }
 0x3f2   : > { %v4057_v56 = vpop.f32.mrb[123].mxu1 }
 0x3f3   : > { %v4058_v47 = vadd.f32 %v4057_v56, %v4056_v6  ;;  %v6114_v40 = vadd.f32 %v4055_v15, %v5999_v30 }
 0x3f5   : > { %2566 = vmax.xlane.f32.xlu0 %v6114_v40  ;;  %v6118_v10 = vadd.f32 %v4058_v47, %v5999_v30 }
 0x3f7   : > { %2568 = vmax.xlane.f32.xlu1 %v6118_v10  ;;  %v4059_v59 = vpop.f32.mrb[124].mxu1 }
 0x3f8   : > { %v4060_v41 = vpop.f32.mrb[125].mxu1 }
 0x3f9   : > { %v4061_v62 = vadd.f32 %v4060_v41, %v4059_v59  ;;  %v4062_v48 = vpop.f32.mrb[126].mxu1 }
 0x3fa   : > { %v4063_v5 = vpop.f32.mrb[127].mxu1 }
 0x3fb   : > { %v4064_v63 = vadd.f32 %v4063_v5, %v4062_v48  ;;  %v6122_v49 = vadd.f32 %v4061_v62, %v5999_v30 }
 0x3fd   : > { %2570 = vmax.xlane.f32.xlu0 %v6122_v49  ;;  %v6126_v36 = vadd.f32 %v4064_v63, %v5999_v30 }
 0x3ff   : > { %2572 = vmax.xlane.f32.xlu1 %v6126_v36 }
 0x412   : > { %v2511_v25 = vpop.xlane.xlu0 %2510 }
 0x413   : > { %v2574_v16 = vsub.f32 %v6002_v3, %v2511_v25 }
 0x415   : > { %v2606_v50 = vmul.f32 1.442695, %v2574_v16 }
 0x416   : > { %v2513_v37 = vpop.xlane.xlu0 %2512 }
 0x417   : > { %4546 = vpow2.f32 %v2606_v50  ;;  %v2575_v43 = vsub.f32 %v6006_v7, %v2513_v37  ;;  %v5160_v50 = vmov 1  }
 0x418   : > { %4291 = vset.pattern.permute.xlu1 %v5160_v50 }
 0x419   : > { %v2608_v34 = vmul.f32 1.442695, %v2575_v43 }
 0x41a   : > { %v2515_v51 = vpop.xlane.xlu1 %2514 }
 0x41b   : > { %4548 = vpow2.f32 %v2608_v34  ;;  %v2576_v14 = vsub.f32 %v6010_v17, %v2515_v51 }
 0x41d   : > { %v2610_v60 = vmul.f32 1.442695, %v2576_v14 }
 0x41e   : > { %v2517_v18 = vpop.xlane.xlu1 %2516 }
 0x41f   : > { %4550 = vpow2.f32 %v2610_v60  ;;  %v2577_v30 = vsub.f32 %v6014_v13, %v2517_v18 }
 0x421   : > { %v6133_v44 = vpop.eup %4546  ;;  %v2612_v53 = vmul.f32 1.442695, %v2577_v30 }
 0x422   : > { %v2519_v26 = vpop.xlane.xlu0 %2518  ;;  %2670 = vadd.xlane.f32.xlu0 %v6133_v44 }
 0x423   : > { %4552 = vpow2.f32 %v2612_v53  ;;  %v2578_v3 = vsub.f32 %v6018_v23, %v2519_v26 }
 0x424   : > { %v2521_v7 = vpop.xlane.xlu1 %2520 }
 0x425   : > { %v6137_v54 = vpop.eup %4548  ;;  %v2614_v9 = vmul.f32 1.442695, %v2578_v3  ;;  %v2579_v17 = vsub.f32 %v6022_v20, %v2521_v7 }
 0x426   : > { %2672 = vadd.xlane.f32.xlu1 %v6137_v54 }
 0x427   : > { %4554 = vpow2.f32 %v2614_v9  ;;  %v2616_v35 = vmul.f32 1.442695, %v2579_v17 }
 0x429   : > { %v6141_v13 = vpop.eup %4550  ;;  %4556 = vpow2.f32 %v2616_v35 }
 0x42a   : > { %v2523_v39 = vpop.xlane.xlu0 %2522  ;;  %2674 = vadd.xlane.f32.xlu0 %v6141_v13 }
 0x42b   : > { %v2580_v28 = vsub.f32 %v6026_v0, %v2523_v39 }
 0x42c   : > { %v2525_v19 = vpop.xlane.xlu1 %2524 }
 0x42d   : > { %v6145_v23 = vpop.eup %4552  ;;  %v2618_v46 = vmul.f32 1.442695, %v2580_v28  ;;  %v2581_v1 = vsub.f32 %v6030_v32, %v2525_v19 }
 0x42e   : > { %2676 = vadd.xlane.f32.xlu1 %v6145_v23 }
 0x42f   : > { %4558 = vpow2.f32 %v2618_v46  ;;  %v2620_v20 = vmul.f32 1.442695, %v2581_v1 }
 0x431   : > { %v6149_v15 = vpop.eup %4554  ;;  %4560 = vpow2.f32 %v2620_v20 }
 0x432   : > { %v2527_v6 = vpop.xlane.xlu0 %2526  ;;  %2678 = vadd.xlane.f32.xlu0 %v6149_v15 }
 0x433   : > { %v6152_v56 = vpop.eup %4556  ;;  %v2582_v0 = vsub.f32 %v6034_v8, %v2527_v6  ;;  %v5159_v8 = vmov 0  }
 0x434   : > { %v2529_v47 = vpop.xlane.xlu1 %2528  ;;  %2680 = vadd.xlane.f32.xlu1 %v6152_v56  ;;  %4290 = vset.pattern.permute.xlu0 %v5159_v8 }
 0x435   : > { %v2622_v59 = vmul.f32 1.442695, %v2582_v0  ;;  %v2583_v32 = vsub.f32 %v6038_v11, %v2529_v47 }
 0x437   : > { %4562 = vpow2.f32 %v2622_v59  ;;  %v2624_v41 = vmul.f32 1.442695, %v2583_v32 }
 0x439   : > { %v6157_v62 = vpop.eup %4558  ;;  %4564 = vpow2.f32 %v2624_v41 }
 0x43a   : > { %v2531_v48 = vpop.xlane.xlu0 %2530  ;;  %2682 = vadd.xlane.f32.xlu0 %v6157_v62 }
 0x43b   : > { %v6160_v5 = vpop.eup %4560  ;;  %v2584_v63 = vsub.f32 %v6042_v29, %v2531_v48 }
 0x43c   : > { %v2533_v25 = vpop.xlane.xlu1 %2532  ;;  %2684 = vadd.xlane.f32.xlu1 %v6160_v5 }
 0x43d   : > { %v2626_v16 = vmul.f32 1.442695, %v2584_v63  ;;  %v2585_v11 = vsub.f32 %v6046_v38, %v2533_v25 }
 0x43f   : > { %4566 = vpow2.f32 %v2626_v16  ;;  %v2628_v37 = vmul.f32 1.442695, %v2585_v11 }
 0x441   : > { %v6167_v43 = vpop.eup %4562  ;;  %4568 = vpow2.f32 %v2628_v37 }
 0x442   : > { %v2535_v34 = vpop.xlane.xlu0 %2534  ;;  %2686 = vadd.xlane.f32.xlu0 %v6167_v43 }
 0x443   : > { %v6170_v29 = vpop.eup %4564  ;;  %v2586_v51 = vsub.f32 %v6050_v57, %v2535_v34 }
 0x444   : > { %v2537_v14 = vpop.xlane.xlu1 %2536  ;;  %2688 = vadd.xlane.f32.xlu1 %v6170_v29 }
 0x445   : > { %v2630_v60 = vmul.f32 1.442695, %v2586_v51  ;;  %v2587_v38 = vsub.f32 %v6054_v45, %v2537_v14 }
 0x447   : > { %4570 = vpow2.f32 %v2630_v60  ;;  %v2632_v18 = vmul.f32 1.442695, %v2587_v38 }
 0x449   : > { %v6175_v30 = vpop.eup %4566  ;;  %4572 = vpow2.f32 %v2632_v18 }
 0x44a   : > { %v2539_v53 = vpop.xlane.xlu0 %2538  ;;  %2690 = vadd.xlane.f32.xlu0 %v6175_v30 }
 0x44b   : > { %v6178_v26 = vpop.eup %4568  ;;  %v2588_v3 = vsub.f32 %v6058_v52, %v2539_v53 }
 0x44c   : > { %v2541_v7 = vpop.xlane.xlu1 %2540  ;;  %2692 = vadd.xlane.f32.xlu1 %v6178_v26 }
 0x44d   : > { %v2634_v57 = vmul.f32 1.442695, %v2588_v3  ;;  %v2589_v9 = vsub.f32 %v6062_v33, %v2541_v7 }
 0x44f   : > { %4574 = vpow2.f32 %v2634_v57  ;;  %v2636_v45 = vmul.f32 1.442695, %v2589_v9 }
 0x451   : > { %v6183_v17 = vpop.eup %4570  ;;  %4576 = vpow2.f32 %v2636_v45 }
 0x452   : > { %v2543_v35 = vpop.xlane.xlu0 %2542  ;;  %2694 = vadd.xlane.f32.xlu0 %v6183_v17 }
 0x453   : > { %v6186_v39 = vpop.eup %4572  ;;  %v2590_v28 = vsub.f32 %v6066_v27, %v2543_v35 }
 0x454   : > { %v2545_v19 = vpop.xlane.xlu1 %2544  ;;  %2696 = vadd.xlane.f32.xlu1 %v6186_v39 }
 0x455   : > { %v2638_v52 = vmul.f32 1.442695, %v2590_v28  ;;  %v2591_v46 = vsub.f32 %v6070_v21, %v2545_v19 }
 0x457   : > { %4578 = vpow2.f32 %v2638_v52  ;;  %v2640_v33 = vmul.f32 1.442695, %v2591_v46 }
 0x459   : > { %v6191_v1 = vpop.eup %4574  ;;  %4580 = vpow2.f32 %v2640_v33 }
 0x45a   : > { %v2547_v20 = vpop.xlane.xlu0 %2546  ;;  %2698 = vadd.xlane.f32.xlu0 %v6191_v1 }
 0x45b   : > { %v6194_v6 = vpop.eup %4576  ;;  %v2592_v0 = vsub.f32 %v6074_v2, %v2547_v20 }
 0x45c   : > { %v2549_v47 = vpop.xlane.xlu1 %2548  ;;  %2700 = vadd.xlane.f32.xlu1 %v6194_v6 }
 0x45d   : > { %v2642_v27 = vmul.f32 1.442695, %v2592_v0  ;;  %v2593_v59 = vsub.f32 %v6078_v12, %v2549_v47 }
 0x45f   : > { %4582 = vpow2.f32 %v2642_v27  ;;  %v2644_v21 = vmul.f32 1.442695, %v2593_v59 }
 0x461   : > { %v6199_v32 = vpop.eup %4578  ;;  %4584 = vpow2.f32 %v2644_v21 }
 0x462   : > { %v2551_v41 = vpop.xlane.xlu0 %2550  ;;  %2702 = vadd.xlane.f32.xlu0 %v6199_v32 }
 0x463   : > { %v6202_v48 = vpop.eup %4580  ;;  %v2594_v63 = vsub.f32 %v6082_v42, %v2551_v41 }
 0x464   : > { %v2553_v25 = vpop.xlane.xlu1 %2552  ;;  %2704 = vadd.xlane.f32.xlu1 %v6202_v48 }
 0x465   : > { %v2646_v2 = vmul.f32 1.442695, %v2594_v63  ;;  %v2595_v16 = vsub.f32 %v6086_v22, %v2553_v25 }
 0x467   : > { %4586 = vpow2.f32 %v2646_v2  ;;  %v2648_v12 = vmul.f32 1.442695, %v2595_v16 }
 0x469   : > { %v6207_v11 = vpop.eup %4582  ;;  %4588 = vpow2.f32 %v2648_v12 }
 0x46a   : > { %v2555_v37 = vpop.xlane.xlu0 %2554  ;;  %2706 = vadd.xlane.f32.xlu0 %v6207_v11 }
 0x46b   : > { %v6210_v34 = vpop.eup %4584  ;;  %v2596_v51 = vsub.f32 %v6090_v24, %v2555_v37 }
 0x46c   : > { %v2557_v14 = vpop.xlane.xlu1 %2556  ;;  %2708 = vadd.xlane.f32.xlu1 %v6210_v34 }
 0x46d   : > { %v2650_v42 = vmul.f32 1.442695, %v2596_v51  ;;  %v2597_v60 = vsub.f32 %v6094_v58, %v2557_v14 }
 0x46f   : > { %4590 = vpow2.f32 %v2650_v42  ;;  %v2652_v22 = vmul.f32 1.442695, %v2597_v60 }
 0x471   : > { %v6215_v38 = vpop.eup %4586  ;;  %4592 = vpow2.f32 %v2652_v22 }
 0x472   : > { %v2559_v18 = vpop.xlane.xlu0 %2558  ;;  %2710 = vadd.xlane.f32.xlu0 %v6215_v38 }
 0x473   : > { %v6218_v53 = vpop.eup %4588  ;;  %v2598_v3 = vsub.f32 %v6098_v61, %v2559_v18 }
 0x474   : > { %v2561_v7 = vpop.xlane.xlu1 %2560  ;;  %2712 = vadd.xlane.f32.xlu1 %v6218_v53 }
 0x475   : > { %v2654_v24 = vmul.f32 1.442695, %v2598_v3  ;;  %v2599_v57 = vsub.f32 %v6102_v4, %v2561_v7 }
 0x477   : > { %4594 = vpow2.f32 %v2654_v24  ;;  %v2656_v58 = vmul.f32 1.442695, %v2599_v57  ;;  %v5161_v24 = vmov 2  }
 0x479   : > { %v6223_v9 = vpop.eup %4590  ;;  %4596 = vpow2.f32 %v2656_v58 }
 0x47a   : > { %v2563_v45 = vpop.xlane.xlu0 %2562  ;;  %2714 = vadd.xlane.f32.xlu0 %v6223_v9 }
 0x47b   : > { %v6226_v35 = vpop.eup %4592  ;;  %v2600_v28 = vsub.f32 %v6106_v55, %v2563_v45 }
 0x47c   : > { %v2565_v19 = vpop.xlane.xlu1 %2564  ;;  %2716 = vadd.xlane.f32.xlu1 %v6226_v35 }
 0x47d   : > { %v2658_v61 = vmul.f32 1.442695, %v2600_v28  ;;  %v2601_v52 = vsub.f32 %v6110_v31, %v2565_v19 }
 0x47f   : > { %4598 = vpow2.f32 %v2658_v61  ;;  %v2660_v4 = vmul.f32 1.442695, %v2601_v52 }
 0x481   : > { %v6231_v46 = vpop.eup %4594  ;;  %4600 = vpow2.f32 %v2660_v4 }
 0x482   : > { %v2567_v33 = vpop.xlane.xlu0 %2566  ;;  %2718 = vadd.xlane.f32.xlu0 %v6231_v46 }
 0x483   : > { %v6234_v20 = vpop.eup %4596  ;;  %v2602_v0 = vsub.f32 %v6114_v40, %v2567_v33 }
 0x484   : > { %v2569_v47 = vpop.xlane.xlu1 %2568  ;;  %2720 = vadd.xlane.f32.xlu1 %v6234_v20 }
 0x485   : > { %v2662_v55 = vmul.f32 1.442695, %v2602_v0  ;;  %v2603_v27 = vsub.f32 %v6118_v10, %v2569_v47 }
 0x487   : > { %4602 = vpow2.f32 %v2662_v55  ;;  %v2664_v31 = vmul.f32 1.442695, %v2603_v27 }
 0x489   : > { %v6239_v59 = vpop.eup %4598  ;;  %4604 = vpow2.f32 %v2664_v31 }
 0x48a   : > { %2722 = vadd.xlane.f32.xlu0 %v6239_v59  ;;  %v2571_v21 = vpop.xlane.xlu0 %2570 }
 0x48b   : > { %v6242_v41 = vpop.eup %4600  ;;  %v2604_v63 = vsub.f32 %v6122_v49, %v2571_v21 }
 0x48c   : > { %2724 = vadd.xlane.f32.xlu1 %v6242_v41  ;;  %v2573_v40 = vpop.xlane.xlu1 %2572 }
 0x48d   : > { %v2666_v25 = vmul.f32 1.442695, %v2604_v63  ;;  %v2605_v2 = vsub.f32 %v6126_v36, %v2573_v40 }
 0x48f   : > { %4606 = vpow2.f32 %v2666_v25  ;;  %v2668_v10 = vmul.f32 1.442695, %v2605_v2 }
 0x491   : > { %v6247_v16 = vpop.eup %4602  ;;  %4608 = vpow2.f32 %v2668_v10 }
 0x492   : > { %2726 = vadd.xlane.f32.xlu0 %v6247_v16 }
 0x493   : > { %v6250_v12 = vpop.eup %4604 }
 0x494   : > { %2728 = vadd.xlane.f32.xlu1 %v6250_v12 }
 0x499   : > { %v6253_v37 = vpop.eup %4606 }
 0x49a   : > { %2730 = vadd.xlane.f32.xlu0 %v6253_v37 }
 0x49b   : > { %v6256_v49 = vpop.eup %4608 }
 0x49c   : > { %2732 = vadd.xlane.f32.xlu1 %v6256_v49 }
 0x4af   : > { %v2671_v36 = vpop.xlane.xlu0 %2670 }
 0x4b0   : > { %4610 = vrcp.f32 %v2671_v36 }
 0x4b3   : > { %v2673_v51 = vpop.xlane.xlu1 %2672 }
 0x4b4   : > { %4612 = vrcp.f32 %v2673_v51 }
 0x4b7   : > { %v2675_v14 = vpop.xlane.xlu0 %2674 }
 0x4b8   : > { %4614 = vrcp.f32 %v2675_v14 }
 0x4ba   : > { %v4611_v42 = vpop.eup %4610 }
 0x4bb   : > { %v2677_v60 = vpop.xlane.xlu1 %2676  ;;  %v2766_v22 = vmul.f32 %v4611_v42, %v6133_v44 }
 0x4bc   : > { %4616 = vrcp.f32 %v2677_v60 }
 0x4bd   : > { %3023 = vperm.xlu1 %4291, %v2766_v22   ;;  %2800 = vperm.xlu0 %4290, %v2766_v22  }
 0x4be   : > { %v4613_v18 = vpop.eup %4612 }
 0x4bf   : > { %v2679_v3 = vpop.xlane.xlu0 %2678  ;;  %v2767_v7 = vmul.f32 %v4613_v18, %v6137_v54 }
 0x4c0   : > { %4618 = vrcp.f32 %v2679_v3 }
 0x4c1   : > { %4293 = vset.pattern.permute.xlu1 %v5159_v8  ;;  %4292 = vset.pattern.permute.xlu0 %v5161_v24  ;;  %v2681_v57 = vpop.xlane.xlu1 %2680 }
 0x4c2   : > { %2805 = vperm.xlu1 %4293, %v2767_v7   ;;  %3279 = vperm.xlu0 %4292, %v2766_v22   ;;  %v4615_v58 = vpop.eup %4614  ;;  %4620 = vrcp.f32 %v2681_v57 }
 0x4c3   : > { %v2768_v28 = vmul.f32 %v4615_v58, %v6141_v13 }
 0x4c6   : > { %4295 = vset.pattern.permute.xlu1 %v5161_v24  ;;  %4294 = vset.pattern.permute.xlu0 %v5160_v50  ;;  %v4617_v44 = vpop.eup %4616 }
 0x4c7   : > { %3283 = vperm.xlu1 %4295, %v2767_v7   ;;  %3027 = vperm.xlu0 %4294, %v2767_v7   ;;  %v2683_v45 = vpop.xlane.xlu0 %2682  ;;  %v2769_v54 = vmul.f32 %v4617_v44, %v6145_v23 }
 0x4c8   : > { %4622 = vrcp.f32 %v2683_v45 }
 0x4c9   : > { %v2685_v61 = vpop.xlane.xlu1 %2684 }
 0x4ca   : > { %v4619_v19 = vpop.eup %4618  ;;  %4624 = vrcp.f32 %v2685_v61 }
 0x4cb   : > { %4296 = vset.pattern.permute.xlu1 %v5159_v8  ;;  %4301 = vset.pattern.permute.xlu0 %v5161_v24  ;;  %v2770_v52 = vmul.f32 %v4619_v19, %v6149_v15 }
 0x4cc   : > { %3291 = vperm.xlu0 %4301, %v2769_v54   ;;  %2810 = vperm.xlu1 %4296, %v2768_v28   ;;  %v4621_v4 = vpop.eup %4620 }
 0x4cd   : > { %v2771_v23 = vmul.f32 %v4621_v4, %v6152_v56 }
 0x4cf   : > { %v2687_v13 = vpop.xlane.xlu0 %2686 }
 0x4d0   : > { %4303 = vset.pattern.permute.xlu0 %v5160_v50  ;;  %4297 = vset.pattern.permute.xlu1 %v5160_v50  ;;  %4626 = vrcp.f32 %v2687_v13 }
 0x4d1   : > { %3031 = vperm.xlu1 %4297, %v2768_v28   ;;  %3039 = vperm.xlu0 %4303, %v2770_v52   ;;  %v2689_v15 = vpop.xlane.xlu1 %2688 }
 0x4d2   : > { %v4623_v33 = vpop.eup %4622  ;;  %4628 = vrcp.f32 %v2689_v15 }
 0x4d3   : > { %v2772_v0 = vmul.f32 %v4623_v33, %v6157_v62 }
 0x4d4   : > { %v4625_v47 = vpop.eup %4624 }
 0x4d5   : > { %4298 = vset.pattern.permute.xlu1 %v5161_v24  ;;  %4307 = vset.pattern.permute.xlu0 %v5161_v24  ;;  %v2773_v56 = vmul.f32 %v4625_v47, %v6160_v5 }
 0x4d6   : > { %3287 = vperm.xlu1 %4298, %v2768_v28   ;;  %3299 = vperm.xlu0 %4307, %v2771_v23  }
 0x4d7   : > { %v2691_v27 = vpop.xlane.xlu0 %2690 }
 0x4d8   : > { %4630 = vrcp.f32 %v2691_v27 }
 0x4d9   : > { %v2693_v5 = vpop.xlane.xlu1 %2692 }
 0x4da   : > { %4299 = vset.pattern.permute.xlu1 %v5159_v8  ;;  %4309 = vset.pattern.permute.xlu0 %v5160_v50  ;;  %v4627_v55 = vpop.eup %4626  ;;  %4632 = vrcp.f32 %v2693_v5  ;;  %v4675_v5 = vld [vmem:[%s5536_s22 + $0x8] sm:$0xff] }
 0x4db   : > { %2815 = vperm.xlu1 %4299, %v2769_v54   ;;  %3047 = vperm.xlu0 %4309, %v2772_v0   ;;  %v6282_v62 = vmul.f32 %v4627_v55, %v6167_v43  ;;  %v4674_v55 = vld [vmem:[%s5536_s22] sm:$0xff] }
 0x4dc   : > { %v4629_v31 = vpop.eup %4628 }
 0x4dd   : > { %v6288_v21 = vmul.f32 %v4629_v31, %v6170_v29 }
 0x4df   : > { %4300 = vset.pattern.permute.xlu1 %v5160_v50  ;;  %4313 = vset.pattern.permute.xlu0 %v5161_v24  ;;  %v2695_v63 = vpop.xlane.xlu0 %2694 }
 0x4e0   : > { %3035 = vperm.xlu1 %4300, %v2769_v54   ;;  %3307 = vperm.xlu0 %4313, %v2773_v56   ;;  %4634 = vrcp.f32 %v2695_v63 }
 0x4e1   : > { %v2697_v25 = vpop.xlane.xlu1 %2696 }
 0x4e2   : > { %v4631_v43 = vpop.eup %4630  ;;  %4636 = vrcp.f32 %v2697_v25 }
 0x4e3   : > { %v6297_v29 = vmul.f32 %v4631_v43, %v6175_v30  ;;  %v4676_v43 = vld [vmem:[%s5528_s26] sm:$0xff] }
 0x4e4   : > { %4302 = vset.pattern.permute.xlu1 %v5159_v8  ;;  %4315 = vset.pattern.permute.xlu0 %v5160_v50  ;;  %v4633_v40 = vpop.eup %4632 }
 0x4e5   : > { %2820 = vperm.xlu1 %4302, %v2770_v52   ;;  %3055 = vperm.xlu0 %4315, %v6282_v62   ;;  %v6303_v2 = vmul.f32 %v4633_v40, %v6178_v26 }
 0x4e7   : > { %v2699_v10 = vpop.xlane.xlu0 %2698 }
 0x4e8   : > { %4638 = vrcp.f32 %v2699_v10 }
 0x4e9   : > { %4304 = vset.pattern.permute.xlu1 %v5161_v24  ;;  %4317 = vset.pattern.permute.xlu0 %v5159_v8  ;;  %v2701_v51 = vpop.xlane.xlu1 %2700 }
 0x4ea   : > { %3295 = vperm.xlu1 %4304, %v2770_v52   ;;  %2845 = vperm.xlu0 %4317, %v6288_v21   ;;  %v4635_v30 = vpop.eup %4634  ;;  %4640 = vrcp.f32 %v2701_v51  ;;  %v4679_v51 = vld [vmem:[%s5543_s16 + $0x8] sm:$0xff] }
 0x4eb   : > { %v6312_v26 = vmul.f32 %v4635_v30, %v6183_v17 }
 0x4ec   : > { %v4637_v36 = vpop.eup %4636 }
 0x4ed   : > { %v6318_v14 = vmul.f32 %v4637_v36, %v6186_v39 }
 0x4ee   : > { %4305 = vset.pattern.permute.xlu1 %v5159_v8  ;;  %4319 = vset.pattern.permute.xlu0 %v5161_v24 }
 0x4ef   : > { %2825 = vperm.xlu1 %4305, %v2771_v23   ;;  %3315 = vperm.xlu0 %4319, %v6288_v21   ;;  %v2703_v42 = vpop.xlane.xlu0 %2702 }
 0x4f0   : > { %4642 = vrcp.f32 %v2703_v42 }
 0x4f1   : > { %v2705_v22 = vpop.xlane.xlu1 %2704 }
 0x4f2   : > { %v4639_v17 = vpop.eup %4638  ;;  %4644 = vrcp.f32 %v2705_v22 }
 0x4f3   : > { %4306 = vset.pattern.permute.xlu1 %v5160_v50  ;;  %4321 = vset.pattern.permute.xlu0 %v5160_v50  ;;  %v6328_v39 = vmul.f32 %v4639_v17, %v6191_v1 }
 0x4f4   : > { %3043 = vperm.xlu1 %4306, %v2771_v23   ;;  %3063 = vperm.xlu0 %4321, %v6297_v29   ;;  %v4641_v60 = vpop.eup %4640 }
 0x4f5   : > { %v6335_v18 = vmul.f32 %v4641_v60, %v6194_v6  ;;  %v4680_v60 = vld [vmem:[%s5528_s26 + $0x10] sm:$0xff] }
 0x4f7   : > { %v2707_v6 = vpop.xlane.xlu0 %2706 }
 0x4f8   : > { %4308 = vset.pattern.permute.xlu1 %v5159_v8  ;;  %4323 = vset.pattern.permute.xlu0 %v5159_v8  ;;  %4646 = vrcp.f32 %v2707_v6 }
 0x4f9   : > { %2830 = vperm.xlu1 %4308, %v2772_v0   ;;  %2855 = vperm.xlu0 %4323, %v6303_v2   ;;  %v2709_v7 = vpop.xlane.xlu1 %2708 }
 0x4fa   : > { %v4643_v1 = vpop.eup %4642  ;;  %4648 = vrcp.f32 %v2709_v7  ;;  %v4682_v7 = vld [vmem:[%s5536_s22 + $0x10] sm:$0xff] }
 0x4fb   : > { %v6346_v3 = vmul.f32 %v4643_v1, %v6199_v32  ;;  %v4681_v1 = vld [vmem:[%s5528_s26 + $0x18] sm:$0xff] }
 0x4fc   : > { %v4645_v57 = vpop.eup %4644 }
 0x4fd   : > { %4310 = vset.pattern.permute.xlu1 %v5161_v24  ;;  %4325 = vset.pattern.permute.xlu0 %v5161_v24  ;;  %v6353_v45 = vmul.f32 %v4645_v57, %v6202_v48 }
 0x4fe   : > { %3303 = vperm.xlu1 %4310, %v2772_v0   ;;  %3323 = vperm.xlu0 %4325, %v6303_v2  }
 0x4ff   : > { %v2711_v58 = vpop.xlane.xlu0 %2710 }
 0x500   : > { %4650 = vrcp.f32 %v2711_v58  ;;  %v4683_v58 = vld [vmem:[%s5536_s22 + $0x18] sm:$0xff] }
 0x501   : > { %v2713_v44 = vpop.xlane.xlu1 %2712 }
 0x502   : > { %4311 = vset.pattern.permute.xlu1 %v5159_v8  ;;  %4327 = vset.pattern.permute.xlu0 %v5160_v50  ;;  %v4647_v28 = vpop.eup %4646  ;;  %4652 = vrcp.f32 %v2713_v44 }
 0x503   : > { %2835 = vperm.xlu1 %4311, %v2773_v56   ;;  %3071 = vperm.xlu0 %4327, %v6312_v26   ;;  %v6368_v61 = vmul.f32 %v4647_v28, %v6207_v11  ;;  %v4685_v28 = vld [vmem:[%s5543_s16 + $0x18] sm:$0xff] }
 0x504   : > { %v4649_v52 = vpop.eup %4648 }
 0x505   : > { %v6379_v23 = vmul.f32 %v4649_v52, %v6210_v34 }
 0x507   : > { %4312 = vset.pattern.permute.xlu1 %v5160_v50  ;;  %4329 = vset.pattern.permute.xlu0 %v5159_v8  ;;  %v2715_v32 = vpop.xlane.xlu0 %2714 }
 0x508   : > { %3051 = vperm.xlu1 %4312, %v2773_v56   ;;  %2865 = vperm.xlu0 %4329, %v6318_v14   ;;  %4654 = vrcp.f32 %v2715_v32 }
 0x509   : > { %v2717_v54 = vpop.xlane.xlu1 %2716 }
 0x50a   : > { %v4651_v0 = vpop.eup %4650  ;;  %4656 = vrcp.f32 %v2717_v54 }
 0x50c   : > { %4314 = vset.pattern.permute.xlu1 %v5159_v8  ;;  %4331 = vset.pattern.permute.xlu0 %v5161_v24  ;;  %v4653_v31 = vpop.eup %4652 }
 0x50d   : > { %2840 = vperm.xlu1 %4314, %v6282_v62   ;;  %3331 = vperm.xlu0 %4331, %v6318_v14  }
 0x50f   : > { %v6363_v48 = vpop.xlane.xlu0 %2718 }
 0x510   : > { %4658 = vrcp.f32 %v6363_v48 }
 0x511   : > { %4316 = vset.pattern.permute.xlu1 %v5161_v24  ;;  %4333 = vset.pattern.permute.xlu0 %v5160_v50  ;;  %v6365_v19 = vpop.xlane.xlu1 %2720 }
 0x512   : > { %3311 = vperm.xlu1 %4316, %v6282_v62   ;;  %3079 = vperm.xlu0 %4333, %v6328_v39   ;;  %v6399_v62 = vmul.f32 %v4651_v0, %v6215_v38  ;;  %v4655_v54 = vpop.eup %4654  ;;  %4660 = vrcp.f32 %v6365_v19 }
 0x516   : > { %4318 = vset.pattern.permute.xlu1 %v5160_v50  ;;  %4335 = vset.pattern.permute.xlu0 %v5159_v8 }
 0x517   : > { %3059 = vperm.xlu1 %4318, %v6288_v21   ;;  %2875 = vperm.xlu0 %4335, %v6335_v18   ;;  %v6372_v4 = vpop.xlane.xlu0 %2722 }
 0x518   : > { %4662 = vrcp.f32 %v6372_v4 }
 0x519   : > { %v6374_v13 = vpop.xlane.xlu1 %2724 }
 0x51a   : > { %4664 = vrcp.f32 %v6374_v13  ;;  %v4698_v13 = vld [vmem:[%s5528_s26 + $0x40] sm:$0xff] }
 0x51b   : > { %4320 = vset.pattern.permute.xlu1 %v5159_v8  ;;  %4337 = vset.pattern.permute.xlu0 %v5161_v24 }
 0x51c   : > { %2850 = vperm.xlu1 %4320, %v6297_v29   ;;  %3339 = vperm.xlu0 %4337, %v6335_v18  }
 0x51f   : > { %v6381_v11 = vpop.xlane.xlu0 %2726 }
 0x520   : > { %4322 = vset.pattern.permute.xlu1 %v5161_v24  ;;  %4339 = vset.pattern.permute.xlu0 %v5160_v50  ;;  %4666 = vrcp.f32 %v6381_v11 }
 0x521   : > { %3319 = vperm.xlu1 %4322, %v6297_v29   ;;  %3087 = vperm.xlu0 %4339, %v6346_v3   ;;  %v6383_v33 = vpop.xlane.xlu1 %2728  ;;  %v4677_v29 = vld [vmem:[%s5528_s26 + $0x8] sm:$0xff] }
 0x522   : > { %4668 = vrcp.f32 %v6383_v33 }
 0x525   : > { %4324 = vset.pattern.permute.xlu1 %v5160_v50  ;;  %4341 = vset.pattern.permute.xlu0 %v5159_v8 }
 0x526   : > { %3067 = vperm.xlu1 %4324, %v6303_v2   ;;  %2885 = vperm.xlu0 %4341, %v6353_v45   ;;  %v6409_v2 = vmul.f32 %v4653_v31, %v6218_v53 }
 0x527   : > { %v6389_v15 = vpop.xlane.xlu0 %2730 }
 0x528   : > { %4670 = vrcp.f32 %v6389_v15  ;;  %v4713_v15 = vld [vmem:[%s5536_s22 + $0x68] sm:$0xff] }
 0x529   : > { %v6391_v34 = vpop.xlane.xlu1 %2732 }
 0x52a   : > { %4326 = vset.pattern.permute.xlu1 %v5159_v8  ;;  %4343 = vset.pattern.permute.xlu0 %v5161_v24  ;;  %4672 = vrcp.f32 %v6391_v34 }
 0x52b   : > { %2860 = vperm.xlu1 %4326, %v6312_v26   ;;  %3347 = vperm.xlu0 %4343, %v6353_v45  }
 0x52f   : > { %4328 = vset.pattern.permute.xlu1 %v5161_v24  ;;  %4345 = vset.pattern.permute.xlu0 %v5160_v50 }
 0x530   : > { %3327 = vperm.xlu1 %4328, %v6312_v26   ;;  %3095 = vperm.xlu0 %4345, %v6368_v61   ;;  %v4678_v26 = vld [vmem:[%s5543_s16] sm:$0xff] }
 0x534   : > { %4330 = vset.pattern.permute.xlu1 %v5160_v50  ;;  %4347 = vset.pattern.permute.xlu0 %v5159_v8 }
 0x535   : > { %3075 = vperm.xlu1 %4330, %v6318_v14   ;;  %2895 = vperm.xlu0 %4347, %v6379_v23  }
 0x539   : > { %4332 = vset.pattern.permute.xlu1 %v5159_v8  ;;  %4349 = vset.pattern.permute.xlu0 %v5161_v24 }
 0x53a   : > { %2870 = vperm.xlu1 %4332, %v6328_v39   ;;  %3355 = vperm.xlu0 %4349, %v6379_v23  }
 0x53c   : > { %v3024_v47 = vpop.permute.xlu1 %3023  ;;  %v2801_v56 = vpop.permute.xlu0 %2800 }
 0x53d   : > { %v3150_v27 = vmul.f32 %v4674_v55, %v3024_v47  ;;  %v3151_v21 = vmul.f32 %v4675_v5, %v3024_v47  ;;  %v2958_v63 = vmul.f32 %v4676_v43, %v2801_v56  ;;  %v2959_v40 = vmul.f32 %v4677_v29, %v2801_v56  ;;  %v4686_v29 = vld [vmem:[%s5536_s22 + $0x20] sm:$0xff] }
 0x53e   : > { %4334 = vset.pattern.permute.xlu1 %v5161_v24  ;;  %4351 = vset.pattern.permute.xlu0 %v5160_v50  ;;  %v6435_v5 = vmul.f32 %v4655_v54, %v6223_v9 }
 0x53f   : > { %3335 = vperm.xlu1 %4334, %v6328_v39   ;;  %3103 = vperm.xlu0 %4351, %v6399_v62   ;;  %v3214_v30 = vadd.f32 %v3150_v27, %v2958_v63  ;;  %v3215_v10 = vadd.f32 %v3151_v21, %v2959_v40  ;;  %v4657_v21 = vpop.eup %4656 }
 0x540   : > { %v6447_v9 = vmul.f32 %v4657_v21, %v6226_v35  ;;  %v4689_v35 = vld [vmem:[%s5528_s26 + $0x28] sm:$0xff] }
 0x541   : > { %v2806_v38 = vpop.permute.xlu1 %2805  ;;  %v3280_v25 = vpop.permute.xlu0 %3279 }
 0x542   : > { %v3406_v36 = vmul.f32 %v4678_v26, %v3280_v25  ;;  %v3407_v14 = vmul.f32 %v4679_v51, %v3280_v25  ;;  %v2960_v22 = vmul.f32 %v4680_v60, %v2806_v38  ;;  %v2961_v6 = vmul.f32 %v4681_v1, %v2806_v38  ;;  %v4687_v38 = vld [vmem:[%s5536_s22 + $0x28] sm:$0xff]  ;;  %v4690_v51 = vld [vmem:[%s5543_s16 + $0x20] sm:$0xff] }
 0x543   : > { %4336 = vset.pattern.permute.xlu1 %v5160_v50  ;;  %4353 = vset.pattern.permute.xlu0 %v5159_v8 }
 0x544   : > { %v3470_v17 = vadd.f32 %v3406_v36, %v3214_v30  ;;  %v3471_v42 = vadd.f32 %v3407_v14, %v3215_v10  ;;  %3083 = vperm.xlu1 %4336, %v6335_v18   ;;  %2905 = vperm.xlu0 %4353, %v6409_v2   ;;  %v4684_v18 = vld [vmem:[%s5543_s16 + $0x10] sm:$0xff] }
 0x546   : > { %3534 = vst [vmem:[%s6418_s15] sm:$0xff] %v3470_v17  ;;  %3535 = vst [vmem:[%s6418_s15 + $0x8] sm:$0xff] %v3471_v42  ;;  %v3284_v53 = vpop.permute.xlu1 %3283  ;;  %v3028_v39 = vpop.permute.xlu0 %3027  ;;  %v4691_v17 = vld [vmem:[%s5543_s16 + $0x28] sm:$0xff] }
 0x547   : > { %v3152_v57 = vmul.f32 %v4682_v7, %v3028_v39  ;;  %v3153_v44 = vmul.f32 %v4683_v58, %v3028_v39  ;;  %v3408_v32 = vmul.f32 %v4684_v18, %v3284_v53  ;;  %v3409_v52 = vmul.f32 %v4685_v28, %v3284_v53  ;;  %v4692_v58 = vld [vmem:[%s5528_s26 + $0x30] sm:$0xff]  ;;  %v4693_v18 = vld [vmem:[%s5528_s26 + $0x38] sm:$0xff] }
 0x548   : > { %4338 = vset.pattern.permute.xlu1 %v5159_v8  ;;  %4355 = vset.pattern.permute.xlu0 %v5161_v24  ;;  %v4695_v28 = vld [vmem:[%s5536_s22 + $0x38] sm:$0xff] }
 0x549   : > { %v3216_v0 = vadd.f32 %v3152_v57, %v2960_v22  ;;  %v3217_v47 = vadd.f32 %v3153_v44, %v2961_v6  ;;  %2880 = vperm.xlu1 %4338, %v6346_v3   ;;  %3363 = vperm.xlu0 %4355, %v6409_v2  }
 0x54b   : > { %v3472_v56 = vadd.f32 %v3408_v32, %v3216_v0  ;;  %v3473_v55 = vadd.f32 %v3409_v52, %v3217_v47  ;;  %v2811_v27 = vpop.permute.xlu1 %2810  ;;  %v6432_v31 = vpop.permute.xlu0 %3291  ;;  %v4694_v32 = vld [vmem:[%s5536_s22 + $0x30] sm:$0xff] }
 0x54c   : > { %v2963_v30 = vmul.f32 %v4689_v35, %v2811_v27  ;;  %v4696_v0 = vld [vmem:[%s5543_s16 + $0x30] sm:$0xff] }
 0x54d   : > { %3536 = vst [vmem:[%s6418_s15 + $0x10] sm:$0xff] %v3472_v56  ;;  %3537 = vst [vmem:[%s6418_s15 + $0x18] sm:$0xff] %v3473_v55  ;;  %4340 = vset.pattern.permute.xlu1 %v5161_v24  ;;  %4357 = vset.pattern.permute.xlu0 %v5160_v50 }
 0x54e   : > { %3343 = vperm.xlu1 %4340, %v6346_v3   ;;  %3111 = vperm.xlu0 %4357, %v6435_v5   ;;  %v4688_v3 = vld [vmem:[%s5528_s26 + $0x20] sm:$0xff] }
 0x54f   : > { %v2962_v48 = vmul.f32 %v4688_v3, %v2811_v27 }
 0x550   : > { %v3032_v43 = vpop.permute.xlu1 %3031  ;;  %v6444_v63 = vpop.permute.xlu0 %3039 }
 0x551   : > { %v3154_v40 = vmul.f32 %v4686_v29, %v3032_v43  ;;  %v3155_v25 = vmul.f32 %v4687_v38, %v3032_v43 }
 0x552   : > { %4342 = vset.pattern.permute.xlu1 %v5160_v50  ;;  %4359 = vset.pattern.permute.xlu0 %v5159_v8 }
 0x553   : > { %3091 = vperm.xlu1 %4342, %v6353_v45   ;;  %2915 = vperm.xlu0 %4359, %v6447_v9   ;;  %v3218_v26 = vadd.f32 %v3154_v40, %v2962_v48  ;;  %v3219_v36 = vadd.f32 %v3155_v25, %v2963_v30  ;;  %v4659_v45 = vpop.eup %4658  ;;  %v4701_v48 = vld [vmem:[%s5536_s22 + $0x48] sm:$0xff] }
 0x554   : > { %v6471_v1 = vmul.f32 %v4659_v45, %v6231_v46  ;;  %v4661_v6 = vpop.eup %4660  ;;  %v3159_v35 = vmul.f32 %v4701_v48, %v6444_v63 }
 0x555   : > { %v3288_v19 = vpop.permute.xlu1 %3287  ;;  %v6458_v10 = vpop.permute.xlu0 %3299  ;;  %v6481_v46 = vmul.f32 %v4661_v6, %v6234_v20  ;;  %v4697_v20 = vld [vmem:[%s5543_s16 + $0x38] sm:$0xff]  ;;  %v4704_v6 = vld [vmem:[%s5528_s26 + $0x50] sm:$0xff] }
 0x556   : > { %v3410_v14 = vmul.f32 %v4690_v51, %v3288_v19  ;;  %v3411_v42 = vmul.f32 %v4691_v17, %v3288_v19  ;;  %v3413_v47 = vmul.f32 %v4697_v20, %v6432_v31  ;;  %v4663_v40 = vpop.eup %4662  ;;  %v4702_v51 = vld [vmem:[%s5543_s16 + $0x40] sm:$0xff]  ;;  %v4703_v17 = vld [vmem:[%s5543_s16 + $0x48] sm:$0xff] }
 0x557   : > { %4344 = vset.pattern.permute.xlu1 %v5159_v8  ;;  %4361 = vset.pattern.permute.xlu0 %v5161_v24  ;;  %v6511_v19 = vmul.f32 %v4663_v40, %v6239_v59  ;;  %v4711_v40 = vld [vmem:[%s5528_s26 + $0x68] sm:$0xff] }
 0x558   : > { %v3474_v53 = vadd.f32 %v3410_v14, %v3218_v26  ;;  %v3475_v39 = vadd.f32 %v3411_v42, %v3219_v36  ;;  %2890 = vperm.xlu1 %4344, %v6368_v61   ;;  %3371 = vperm.xlu0 %4361, %v6447_v9  }
 0x55a   : > { %3538 = vst [vmem:[%s6418_s15 + $0x20] sm:$0xff] %v3474_v53  ;;  %3539 = vst [vmem:[%s6418_s15 + $0x28] sm:$0xff] %v3475_v39  ;;  %v2816_v60 = vpop.permute.xlu1 %2815  ;;  %v6468_v22 = vpop.permute.xlu0 %3047 }
 0x55b   : > { %v2964_v44 = vmul.f32 %v4692_v58, %v2816_v60  ;;  %v2965_v4 = vmul.f32 %v4693_v18, %v2816_v60  ;;  %v4665_v53 = vpop.eup %4664  ;;  %v4705_v58 = vld [vmem:[%s5528_s26 + $0x58] sm:$0xff] }
 0x55c   : > { %4346 = vset.pattern.permute.xlu1 %v5161_v24  ;;  %4363 = vset.pattern.permute.xlu0 %v5160_v50  ;;  %v6525_v60 = vmul.f32 %v4665_v53, %v6242_v41 }
 0x55d   : > { %3351 = vperm.xlu1 %4346, %v6368_v61   ;;  %3119 = vperm.xlu0 %4363, %v6471_v1   ;;  %v3412_v61 = vmul.f32 %v4696_v0, %v6432_v31  ;;  %v4699_v31 = vld [vmem:[%s5528_s26 + $0x48] sm:$0xff] }
 0x55f   : > { %v3036_v7 = vpop.permute.xlu1 %3035  ;;  %v6478_v57 = vpop.permute.xlu0 %3307 }
 0x560   : > { %v3156_v54 = vmul.f32 %v4694_v32, %v3036_v7  ;;  %v3157_v52 = vmul.f32 %v4695_v28, %v3036_v7  ;;  %v4708_v32 = vld [vmem:[%s5543_s16 + $0x50] sm:$0xff]  ;;  %v4709_v28 = vld [vmem:[%s5543_s16 + $0x58] sm:$0xff] }
 0x561   : > { %4348 = vset.pattern.permute.xlu1 %v5160_v50  ;;  %4365 = vset.pattern.permute.xlu0 %v5159_v8 }
 0x562   : > { %v3220_v56 = vadd.f32 %v3156_v54, %v2964_v44  ;;  %v3221_v55 = vadd.f32 %v3157_v52, %v2965_v4  ;;  %3099 = vperm.xlu1 %4348, %v6379_v23   ;;  %2925 = vperm.xlu0 %4365, %v6481_v46   ;;  %v4700_v23 = vld [vmem:[%s5536_s22 + $0x40] sm:$0xff]  ;;  %v4706_v44 = vld [vmem:[%s5536_s22 + $0x50] sm:$0xff]  ;;  %v4707_v4 = vld [vmem:[%s5536_s22 + $0x58] sm:$0xff]  ;;  %v3416_v54 = vmul.f32 %v4708_v32, %v6458_v10 }
 0x563   : > { %v3158_v3 = vmul.f32 %v4700_v23, %v6444_v63  ;;  %v3417_v52 = vmul.f32 %v4709_v28, %v6458_v10  ;;  %v4710_v10 = vld [vmem:[%s5528_s26 + $0x60] sm:$0xff] }
 0x564   : > { %v3476_v27 = vadd.f32 %v3412_v61, %v3220_v56  ;;  %v3477_v21 = vadd.f32 %v3413_v47, %v3221_v55  ;;  %v2821_v43 = vpop.permute.xlu1 %2820  ;;  %v6496_v29 = vpop.permute.xlu0 %3055 }
 0x565   : > { %v2966_v38 = vmul.f32 %v4698_v13, %v2821_v43  ;;  %v2967_v25 = vmul.f32 %v4699_v31, %v2821_v43  ;;  %v3163_v31 = vmul.f32 %v4713_v15, %v6468_v22 }
 0x566   : > { %3540 = vst [vmem:[%s6418_s15 + $0x30] sm:$0xff] %v3476_v27  ;;  %3541 = vst [vmem:[%s6418_s15 + $0x38] sm:$0xff] %v3477_v21  ;;  %4350 = vset.pattern.permute.xlu1 %v5159_v8  ;;  %4367 = vset.pattern.permute.xlu0 %v5161_v24 }
 0x567   : > { %2900 = vperm.xlu1 %4350, %v6399_v62   ;;  %3379 = vperm.xlu0 %4367, %v6481_v46   ;;  %v3222_v26 = vadd.f32 %v3158_v3, %v2966_v38  ;;  %v3223_v36 = vadd.f32 %v3159_v35, %v2967_v25 }
 0x569   : > { %v3296_v30 = vpop.permute.xlu1 %3295  ;;  %v6515_v45 = vpop.permute.xlu0 %2845 }
 0x56a   : > { %v3414_v14 = vmul.f32 %v4702_v51, %v3296_v30  ;;  %v3415_v42 = vmul.f32 %v4703_v17, %v3296_v30  ;;  %v4714_v30 = vld [vmem:[%s5543_s16 + $0x60] sm:$0xff] }
 0x56b   : > { %4352 = vset.pattern.permute.xlu1 %v5161_v24  ;;  %4369 = vset.pattern.permute.xlu0 %v5160_v50 }
 0x56c   : > { %v3478_v59 = vadd.f32 %v3414_v14, %v3222_v26  ;;  %v3479_v63 = vadd.f32 %v3415_v42, %v3223_v36  ;;  %3359 = vperm.xlu1 %4352, %v6399_v62   ;;  %3127 = vperm.xlu0 %4369, %v6511_v19   ;;  %v4715_v26 = vld [vmem:[%s5543_s16 + $0x68] sm:$0xff]  ;;  %v4716_v42 = vld [vmem:[%s5528_s26 + $0x70] sm:$0xff] }
 0x56e   : > { %3542 = vst [vmem:[%s6418_s15 + $0x40] sm:$0xff] %v3478_v59  ;;  %3543 = vst [vmem:[%s6418_s15 + $0x48] sm:$0xff] %v3479_v63  ;;  %v2826_v39 = vpop.permute.xlu1 %2825  ;;  %v6528_v11 = vpop.permute.xlu0 %3315  ;;  %v4717_v59 = vld [vmem:[%s5528_s26 + $0x78] sm:$0xff] }
 0x56f   : > { %v2968_v7 = vmul.f32 %v4704_v6, %v2826_v39  ;;  %v2969_v41 = vmul.f32 %v4705_v58, %v2826_v39 }
 0x570   : > { %4354 = vset.pattern.permute.xlu1 %v5160_v50  ;;  %4371 = vset.pattern.permute.xlu0 %v5159_v8 }
 0x571   : > { %3107 = vperm.xlu1 %4354, %v6409_v2   ;;  %2935 = vperm.xlu0 %4371, %v6525_v60   ;;  %v4667_v2 = vpop.eup %4666 }
 0x572   : > { %v6549_v27 = vmul.f32 %v4667_v2, %v6247_v16  ;;  %v4669_v21 = vpop.eup %4668  ;;  %v4712_v16 = vld [vmem:[%s5536_s22 + $0x60] sm:$0xff] }
 0x573   : > { %v3044_v62 = vpop.permute.xlu1 %3043  ;;  %v6544_v20 = vpop.permute.xlu0 %3063  ;;  %v3162_v38 = vmul.f32 %v4712_v16, %v6468_v22  ;;  %v6567_v3 = vmul.f32 %v4669_v21, %v6250_v12 }
 0x574   : > { %v3160_v18 = vmul.f32 %v4706_v44, %v3044_v62  ;;  %v3161_v33 = vmul.f32 %v4707_v4, %v3044_v62  ;;  %v4671_v17 = vpop.eup %4670  ;;  %v4718_v62 = vld [vmem:[%s5536_s22 + $0x70] sm:$0xff] }
 0x575   : > { %4356 = vset.pattern.permute.xlu1 %v5159_v8  ;;  %4373 = vset.pattern.permute.xlu0 %v5161_v24 }
 0x576   : > { %v3224_v0 = vadd.f32 %v3160_v18, %v2968_v7  ;;  %v3225_v61 = vadd.f32 %v3161_v33, %v2969_v41  ;;  %2910 = vperm.xlu1 %4356, %v6435_v5   ;;  %3387 = vperm.xlu0 %4373, %v6525_v60   ;;  %v4719_v7 = vld [vmem:[%s5536_s22 + $0x78] sm:$0xff]  ;;  %v4720_v41 = vld [vmem:[%s5543_s16 + $0x70] sm:$0xff] }
 0x577   : > { %v3420_v44 = vmul.f32 %v4720_v41, %v6478_v57  ;;  %v4721_v18 = vld [vmem:[%s5543_s16 + $0x78] sm:$0xff]  ;;  %v4735_v41 = vld [vmem:[%s5528_s26 + $0xa8] sm:$0xff] }
 0x578   : > { %v3480_v47 = vadd.f32 %v3416_v54, %v3224_v0  ;;  %v3481_v56 = vadd.f32 %v3417_v52, %v3225_v61  ;;  %v2831_v55 = vpop.permute.xlu1 %2830  ;;  %v6564_v25 = vpop.permute.xlu0 %2855  ;;  %v3421_v4 = vmul.f32 %v4721_v18, %v6478_v57  ;;  %v4722_v57 = vld [vmem:[%s5528_s26 + $0x80] sm:$0xff] }
 0x579   : > { %v2970_v43 = vmul.f32 %v4710_v10, %v2831_v55  ;;  %v2971_v13 = vmul.f32 %v4711_v40, %v2831_v55  ;;  %v4725_v55 = vld [vmem:[%s5536_s22 + $0x88] sm:$0xff] }
 0x57a   : > { %3544 = vst [vmem:[%s6418_s15 + $0x50] sm:$0xff] %v3480_v47  ;;  %3545 = vst [vmem:[%s6418_s15 + $0x58] sm:$0xff] %v3481_v56  ;;  %4358 = vset.pattern.permute.xlu1 %v5161_v24  ;;  %4375 = vset.pattern.permute.xlu0 %v5160_v50  ;;  %v4723_v47 = vld [vmem:[%s5528_s26 + $0x88] sm:$0xff]  ;;  %v3167_v21 = vmul.f32 %v4725_v55, %v6496_v29 }
 0x57b   : > { %3367 = vperm.xlu1 %4358, %v6435_v5   ;;  %3135 = vperm.xlu0 %4375, %v6549_v27   ;;  %v3226_v48 = vadd.f32 %v3162_v38, %v2970_v43  ;;  %v3227_v35 = vadd.f32 %v3163_v31, %v2971_v13  ;;  %v4726_v13 = vld [vmem:[%s5543_s16 + $0x80] sm:$0xff]  ;;  %v4727_v38 = vld [vmem:[%s5543_s16 + $0x88] sm:$0xff] }
 0x57d   : > { %v3304_v23 = vpop.permute.xlu1 %3303  ;;  %v6578_v12 = vpop.permute.xlu0 %3323 }
 0x57e   : > { %v3418_v5 = vmul.f32 %v4714_v30, %v3304_v23  ;;  %v3419_v36 = vmul.f32 %v4715_v26, %v3304_v23  ;;  %v4729_v30 = vld [vmem:[%s5528_s26 + $0x98] sm:$0xff]  ;;  %v4730_v26 = vld [vmem:[%s5536_s22 + $0x90] sm:$0xff] }
 0x57f   : > { %4360 = vset.pattern.permute.xlu1 %v5160_v50  ;;  %4377 = vset.pattern.permute.xlu0 %v5159_v8 }
 0x580   : > { %v3482_v22 = vadd.f32 %v3418_v5, %v3226_v48  ;;  %v3483_v51 = vadd.f32 %v3419_v36, %v3227_v35  ;;  %3115 = vperm.xlu1 %4360, %v6447_v9   ;;  %2945 = vperm.xlu0 %4377, %v6567_v3   ;;  %v6585_v9 = vmul.f32 %v4671_v17, %v6253_v37  ;;  %v4673_v37 = vpop.eup %4672  ;;  %v4728_v48 = vld [vmem:[%s5528_s26 + $0x90] sm:$0xff] }
 0x581   : > { %v6602_v52 = vmul.f32 %v4673_v37, %v6256_v49  ;;  %v4724_v49 = vld [vmem:[%s5536_s22 + $0x80] sm:$0xff]  ;;  %v2976_v35 = vmul.f32 %v4728_v48, %v6515_v45  ;;  %v2977_v5 = vmul.f32 %v4729_v30, %v6515_v45  ;;  %v4737_v37 = vld [vmem:[%s5536_s22 + $0xa8] sm:$0xff] }
 0x582   : > { %3546 = vst [vmem:[%s6418_s15 + $0x60] sm:$0xff] %v3482_v22  ;;  %3547 = vst [vmem:[%s6418_s15 + $0x68] sm:$0xff] %v3483_v51  ;;  %v2836_v14 = vpop.permute.xlu1 %2835  ;;  %v6589_v39 = vpop.permute.xlu0 %3071  ;;  %v3166_v56 = vmul.f32 %v4724_v49, %v6496_v29  ;;  %v4731_v22 = vld [vmem:[%s5536_s22 + $0x98] sm:$0xff]  ;;  %v3171_v18 = vmul.f32 %v4737_v37, %v6544_v20 }
 0x583   : > { %v2972_v53 = vmul.f32 %v4716_v42, %v2836_v14  ;;  %v2973_v63 = vmul.f32 %v4717_v59, %v2836_v14  ;;  %v4732_v14 = vld [vmem:[%s5543_s16 + $0x90] sm:$0xff]  ;;  %v4755_v37 = vld [vmem:[%s5536_s22 + $0xd8] sm:$0xff] }
 0x584   : > { %4362 = vset.pattern.permute.xlu1 %v5159_v8  ;;  %4379 = vset.pattern.permute.xlu0 %v5161_v24  ;;  %v3424_v17 = vmul.f32 %v4732_v14, %v6528_v11 }
 0x585   : > { %2920 = vperm.xlu1 %4362, %v6471_v1   ;;  %3395 = vperm.xlu0 %4379, %v6567_v3  }
 0x587   : > { %v3052_v34 = vpop.permute.xlu1 %3051  ;;  %v6606_v0 = vpop.permute.xlu0 %2865 }
 0x588   : > { %v3164_v6 = vmul.f32 %v4718_v62, %v3052_v34  ;;  %v3165_v58 = vmul.f32 %v4719_v7, %v3052_v34  ;;  %v4733_v34 = vld [vmem:[%s5543_s16 + $0x98] sm:$0xff]  ;;  %v4734_v7 = vld [vmem:[%s5528_s26 + $0xa0] sm:$0xff] }
 0x589   : > { %4364 = vset.pattern.permute.xlu1 %v5161_v24  ;;  %4381 = vset.pattern.permute.xlu0 %v5160_v50  ;;  %v3425_v42 = vmul.f32 %v4733_v34, %v6528_v11  ;;  %v4736_v11 = vld [vmem:[%s5536_s22 + $0xa0] sm:$0xff] }
 0x58a   : > { %v3228_v33 = vadd.f32 %v3164_v6, %v2972_v53  ;;  %v3229_v32 = vadd.f32 %v3165_v58, %v2973_v63  ;;  %3375 = vperm.xlu1 %4364, %v6471_v1   ;;  %3143 = vperm.xlu0 %4381, %v6585_v9  }
 0x58c   : > { %v3484_v54 = vadd.f32 %v3420_v44, %v3228_v33  ;;  %v3485_v2 = vadd.f32 %v3421_v4, %v3229_v32  ;;  %v2841_v28 = vpop.permute.xlu1 %2840  ;;  %v6622_v15 = vpop.permute.xlu0 %3331 }
 0x58d   : > { %v2974_v61 = vmul.f32 %v4722_v57, %v2841_v28  ;;  %v2975_v1 = vmul.f32 %v4723_v47, %v2841_v28  ;;  %v4739_v57 = vld [vmem:[%s5543_s16 + $0xa8] sm:$0xff] }
 0x58e   : > { %3548 = vst [vmem:[%s6418_s15 + $0x70] sm:$0xff] %v3484_v54  ;;  %3549 = vst [vmem:[%s6418_s15 + $0x78] sm:$0xff] %v3485_v2  ;;  %4366 = vset.pattern.permute.xlu1 %v5160_v50  ;;  %4382 = vset.pattern.permute.xlu0 %v5159_v8  ;;  %v4738_v2 = vld [vmem:[%s5543_s16 + $0xa0] sm:$0xff] }
 0x58f   : > { %3123 = vperm.xlu1 %4366, %v6481_v46   ;;  %2955 = vperm.xlu0 %4382, %v6602_v52   ;;  %v3230_v43 = vadd.f32 %v3166_v56, %v2974_v61  ;;  %v3231_v40 = vadd.f32 %v3167_v21, %v2975_v1  ;;  %v4740_v1 = vld [vmem:[%s5528_s26 + $0xb0] sm:$0xff]  ;;  %v4741_v56 = vld [vmem:[%s5528_s26 + $0xb8] sm:$0xff] }
 0x590   : > { %v2980_v49 = vmul.f32 %v4740_v1, %v6564_v25  ;;  %v2981_v55 = vmul.f32 %v4741_v56, %v6564_v25  ;;  %v4759_v1 = vld [vmem:[%s5528_s26 + $0xe8] sm:$0xff] }
 0x591   : > { %v3312_v10 = vpop.permute.xlu1 %3311  ;;  %v6640_v45 = vpop.permute.xlu0 %3079  ;;  %v4761_v56 = vld [vmem:[%s5536_s22 + $0xe8] sm:$0xff] }
 0x592   : > { %v3422_v16 = vmul.f32 %v4726_v13, %v3312_v10  ;;  %v3423_v46 = vmul.f32 %v4727_v38, %v3312_v10  ;;  %v4742_v10 = vld [vmem:[%s5536_s22 + $0xb0] sm:$0xff] }
 0x593   : > { %4368 = vset.pattern.permute.xlu1 %v5159_v8  ;;  %4385 = vset.pattern.permute.xlu0 %v5161_v24 }
 0x594   : > { %v3486_v31 = vadd.f32 %v3422_v16, %v3230_v43  ;;  %v3487_v29 = vadd.f32 %v3423_v46, %v3231_v40  ;;  %2930 = vperm.xlu1 %4368, %v6511_v19   ;;  %3403 = vperm.xlu0 %4385, %v6602_v52   ;;  %v4743_v40 = vld [vmem:[%s5536_s22 + $0xb8] sm:$0xff]  ;;  %v4744_v16 = vld [vmem:[%s5543_s16 + $0xb0] sm:$0xff] }
 0x595   : > { %v3428_v38 = vmul.f32 %v4744_v16, %v6578_v12  ;;  %v4745_v46 = vld [vmem:[%s5543_s16 + $0xb8] sm:$0xff]  ;;  %v4762_v16 = vld [vmem:[%s5543_s16 + $0xe0] sm:$0xff] }
 0x596   : > { %3550 = vst [vmem:[%s6418_s15 + $0x80] sm:$0xff] %v3486_v31  ;;  %3551 = vst [vmem:[%s6418_s15 + $0x88] sm:$0xff] %v3487_v29  ;;  %v3060_v23 = vpop.permute.xlu1 %3059  ;;  %v6652_v4 = vpop.permute.xlu0 %2875  ;;  %v3429_v31 = vmul.f32 %v4745_v46, %v6578_v12  ;;  %v4748_v12 = vld [vmem:[%s5536_s22 + $0xc0] sm:$0xff] }
 0x597   : > { %v3168_v36 = vmul.f32 %v4730_v26, %v3060_v23  ;;  %v3169_v51 = vmul.f32 %v4731_v22, %v3060_v23 }
 0x598   : > { %4370 = vset.pattern.permute.xlu1 %v5161_v24 }
 0x599   : > { %v3232_v53 = vadd.f32 %v3168_v36, %v2976_v35  ;;  %v3233_v59 = vadd.f32 %v3169_v51, %v2977_v5  ;;  %3383 = vperm.xlu1 %4370, %v6511_v19   ;;  %v3170_v19 = vmul.f32 %v4736_v11, %v6544_v20  ;;  %v4746_v5 = vld [vmem:[%s5528_s26 + $0xc0] sm:$0xff]  ;;  %v4747_v36 = vld [vmem:[%s5528_s26 + $0xc8] sm:$0xff] }
 0x59a   : > { %v4749_v51 = vld [vmem:[%s5536_s22 + $0xc8] sm:$0xff] }
 0x59b   : > { %v3488_v63 = vadd.f32 %v3424_v17, %v3232_v53  ;;  %v3489_v62 = vadd.f32 %v3425_v42, %v3233_v59  ;;  %v2851_v6 = vpop.permute.xlu1 %2850  ;;  %v6664_v21 = vpop.permute.xlu0 %3339  ;;  %v3175_v14 = vmul.f32 %v4749_v51, %v6589_v39  ;;  %v4750_v53 = vld [vmem:[%s5543_s16 + $0xc0] sm:$0xff]  ;;  %v4769_v51 = vld [vmem:[%s5543_s16 + $0xf8] sm:$0xff] }
 0x59c   : > { %v2978_v58 = vmul.f32 %v4734_v7, %v2851_v6  ;;  %v2979_v44 = vmul.f32 %v4735_v41, %v2851_v6 }
 0x59d   : > { %3552 = vst [vmem:[%s6418_s15 + $0x90] sm:$0xff] %v3488_v63  ;;  %3553 = vst [vmem:[%s6418_s15 + $0x98] sm:$0xff] %v3489_v62  ;;  %4372 = vset.pattern.permute.xlu1 %v5160_v50  ;;  %v4751_v63 = vld [vmem:[%s5543_s16 + $0xc8] sm:$0xff] }
 0x59e   : > { %3131 = vperm.xlu1 %4372, %v6525_v60   ;;  %v3234_v32 = vadd.f32 %v3170_v19, %v2978_v58  ;;  %v3235_v54 = vadd.f32 %v3171_v18, %v2979_v44  ;;  %v4752_v58 = vld [vmem:[%s5528_s26 + $0xd0] sm:$0xff]  ;;  %v4753_v44 = vld [vmem:[%s5528_s26 + $0xd8] sm:$0xff] }
 0x59f   : > { %v2984_v41 = vmul.f32 %v4752_v58, %v6606_v0  ;;  %v2985_v11 = vmul.f32 %v4753_v44, %v6606_v0  ;;  %v4754_v19 = vld [vmem:[%s5536_s22 + $0xd0] sm:$0xff]  ;;  %v4773_v58 = vld [vmem:[%s5536_s22 + $0x108] sm:$0xff] }
 0x5a0   : > { %v3320_v33 = vpop.permute.xlu1 %3319  ;;  %v6674_v30 = vpop.permute.xlu0 %3087 }
 0x5a1   : > { %v3426_v28 = vmul.f32 %v4738_v2, %v3320_v33  ;;  %v3427_v60 = vmul.f32 %v4739_v57, %v3320_v33  ;;  %v4756_v33 = vld [vmem:[%s5543_s16 + $0xd0] sm:$0xff] }
 0x5a2   : > { %4374 = vset.pattern.permute.xlu1 %v5159_v8 }
 0x5a3   : > { %v3490_v61 = vadd.f32 %v3426_v28, %v3234_v32  ;;  %v3491_v47 = vadd.f32 %v3427_v60, %v3235_v54  ;;  %2940 = vperm.xlu1 %4374, %v6549_v27   ;;  %v3432_v32 = vmul.f32 %v4756_v33, %v6622_v15  ;;  %v4757_v54 = vld [vmem:[%s5543_s16 + $0xd8] sm:$0xff] }
 0x5a4   : > { %v3433_v2 = vmul.f32 %v4757_v54, %v6622_v15 }
 0x5a5   : > { %3554 = vst [vmem:[%s6418_s15 + $0xa0] sm:$0xff] %v3490_v61  ;;  %3555 = vst [vmem:[%s6418_s15 + $0xa8] sm:$0xff] %v3491_v47  ;;  %v3068_v20 = vpop.permute.xlu1 %3067 }
 0x5a6   : > { %v3172_v43 = vmul.f32 %v4742_v10, %v3068_v20  ;;  %v3173_v13 = vmul.f32 %v4743_v40, %v3068_v20 }
 0x5a7   : > { %4376 = vset.pattern.permute.xlu1 %v5161_v24 }
 0x5a8   : > { %v3236_v25 = vadd.f32 %v3172_v43, %v2980_v49  ;;  %v3237_v29 = vadd.f32 %v3173_v13, %v2981_v55  ;;  %3391 = vperm.xlu1 %4376, %v6549_v27   ;;  %v3174_v27 = vmul.f32 %v4748_v12, %v6589_v39  ;;  %v3179_v55 = vmul.f32 %v4761_v56, %v6640_v45  ;;  %v4768_v12 = vld [vmem:[%s5543_s16 + $0xf0] sm:$0xff] }
 0x5aa   : > { %v3492_v23 = vadd.f32 %v3428_v38, %v3236_v25  ;;  %v3493_v48 = vadd.f32 %v3429_v31, %v3237_v29  ;;  %v2861_v35 = vpop.permute.xlu1 %2860  ;;  %v4763_v38 = vld [vmem:[%s5543_s16 + $0xe8] sm:$0xff] }
 0x5ab   : > { %v2982_v26 = vmul.f32 %v4746_v5, %v2861_v35  ;;  %v2983_v22 = vmul.f32 %v4747_v36, %v2861_v35  ;;  %v4766_v5 = vld [vmem:[%s5536_s22 + $0xf0] sm:$0xff]  ;;  %v4767_v36 = vld [vmem:[%s5536_s22 + $0xf8] sm:$0xff] }
 0x5ac   : > { %3556 = vst [vmem:[%s6418_s15 + $0xb0] sm:$0xff] %v3492_v23  ;;  %3557 = vst [vmem:[%s6418_s15 + $0xb8] sm:$0xff] %v3493_v48  ;;  %4378 = vset.pattern.permute.xlu1 %v5160_v50  ;;  %v4765_v23 = vld [vmem:[%s5528_s26 + $0xf8] sm:$0xff] }
 0x5ad   : > { %3139 = vperm.xlu1 %4378, %v6567_v3   ;;  %v3238_v34 = vadd.f32 %v3174_v27, %v2982_v26  ;;  %v3239_v42 = vadd.f32 %v3175_v14, %v2983_v22  ;;  %v6689_v3 = vpop.permute.xlu0 %2885  ;;  %v2989_v48 = vmul.f32 %v4765_v23, %v6652_v4  ;;  %v3436_v27 = vmul.f32 %v4768_v12, %v6664_v21 }
 0x5ae   : > { %v3437_v14 = vmul.f32 %v4769_v51, %v6664_v21 }
 0x5af   : > { %v3328_v17 = vpop.permute.xlu1 %3327 }
 0x5b0   : > { %v3430_v59 = vmul.f32 %v4750_v53, %v3328_v17  ;;  %v3431_v62 = vmul.f32 %v4751_v63, %v3328_v17  ;;  %v4770_v63 = vld [vmem:[%s5528_s26 + $0x100] sm:$0xff] }
 0x5b1   : > { %4380 = vset.pattern.permute.xlu1 %v5159_v8  ;;  %v6706_v0 = vpop.permute.xlu0 %3347 }
 0x5b2   : > { %v3494_v6 = vadd.f32 %v3430_v59, %v3238_v34  ;;  %v3495_v7 = vadd.f32 %v3431_v62, %v3239_v42  ;;  %2950 = vperm.xlu1 %4380, %v6585_v9  }
 0x5b4   : > { %3558 = vst [vmem:[%s6418_s15 + $0xc0] sm:$0xff] %v3494_v6  ;;  %3559 = vst [vmem:[%s6418_s15 + $0xc8] sm:$0xff] %v3495_v7  ;;  %v3076_v39 = vpop.permute.xlu1 %3075  ;;  %v4771_v6 = vld [vmem:[%s5528_s26 + $0x108] sm:$0xff] }
 0x5b5   : > { %v3176_v8 = vmul.f32 %v4754_v19, %v3076_v39  ;;  %v3177_v18 = vmul.f32 %v4755_v37, %v3076_v39  ;;  %v6718_v10 = vpop.permute.xlu0 %3095  ;;  %v4772_v39 = vld [vmem:[%s5536_s22 + $0x100] sm:$0xff] }
 0x5b6   : > { %4383 = vset.pattern.permute.xlu1 %v5160_v50  ;;  %v4758_v50 = vld [vmem:[%s5528_s26 + $0xe0] sm:$0xff]  ;;  %v3182_v21 = vmul.f32 %v4772_v39, %v6674_v30 }
 0x5b7   : > { %v3240_v28 = vadd.f32 %v3176_v8, %v2984_v41  ;;  %v3241_v57 = vadd.f32 %v3177_v18, %v2985_v11  ;;  %3147 = vperm.xlu1 %4383, %v6602_v52   ;;  %v4760_v52 = vld [vmem:[%s5536_s22 + $0xe0] sm:$0xff]  ;;  %v3183_v41 = vmul.f32 %v4773_v58, %v6674_v30  ;;  %v4775_v18 = vld [vmem:[%s5543_s16 + $0x108] sm:$0xff]  ;;  %v4776_v30 = vld [vmem:[%s5528_s26 + $0x110] sm:$0xff] }
 0x5b8   : > { %v3178_v15 = vmul.f32 %v4760_v52, %v6640_v45  ;;  %v4764_v45 = vld [vmem:[%s5528_s26 + $0xf0] sm:$0xff]  ;;  %v4774_v8 = vld [vmem:[%s5543_s16 + $0x100] sm:$0xff] }
 0x5b9   : > { %v3496_v60 = vadd.f32 %v3432_v32, %v3240_v28  ;;  %v3497_v61 = vadd.f32 %v3433_v2, %v3241_v57  ;;  %v2871_v47 = vpop.permute.xlu1 %2870  ;;  %v2988_v29 = vmul.f32 %v4764_v45, %v6652_v4  ;;  %v6728_v35 = vpop.permute.xlu0 %2895  ;;  %v2992_v57 = vmul.f32 %v4776_v30, %v6689_v3 }
 0x5ba   : > { %v2986_v20 = vmul.f32 %v4758_v50, %v2871_v47  ;;  %v2987_v49 = vmul.f32 %v4759_v1, %v2871_v47  ;;  %v4778_v47 = vld [vmem:[%s5536_s22 + $0x110] sm:$0xff] }
 0x5bb   : > { %3560 = vst [vmem:[%s6418_s15 + $0xd0] sm:$0xff] %v3496_v60  ;;  %3561 = vst [vmem:[%s6418_s15 + $0xd8] sm:$0xff] %v3497_v61  ;;  %4384 = vset.pattern.permute.xlu1 %v5161_v24  ;;  %v4777_v60 = vld [vmem:[%s5528_s26 + $0x118] sm:$0xff] }
 0x5bc   : > { %3399 = vperm.xlu1 %4384, %v6585_v9   ;;  %v3242_v40 = vadd.f32 %v3178_v15, %v2986_v20  ;;  %v3243_v13 = vadd.f32 %v3179_v55, %v2987_v49  ;;  %v2993_v61 = vmul.f32 %v4777_v60, %v6689_v3  ;;  %v4779_v20 = vld [vmem:[%s5536_s22 + $0x118] sm:$0xff]  ;;  %v4780_v49 = vld [vmem:[%s5543_s16 + $0x110] sm:$0xff] }
 0x5bd   : > { %v6736_v59 = vpop.permute.xlu0 %3355  ;;  %v3440_v52 = vmul.f32 %v4780_v49, %v6706_v0  ;;  %v4781_v15 = vld [vmem:[%s5543_s16 + $0x118] sm:$0xff] }
 0x5be   : > { %v3336_v43 = vpop.permute.xlu1 %3335  ;;  %v3441_v56 = vmul.f32 %v4781_v15, %v6706_v0 }
 0x5bf   : > { %v3434_v24 = vmul.f32 %v4762_v16, %v3336_v43  ;;  %v3435_v9 = vmul.f32 %v4763_v38, %v3336_v43 }
 0x5c1   : > { %v3498_v46 = vadd.f32 %v3434_v24, %v3242_v40  ;;  %v3499_v31 = vadd.f32 %v3435_v9, %v3243_v13  ;;  %v6748_v32 = vpop.permute.xlu0 %3103  ;;  %v4782_v24 = vld [vmem:[%s5528_s26 + $0x120] sm:$0xff]  ;;  %v4783_v9 = vld [vmem:[%s5528_s26 + $0x128] sm:$0xff] }
 0x5c3   : > { %3562 = vst [vmem:[%s6418_s15 + $0xe0] sm:$0xff] %v3498_v46  ;;  %3563 = vst [vmem:[%s6418_s15 + $0xe8] sm:$0xff] %v3499_v31  ;;  %v3084_v25 = vpop.permute.xlu1 %3083  ;;  %v4784_v31 = vld [vmem:[%s5536_s22 + $0x120] sm:$0xff] }
 0x5c4   : > { %v3180_v26 = vmul.f32 %v4766_v5, %v3084_v25  ;;  %v3181_v22 = vmul.f32 %v4767_v36, %v3084_v25  ;;  %v3186_v0 = vmul.f32 %v4784_v31, %v6718_v10  ;;  %v4785_v25 = vld [vmem:[%s5536_s22 + $0x128] sm:$0xff]  ;;  %v4805_v31 = vld [vmem:[%s5543_s16 + $0x158] sm:$0xff] }
 0x5c5   : > { %v6762_v40 = vpop.permute.xlu0 %2905  ;;  %v3187_v45 = vmul.f32 %v4785_v25, %v6718_v10  ;;  %v4788_v10 = vld [vmem:[%s5528_s26 + $0x130] sm:$0xff] }
 0x5c6   : > { %v3244_v17 = vadd.f32 %v3180_v26, %v2988_v29  ;;  %v3245_v4 = vadd.f32 %v3181_v22, %v2989_v48  ;;  %v4786_v26 = vld [vmem:[%s5543_s16 + $0x120] sm:$0xff]  ;;  %v4787_v22 = vld [vmem:[%s5543_s16 + $0x128] sm:$0xff] }
 0x5c8   : > { %v3500_v34 = vadd.f32 %v3436_v27, %v3244_v17  ;;  %v3501_v42 = vadd.f32 %v3437_v14, %v3245_v4  ;;  %v2881_v53 = vpop.permute.xlu1 %2880  ;;  %v2996_v17 = vmul.f32 %v4788_v10, %v6728_v35  ;;  %v4789_v4 = vld [vmem:[%s5528_s26 + $0x138] sm:$0xff] }
 0x5c9   : > { %v2990_v62 = vmul.f32 %v4770_v63, %v2881_v53  ;;  %v2991_v7 = vmul.f32 %v4771_v6, %v2881_v53  ;;  %v6772_v29 = vpop.permute.xlu0 %3363  ;;  %v4790_v53 = vld [vmem:[%s5536_s22 + $0x130] sm:$0xff] }
 0x5ca   : > { %3564 = vst [vmem:[%s6418_s15 + $0xf0] sm:$0xff] %v3500_v34  ;;  %3565 = vst [vmem:[%s6418_s15 + $0xf8] sm:$0xff] %v3501_v42  ;;  %v2997_v34 = vmul.f32 %v4789_v4, %v6728_v35 }
 0x5cb   : > { %v3246_v11 = vadd.f32 %v3182_v21, %v2990_v62  ;;  %v3247_v19 = vadd.f32 %v3183_v41, %v2991_v7  ;;  %v4791_v62 = vld [vmem:[%s5536_s22 + $0x138] sm:$0xff]  ;;  %v4792_v7 = vld [vmem:[%s5543_s16 + $0x130] sm:$0xff] }
 0x5cc   : > { %v3444_v39 = vmul.f32 %v4792_v7, %v6736_v59  ;;  %v4793_v21 = vld [vmem:[%s5543_s16 + $0x138] sm:$0xff] }
 0x5cd   : > { %v3344_v44 = vpop.permute.xlu1 %3343  ;;  %v6782_v42 = vpop.permute.xlu0 %3111  ;;  %v3445_v58 = vmul.f32 %v4793_v21, %v6736_v59 }
 0x5ce   : > { %v3438_v37 = vmul.f32 %v4774_v8, %v3344_v44  ;;  %v3439_v33 = vmul.f32 %v4775_v18, %v3344_v44 }
 0x5d0   : > { %v3502_v54 = vadd.f32 %v3438_v37, %v3246_v11  ;;  %v3503_v2 = vadd.f32 %v3439_v33, %v3247_v19  ;;  %v4794_v37 = vld [vmem:[%s5528_s26 + $0x140] sm:$0xff]  ;;  %v4795_v33 = vld [vmem:[%s5528_s26 + $0x148] sm:$0xff] }
 0x5d2   : > { %3566 = vst [vmem:[%s6418_s15 + $0x100] sm:$0xff] %v3502_v54  ;;  %3567 = vst [vmem:[%s6418_s15 + $0x108] sm:$0xff] %v3503_v2  ;;  %v3092_v28 = vpop.permute.xlu1 %3091  ;;  %v6790_v8 = vpop.permute.xlu0 %2915  ;;  %v4796_v2 = vld [vmem:[%s5536_s22 + $0x140] sm:$0xff] }
 0x5d3   : > { %v3184_v50 = vmul.f32 %v4778_v47, %v3092_v28  ;;  %v3185_v1 = vmul.f32 %v4779_v20, %v3092_v28  ;;  %v3190_v59 = vmul.f32 %v4796_v2, %v6748_v32  ;;  %v4797_v28 = vld [vmem:[%s5536_s22 + $0x148] sm:$0xff]  ;;  %v4798_v47 = vld [vmem:[%s5543_s16 + $0x140] sm:$0xff]  ;;  %v4817_v2 = vld [vmem:[%s5543_s16 + $0x178] sm:$0xff] }
 0x5d4   : > { %v3191_v30 = vmul.f32 %v4797_v28, %v6748_v32  ;;  %v4799_v20 = vld [vmem:[%s5543_s16 + $0x148] sm:$0xff] }
 0x5d5   : > { %v3248_v55 = vadd.f32 %v3184_v50, %v2992_v57  ;;  %v3249_v43 = vadd.f32 %v3185_v1, %v2993_v61 }
 0x5d7   : > { %v3504_v3 = vadd.f32 %v3440_v52, %v3248_v55  ;;  %v3505_v13 = vadd.f32 %v3441_v56, %v3249_v43  ;;  %v2891_v16 = vpop.permute.xlu1 %2890  ;;  %v3372_v49 = vpop.permute.xlu0 %3371  ;;  %v4800_v55 = vld [vmem:[%s5528_s26 + $0x150] sm:$0xff]  ;;  %v4801_v43 = vld [vmem:[%s5528_s26 + $0x158] sm:$0xff] }
 0x5d8   : > { %v2994_v38 = vmul.f32 %v4782_v24, %v2891_v16  ;;  %v2995_v46 = vmul.f32 %v4783_v9, %v2891_v16  ;;  %v3000_v32 = vmul.f32 %v4800_v55, %v6762_v40  ;;  %v4803_v24 = vld [vmem:[%s5536_s22 + $0x158] sm:$0xff]  ;;  %v4804_v9 = vld [vmem:[%s5543_s16 + $0x150] sm:$0xff] }
 0x5d9   : > { %3568 = vst [vmem:[%s6418_s15 + $0x110] sm:$0xff] %v3504_v3  ;;  %3569 = vst [vmem:[%s6418_s15 + $0x118] sm:$0xff] %v3505_v13  ;;  %v3001_v3 = vmul.f32 %v4801_v43, %v6762_v40  ;;  %v4802_v13 = vld [vmem:[%s5536_s22 + $0x150] sm:$0xff] }
 0x5da   : > { %v3250_v48 = vadd.f32 %v3186_v0, %v2994_v38  ;;  %v3251_v5 = vadd.f32 %v3187_v45, %v2995_v46  ;;  %v3448_v46 = vmul.f32 %v4804_v9, %v6772_v29  ;;  %v3449_v0 = vmul.f32 %v4805_v31, %v6772_v29  ;;  %v4809_v29 = vld [vmem:[%s5536_s22 + $0x168] sm:$0xff] }
 0x5dc   : > { %v3352_v23 = vpop.permute.xlu1 %3351 }
 0x5dd   : > { %v3442_v36 = vmul.f32 %v4786_v26, %v3352_v23  ;;  %v3443_v12 = vmul.f32 %v4787_v22, %v3352_v23  ;;  %v3120_v23 = vpop.permute.xlu0 %3119  ;;  %v4806_v26 = vld [vmem:[%s5528_s26 + $0x160] sm:$0xff]  ;;  %v4807_v22 = vld [vmem:[%s5528_s26 + $0x168] sm:$0xff] }
 0x5df   : > { %v3506_v27 = vadd.f32 %v3442_v36, %v3250_v48  ;;  %v3507_v51 = vadd.f32 %v3443_v12, %v3251_v5 }
 0x5e1   : > { %3570 = vst [vmem:[%s6418_s15 + $0x120] sm:$0xff] %v3506_v27  ;;  %3571 = vst [vmem:[%s6418_s15 + $0x128] sm:$0xff] %v3507_v51  ;;  %v3100_v14 = vpop.permute.xlu1 %3099  ;;  %v4808_v27 = vld [vmem:[%s5536_s22 + $0x160] sm:$0xff]  ;;  %v2926_v10 = vpop.permute.xlu0 %2925 }
 0x5e2   : > { %v3188_v63 = vmul.f32 %v4790_v53, %v3100_v14  ;;  %v3189_v6 = vmul.f32 %v4791_v62, %v3100_v14  ;;  %v3194_v51 = vmul.f32 %v4808_v27, %v6782_v42  ;;  %v3195_v14 = vmul.f32 %v4809_v29, %v6782_v42  ;;  %v4810_v53 = vld [vmem:[%s5543_s16 + $0x160] sm:$0xff]  ;;  %v4811_v62 = vld [vmem:[%s5543_s16 + $0x168] sm:$0xff] }
 0x5e4   : > { %v3252_v41 = vadd.f32 %v3188_v63, %v2996_v17  ;;  %v3253_v35 = vadd.f32 %v3189_v6, %v2997_v34 }
 0x5e6   : > { %v3508_v44 = vadd.f32 %v3444_v39, %v3252_v41  ;;  %v3509_v11 = vadd.f32 %v3445_v58, %v3253_v35  ;;  %v2901_v19 = vpop.permute.xlu1 %2900  ;;  %v4812_v58 = vld [vmem:[%s5528_s26 + $0x170] sm:$0xff]  ;;  %v4813_v41 = vld [vmem:[%s5528_s26 + $0x178] sm:$0xff] }
 0x5e7   : > { %v2998_v18 = vmul.f32 %v4794_v37, %v2901_v19  ;;  %v2999_v54 = vmul.f32 %v4795_v33, %v2901_v19  ;;  %v3004_v42 = vmul.f32 %v4812_v58, %v6790_v8  ;;  %v3005_v35 = vmul.f32 %v4813_v41, %v6790_v8  ;;  %v4815_v37 = vld [vmem:[%s5536_s22 + $0x178] sm:$0xff]  ;;  %v4816_v33 = vld [vmem:[%s5543_s16 + $0x170] sm:$0xff] }
 0x5e8   : > { %3572 = vst [vmem:[%s6418_s15 + $0x130] sm:$0xff] %v3508_v44  ;;  %3573 = vst [vmem:[%s6418_s15 + $0x138] sm:$0xff] %v3509_v11  ;;  %v3380_v44 = vpop.permute.xlu0 %3379  ;;  %v4814_v11 = vld [vmem:[%s5536_s22 + $0x170] sm:$0xff] }
 0x5e9   : > { %v3254_v60 = vadd.f32 %v3190_v59, %v2998_v18  ;;  %v3255_v61 = vadd.f32 %v3191_v30, %v2999_v54  ;;  %v3452_v54 = vmul.f32 %v4816_v33, %v3372_v49  ;;  %v3453_v59 = vmul.f32 %v4817_v2, %v3372_v49  ;;  %v4821_v49 = vld [vmem:[%s5536_s22 + $0x188] sm:$0xff]  ;;  %v4836_v2 = vld [vmem:[%s5528_s26 + $0x1b0] sm:$0xff] }
 0x5eb   : > { %v3360_v57 = vpop.permute.xlu1 %3359 }
 0x5ec   : > { %v3446_v50 = vmul.f32 %v4798_v47, %v3360_v57  ;;  %v3447_v1 = vmul.f32 %v4799_v20, %v3360_v57  ;;  %v4818_v47 = vld [vmem:[%s5528_s26 + $0x180] sm:$0xff]  ;;  %v4819_v20 = vld [vmem:[%s5528_s26 + $0x188] sm:$0xff] }
 0x5ee   : > { %v3510_v52 = vadd.f32 %v3446_v50, %v3254_v60  ;;  %v3511_v15 = vadd.f32 %v3447_v1, %v3255_v61  ;;  %v3128_v61 = vpop.permute.xlu0 %3127 }
 0x5f0   : > { %3574 = vst [vmem:[%s6418_s15 + $0x140] sm:$0xff] %v3510_v52  ;;  %3575 = vst [vmem:[%s6418_s15 + $0x148] sm:$0xff] %v3511_v15  ;;  %v3108_v56 = vpop.permute.xlu1 %3107  ;;  %v4820_v52 = vld [vmem:[%s5536_s22 + $0x180] sm:$0xff] }
 0x5f1   : > { %v3192_v16 = vmul.f32 %v4802_v13, %v3108_v56  ;;  %v3193_v38 = vmul.f32 %v4803_v24, %v3108_v56  ;;  %v3198_v15 = vmul.f32 %v4820_v52, %v3120_v23  ;;  %v3199_v56 = vmul.f32 %v4821_v49, %v3120_v23 }
 0x5f3   : > { %v3256_v25 = vadd.f32 %v3192_v16, %v3000_v32  ;;  %v3257_v45 = vadd.f32 %v3193_v38, %v3001_v3  ;;  %v4822_v3 = vld [vmem:[%s5543_s16 + $0x180] sm:$0xff]  ;;  %v4823_v16 = vld [vmem:[%s5543_s16 + $0x188] sm:$0xff]  ;;  %v2936_v38 = vpop.permute.xlu0 %2935 }
 0x5f5   : > { %v3512_v48 = vadd.f32 %v3448_v46, %v3256_v25  ;;  %v3513_v40 = vadd.f32 %v3449_v0, %v3257_v45  ;;  %v2911_v5 = vpop.permute.xlu1 %2910  ;;  %v4824_v0 = vld [vmem:[%s5528_s26 + $0x190] sm:$0xff]  ;;  %v4825_v45 = vld [vmem:[%s5528_s26 + $0x198] sm:$0xff] }
 0x5f6   : > { %v3002_v36 = vmul.f32 %v4806_v26, %v2911_v5  ;;  %v3003_v12 = vmul.f32 %v4807_v22, %v2911_v5  ;;  %v3008_v25 = vmul.f32 %v4824_v0, %v2926_v10  ;;  %v3009_v23 = vmul.f32 %v4825_v45, %v2926_v10  ;;  %v4827_v5 = vld [vmem:[%s5536_s22 + $0x198] sm:$0xff] }
 0x5f7   : > { %3576 = vst [vmem:[%s6418_s15 + $0x150] sm:$0xff] %v3512_v48  ;;  %3577 = vst [vmem:[%s6418_s15 + $0x158] sm:$0xff] %v3513_v40  ;;  %v4826_v48 = vld [vmem:[%s5536_s22 + $0x190] sm:$0xff] }
 0x5f8   : > { %v3258_v4 = vadd.f32 %v3194_v51, %v3002_v36  ;;  %v3259_v34 = vadd.f32 %v3195_v14, %v3003_v12  ;;  %v4828_v36 = vld [vmem:[%s5543_s16 + $0x190] sm:$0xff]  ;;  %v4829_v12 = vld [vmem:[%s5543_s16 + $0x198] sm:$0xff]  ;;  %v3388_v14 = vpop.permute.xlu0 %3387 }
 0x5f9   : > { %v3456_v22 = vmul.f32 %v4828_v36, %v3380_v44  ;;  %v3457_v27 = vmul.f32 %v4829_v12, %v3380_v44  ;;  %v4834_v44 = vld [vmem:[%s5543_s16 + $0x1a0] sm:$0xff] }
 0x5fa   : > { %v3368_v17 = vpop.permute.xlu1 %3367 }
 0x5fb   : > { %v3450_v63 = vmul.f32 %v4810_v53, %v3368_v17  ;;  %v3451_v6 = vmul.f32 %v4811_v62, %v3368_v17 }
 0x5fc   : > { %v3136_v58 = vpop.permute.xlu0 %3135 }
 0x5fd   : > { %v3514_v7 = vadd.f32 %v3450_v63, %v3258_v4  ;;  %v3515_v39 = vadd.f32 %v3451_v6, %v3259_v34  ;;  %v4830_v34 = vld [vmem:[%s5528_s26 + $0x1a0] sm:$0xff]  ;;  %v4831_v63 = vld [vmem:[%s5528_s26 + $0x1a8] sm:$0xff] }
 0x5fe   : > { %v4832_v6 = vld [vmem:[%s5536_s22 + $0x1a0] sm:$0xff] }
 0x5ff   : > { %3578 = vst [vmem:[%s6418_s15 + $0x160] sm:$0xff] %v3514_v7  ;;  %3579 = vst [vmem:[%s6418_s15 + $0x168] sm:$0xff] %v3515_v39  ;;  %v3116_v21 = vpop.permute.xlu1 %3115  ;;  %v3202_v7 = vmul.f32 %v4832_v6, %v3128_v61  ;;  %v4833_v39 = vld [vmem:[%s5536_s22 + $0x1a8] sm:$0xff] }
 0x600   : > { %v3196_v19 = vmul.f32 %v4814_v11, %v3116_v21  ;;  %v3197_v18 = vmul.f32 %v4815_v37, %v3116_v21  ;;  %v3203_v21 = vmul.f32 %v4833_v39, %v3128_v61  ;;  %v4839_v61 = vld [vmem:[%s5536_s22 + $0x1b8] sm:$0xff] }
 0x602   : > { %v3260_v28 = vadd.f32 %v3196_v19, %v3004_v42  ;;  %v3261_v30 = vadd.f32 %v3197_v18, %v3005_v35  ;;  %v4835_v19 = vld [vmem:[%s5543_s16 + $0x1a8] sm:$0xff] }
 0x604   : > { %v3516_v57 = vadd.f32 %v3452_v54, %v3260_v28  ;;  %v3517_v60 = vadd.f32 %v3453_v59, %v3261_v30  ;;  %v2921_v8 = vpop.permute.xlu1 %2920  ;;  %v3012_v59 = vmul.f32 %v4836_v2, %v2936_v38  ;;  %v4837_v28 = vld [vmem:[%s5528_s26 + $0x1b8] sm:$0xff] }
 0x605   : > { %v3006_v50 = vmul.f32 %v4818_v47, %v2921_v8  ;;  %v3007_v1 = vmul.f32 %v4819_v20, %v2921_v8  ;;  %v3013_v30 = vmul.f32 %v4837_v28, %v2936_v38  ;;  %v4844_v38 = vld [vmem:[%s5536_s22 + $0x1c0] sm:$0xff]  ;;  %v4857_v2 = vld [vmem:[%s5536_s22 + $0x1f8] sm:$0xff] }
 0x606   : > { %3580 = vst [vmem:[%s6418_s15 + $0x170] sm:$0xff] %v3516_v57  ;;  %3581 = vst [vmem:[%s6418_s15 + $0x178] sm:$0xff] %v3517_v60  ;;  %v2946_v57 = vpop.permute.xlu0 %2945  ;;  %v4838_v60 = vld [vmem:[%s5536_s22 + $0x1b0] sm:$0xff]  ;;  %v4858_v28 = vld [vmem:[%s5528_s26 + $0x1e0] sm:$0xff] }
 0x607   : > { %v3262_v32 = vadd.f32 %v3198_v15, %v3006_v50  ;;  %v3263_v43 = vadd.f32 %v3199_v56, %v3007_v1  ;;  %v4840_v50 = vld [vmem:[%s5543_s16 + $0x1b0] sm:$0xff]  ;;  %v4841_v1 = vld [vmem:[%s5543_s16 + $0x1b8] sm:$0xff] }
 0x608   : > { %v3460_v20 = vmul.f32 %v4840_v50, %v3388_v14  ;;  %v3461_v52 = vmul.f32 %v4841_v1, %v3388_v14 }
 0x609   : > { %v3376_v55 = vpop.permute.xlu1 %3375 }
 0x60a   : > { %v3454_v13 = vmul.f32 %v4822_v3, %v3376_v55  ;;  %v3455_v24 = vmul.f32 %v4823_v16, %v3376_v55  ;;  %v4842_v3 = vld [vmem:[%s5528_s26 + $0x1c0] sm:$0xff]  ;;  %v4843_v16 = vld [vmem:[%s5528_s26 + $0x1c8] sm:$0xff] }
 0x60c   : > { %v3518_v9 = vadd.f32 %v3454_v13, %v3262_v32  ;;  %v3519_v46 = vadd.f32 %v3455_v24, %v3263_v43  ;;  %v3396_v43 = vpop.permute.xlu0 %3395 }
 0x60e   : > { %3582 = vst [vmem:[%s6418_s15 + $0x180] sm:$0xff] %v3518_v9  ;;  %3583 = vst [vmem:[%s6418_s15 + $0x188] sm:$0xff] %v3519_v46  ;;  %v3124_v31 = vpop.permute.xlu1 %3123  ;;  %v3206_v9 = vmul.f32 %v4844_v38, %v3136_v58  ;;  %v4845_v46 = vld [vmem:[%s5536_s22 + $0x1c8] sm:$0xff] }
 0x60f   : > { %v3200_v40 = vmul.f32 %v4826_v48, %v3124_v31  ;;  %v3201_v26 = vmul.f32 %v4827_v5, %v3124_v31  ;;  %v3207_v31 = vmul.f32 %v4845_v46, %v3136_v58  ;;  %v4865_v38 = vld [vmem:[%s5543_s16 + $0x1e8] sm:$0xff] }
 0x611   : > { %v3264_v51 = vadd.f32 %v3200_v40, %v3008_v25  ;;  %v3265_v29 = vadd.f32 %v3201_v26, %v3009_v23  ;;  %v4846_v23 = vld [vmem:[%s5543_s16 + $0x1c0] sm:$0xff]  ;;  %v4847_v40 = vld [vmem:[%s5543_s16 + $0x1c8] sm:$0xff]  ;;  %v3144_v26 = vpop.permute.xlu0 %3143 }
 0x613   : > { %v3520_v17 = vadd.f32 %v3456_v22, %v3264_v51  ;;  %v3521_v4 = vadd.f32 %v3457_v27, %v3265_v29  ;;  %v2931_v10 = vpop.permute.xlu1 %2930  ;;  %v4848_v27 = vld [vmem:[%s5528_s26 + $0x1d0] sm:$0xff]  ;;  %v4849_v29 = vld [vmem:[%s5528_s26 + $0x1d8] sm:$0xff] }
 0x614   : > { %v3010_v53 = vmul.f32 %v4830_v34, %v2931_v10  ;;  %v3011_v62 = vmul.f32 %v4831_v63, %v2931_v10  ;;  %v3016_v51 = vmul.f32 %v4848_v27, %v2946_v57  ;;  %v3017_v14 = vmul.f32 %v4849_v29, %v2946_v57  ;;  %v4851_v10 = vld [vmem:[%s5536_s22 + $0x1d8] sm:$0xff]  ;;  %v4859_v57 = vld [vmem:[%s5528_s26 + $0x1e8] sm:$0xff] }
 0x615   : > { %3584 = vst [vmem:[%s6418_s15 + $0x190] sm:$0xff] %v3520_v17  ;;  %3585 = vst [vmem:[%s6418_s15 + $0x198] sm:$0xff] %v3521_v4  ;;  %v4850_v17 = vld [vmem:[%s5536_s22 + $0x1d0] sm:$0xff] }
 0x616   : > { %v3266_v41 = vadd.f32 %v3202_v7, %v3010_v53  ;;  %v3267_v35 = vadd.f32 %v3203_v21, %v3011_v62  ;;  %v4852_v53 = vld [vmem:[%s5543_s16 + $0x1d0] sm:$0xff]  ;;  %v4853_v62 = vld [vmem:[%s5543_s16 + $0x1d8] sm:$0xff]  ;;  %v2956_v21 = vpop.permute.xlu0 %2955 }
 0x617   : > { %v3464_v63 = vmul.f32 %v4852_v53, %v3396_v43  ;;  %v3465_v6 = vmul.f32 %v4853_v62, %v3396_v43 }
 0x618   : > { %v3384_v42 = vpop.permute.xlu1 %3383 }
 0x619   : > { %v3458_v11 = vmul.f32 %v4834_v44, %v3384_v42  ;;  %v3459_v37 = vmul.f32 %v4835_v19, %v3384_v42 }
 0x61b   : > { %v3522_v18 = vadd.f32 %v3458_v11, %v3266_v41  ;;  %v3523_v33 = vadd.f32 %v3459_v37, %v3267_v35  ;;  %v3404_v35 = vpop.permute.xlu0 %3403  ;;  %v4854_v11 = vld [vmem:[%s5528_s26 + $0x1f0] sm:$0xff]  ;;  %v4855_v37 = vld [vmem:[%s5528_s26 + $0x1f8] sm:$0xff] }
 0x61c   : > { %v3020_v19 = vmul.f32 %v4854_v11, %v2956_v21 }
 0x61d   : > { %3586 = vst [vmem:[%s6418_s15 + $0x1a0] sm:$0xff] %v3522_v18  ;;  %3587 = vst [vmem:[%s6418_s15 + $0x1a8] sm:$0xff] %v3523_v33  ;;  %v3132_v54 = vpop.permute.xlu1 %3131  ;;  %v3021_v18 = vmul.f32 %v4855_v37, %v2956_v21  ;;  %v4856_v33 = vld [vmem:[%s5536_s22 + $0x1f0] sm:$0xff] }
 0x61e   : > { %v3204_v8 = vmul.f32 %v4838_v60, %v3132_v54  ;;  %v3205_v47 = vmul.f32 %v4839_v61, %v3132_v54 }
 0x620   : > { %v3268_v15 = vadd.f32 %v3204_v8, %v3012_v59  ;;  %v3269_v49 = vadd.f32 %v3205_v47, %v3013_v30  ;;  %v4860_v8 = vld [vmem:[%s5543_s16 + $0x1f0] sm:$0xff]  ;;  %v4861_v47 = vld [vmem:[%s5543_s16 + $0x1f8] sm:$0xff] }
 0x621   : > { %v3468_v61 = vmul.f32 %v4860_v8, %v3404_v35  ;;  %v3469_v50 = vmul.f32 %v4861_v47, %v3404_v35 }
 0x622   : > { %v3524_v56 = vadd.f32 %v3460_v20, %v3268_v15  ;;  %v3525_v55 = vadd.f32 %v3461_v52, %v3269_v49  ;;  %v2941_v32 = vpop.permute.xlu1 %2940  ;;  %v4862_v52 = vld [vmem:[%s5536_s22 + $0x1e0] sm:$0xff]  ;;  %v4863_v49 = vld [vmem:[%s5536_s22 + $0x1e8] sm:$0xff] }
 0x623   : > { %v3014_v13 = vmul.f32 %v4842_v3, %v2941_v32  ;;  %v3015_v24 = vmul.f32 %v4843_v16, %v2941_v32  ;;  %v3210_v15 = vmul.f32 %v4862_v52, %v3144_v26  ;;  %v4864_v16 = vld [vmem:[%s5543_s16 + $0x1e0] sm:$0xff] }
 0x624   : > { %3588 = vst [vmem:[%s6418_s15 + $0x1b0] sm:$0xff] %v3524_v56  ;;  %3589 = vst [vmem:[%s6418_s15 + $0x1b8] sm:$0xff] %v3525_v55  ;;  %v3211_v56 = vmul.f32 %v4863_v49, %v3144_v26 }
 0x625   : > { %v3270_v25 = vadd.f32 %v3206_v9, %v3014_v13  ;;  %v3271_v45 = vadd.f32 %v3207_v31, %v3015_v24 }
 0x627   : > { %v3392_v0 = vpop.permute.xlu1 %3391 }
 0x628   : > { %v3462_v48 = vmul.f32 %v4846_v23, %v3392_v0  ;;  %v3463_v5 = vmul.f32 %v4847_v40, %v3392_v0 }
 0x62a   : > { %v3526_v36 = vadd.f32 %v3462_v48, %v3270_v25  ;;  %v3527_v22 = vadd.f32 %v3463_v5, %v3271_v45 }
 0x62c   : > { %3590 = vst [vmem:[%s6418_s15 + $0x1c0] sm:$0xff] %v3526_v36  ;;  %3591 = vst [vmem:[%s6418_s15 + $0x1c8] sm:$0xff] %v3527_v22  ;;  %v3140_v12 = vpop.permute.xlu1 %3139 }
 0x62d   : > { %v3208_v4 = vmul.f32 %v4850_v17, %v3140_v12  ;;  %v3209_v34 = vmul.f32 %v4851_v10, %v3140_v12 }
 0x62f   : > { %v3272_v7 = vadd.f32 %v3208_v4, %v3016_v51  ;;  %v3273_v39 = vadd.f32 %v3209_v34, %v3017_v14 }
 0x631   : > { %v3528_v58 = vadd.f32 %v3464_v63, %v3272_v7  ;;  %v3529_v42 = vadd.f32 %v3465_v6, %v3273_v39  ;;  %v2951_v41 = vpop.permute.xlu1 %2950 }
 0x632   : > { %v3018_v30 = vmul.f32 %v4858_v28, %v2951_v41  ;;  %v3019_v60 = vmul.f32 %v4859_v57, %v2951_v41 }
 0x633   : > { %3592 = vst [vmem:[%s6418_s15 + $0x1d0] sm:$0xff] %v3528_v58  ;;  %3593 = vst [vmem:[%s6418_s15 + $0x1d8] sm:$0xff] %v3529_v42 }
 0x634   : > { %v3274_v3 = vadd.f32 %v3210_v15, %v3018_v30  ;;  %v3275_v13 = vadd.f32 %v3211_v56, %v3019_v60 }
 0x636   : > { %v3148_v44 = vpop.permute.xlu1 %3147 }
 0x637   : > { %v3212_v54 = vmul.f32 %v4856_v33, %v3148_v44  ;;  %v3213_v59 = vmul.f32 %v4857_v2, %v3148_v44 }
 0x639   : > { %v3276_v20 = vadd.f32 %v3212_v54, %v3020_v19  ;;  %v3277_v1 = vadd.f32 %v3213_v59, %v3021_v18 }
 0x63a   : > { %3605 = sbr.rel (!%p7011_p3) target bundleno = 1630 (0x65e), region = 88 }
 0x63b   : > { %v3532_v55 = vadd.f32 %v3468_v61, %v3276_v20  ;;  %v3533_v32 = vadd.f32 %v3469_v50, %v3277_v1  ;;  %v3400_v43 = vpop.permute.xlu1 %3399 }
 0x63c   : > { %v3466_v24 = vmul.f32 %v4864_v16, %v3400_v43  ;;  %v3467_v9 = vmul.f32 %v4865_v38, %v3400_v43 }
 0x63d   : > { %3596 = vst [vmem:[%s6418_s15 + $0x1f0] sm:$0xff] %v3532_v55  ;;  %3597 = vst [vmem:[%s6418_s15 + $0x1f8] sm:$0xff] %v3533_v32 }
 0x63e   : > { %v3530_v46 = vadd.f32 %v3466_v24, %v3274_v3  ;;  %v3531_v31 = vadd.f32 %v3467_v9, %v3275_v13 }
 0x640   : > { %3594 = vst [vmem:[%s6418_s15 + $0x1e0] sm:$0xff] %v3530_v46  ;;  %3595 = vst [vmem:[%s6418_s15 + $0x1e8] sm:$0xff] %v3531_v31 }
 0x641   : > { %s7028_s14 = smov (!%p3608_p10, %s3607_s14), 32 }
 0x642   : > { %s6904_s24 = sshll.u32 %s7028_s14, 8 }
 0x643   : > { %s3613_s19 = ssub.s32 8192, %s6904_s24 }
 0x644   : > { %3614 = vsyncadd %s3599_s17, %s3613_s19  ;;  %p3934_p5 = scmp.ne.s32.totalorder %s6904_s24, 0  ;;  %s3952_s30 = sshll.u32 %s5236_s13, 13 }
 0x645   : > { %s7012_s23 = sld [smem:[#allocation28_spill]]  ;;  %s3620_s22 = sshll.u32 %s6418_s15, 4  ;;  %s6917_s22 = int_to_ptr.vmem [resolvable:$true] %s3620_s22 }
 0x646   : > { %s5062_s16 = scalar_lea.vmem %s6917_s22, %s6904_s24  ;;  %s5162_s20 = smov [#allocation14]  }
 0x647   : > { %p5063_p6 = scmp.ne.s32.totalorder %s6917_s22, %s5062_s16  ;;  %s5066_s28 = sshll.u32 %s5162_s20, 4  ;;  %s5067_s28 = int_to_ptr.vmem [resolvable:$false] %s5066_s28 }
 0x648   : > { %s5068_s13 = scalar_lea.vmem %s5067_s28, 16384  ;;  %p5069_p12 = scmp.lt.s32.totalorder %s6917_s22, %s5067_s28 }
 0x649   : > { %p5064_p11 = pnand %p5063_p6, %p3934_p5  ;;  %p5070_p13 = scmp.lt.s32.totalorder %s5068_s13, %s5062_s16 }
 0x64b   : > { %s6914_s18 = scalar_lea.hbm %s7012_s23, %s3952_s30  ;;  %p5065_p0 = pneg %p5064_p11 }
 0x64c   : > { %p5071_p7 = por %p5070_p13, %p5069_p12 }
 0x64e   : > { %p5072_p2 = pnand %p5071_p7, %p5065_p0 }
 0x650   : > { %5075 = shalt.err (!%p5072_p2)
}
 0x651   : > { %s5076_s21 = scalar_lea.hbm %s6914_s18, %s6904_s24  ;;  %s5080_s15 = scalar_lea.hbm %s7012_s23, 12288 }
 0x652   : > { %p5077_p8 = scmp.ne.s32.totalorder %s6914_s18, %s5076_s21  ;;  %p5081_p3 = scmp.lt.u32.totalorder %s6914_s18, %s7012_s23 }
 0x653   : > { %p5082_p10 = scmp.lt.u32.totalorder %s5080_s15, %s5076_s21  ;;  %p5084_p11 = scmp.lt.u32.totalorder %s5076_s21, %s6914_s18 }
 0x654   : > { %p5078_p9 = pnand %p5077_p8, %p3934_p5 }
 0x655   : > { %p5083_p6 = por %p5082_p10, %p5081_p3 }
 0x656   : > { %p5079_p1 = pneg %p5078_p9 }
 0x657   : > { %p5085_p0 = por %p5084_p11, %p5083_p6 }
 0x659   : > { %p5086_p12 = pnand %p5085_p0, %p5079_p1 }
 0x65b   : > { %5089 = shalt.err (!%p5086_p12)
}
 0x65c   : > { %s5163_s14 = smov 256   ;;  %s5164_s19 = smov 16  }
 0x65d   : > { %3626 = dma.vmem_to_hbm [thread:$0]  (%p3934_p5), %s6917_s22, %s6904_s24, %s6914_s18, %s3599_s17, %s5163_s14, %s5163_s14, %s5164_s19  }
 0x65e PF: > { %s7013_s30 = sld [smem:[#allocation20_spill]]  ;;  %s7014_s3 = sld [smem:[#allocation24_spill]] }
 0x664   : > { %s3635_s26 = sand.u32 1, %s7013_s30   ;;  %p7015_p13 = scmp.ne.s32.totalorder %s7014_s3, 0 }
 0x665   : > { %s3636_s16 = scalar_lea.sflag [#allocation4], %s3635_s26 }
 0x666   : > { %p4227_p7 = pnand %p3780_p4, %p7015_p13 }
 0x668   : > { %5123 = dma.done.wait (!%p4227_p7), %s3636_s16, 8192  }
 0x669   : > { %5125 = vsyncadd (!%p4227_p7), %s3636_s16, 4294959104  ;;  %s7016_s12 = sld [smem:[#allocation21_spill]]  ;;  %s7017_s20 = sld [smem:[#allocation22_spill]] }
 0x66a   : > { %s7018_s30 = smov %s5132_s10  ;;  %s7019_s10 = smov %s5136_s11 }
 0x66f   : > { %p27_p2 = scmp.ge.s32.totalorder %s7016_s12, 4   ;;  %s7020_s11 = smov %s7017_s20 }
 0x671   :  { %29 = sbr.rel (!%p27_p2) target bundleno = 13 (0xd), region = 141 }
 0x678   :  { %3641 = vsyncpa [#allocation3], 1 }
 0x679   :  { %3643 = vsyncpa [#allocation3 + $0x1], 1 }
 0x67a   :  { %3644 = vsyncpa [#allocation6], 1 }
 0x67b   :  { %3646 = vsyncpa [#allocation6 + $0x1], 1 }
 0x67c   :  { %3647 = vsyncpa [#allocation9], 1 }
 0x67d   :  { %3648 = vsyncpa [#allocation12], 1 }
 0x67e   :  { %3649 = vsyncpa [#allocation4], 1 }
 0x67f   :  { %3651 = vsyncpa [#allocation4 + $0x1], 1 }

</bundles_post_ra>
